<compile_context>
chip_gen: v5e
topology: v5e:2x2
jax: 0.10.0
libtpu: 0.0.40
codegen_flags: <defaults>
</compile_context>

<pallas_src>
import math

import jax
import jax.numpy as jnp
import numpy as np
from jax.experimental import pallas as pl
from jax.experimental.pallas import tpu as pltpu

GROUP = 8  # time steps scanned per aligned (GROUP, d_inner) y store


# ----------------------------- kernel helpers -----------------------------

def _sigmoid(x):
    return 1.0 / (1.0 + jnp.exp(-x))


def _silu(x):
    return x * _sigmoid(x)


def _softplus(x):
    # overflow-safe softplus (max(x,0) + log(1+exp(-|x|))); matches jax.nn.softplus
    # to far below the test tolerance without relying on log1p lowering.
    return jnp.maximum(x, 0.0) + jnp.log(1.0 + jnp.exp(-jnp.abs(x)))


# ------------------------------- the kernel -------------------------------

def mamba_kernel(hid_ref, w_in_ref, conv_w_ref, conv_b_ref, w_x_ref, w_dt_ref,
                 dt_b_ref, a_logT_ref, d_ref, w_out_ref,
                 out_ref,
                 h_state, xbuf, dA_s, dBx_s, c_s, y_s):
    c = pl.program_id(1)                      # chunk index along L (sequential)
    C = hid_ref.shape[1]                      # chunk length (static)
    d_state, d_inner = a_logT_ref.shape
    K = conv_w_ref.shape[0]
    dtr = w_dt_ref.shape[0]

    # reset carried state at the first chunk of every sequence
    @pl.when(c == 0)
    def _():
        h_state[...] = jnp.zeros_like(h_state)
        xbuf[0:K - 1, :] = jnp.zeros((K - 1, d_inner), jnp.float32)

    hid = hid_ref[0]                                                    # (C, D) f32

    # ---- in_proj: bf16 inputs, f32 accumulation on the MXU ----
    xz = jnp.dot(hid.astype(w_in_ref.dtype), w_in_ref[...],
                 preferred_element_type=jnp.float32)                    # (C, 2*di)
    x = xz[:, :d_inner]                                                 # (C, di)
    z = xz[:, d_inner:]                                                 # (C, di)

    # ---- causal depthwise conv1d: carry kept in place in xbuf (no concatenate) ----
    xbuf[K - 1:K - 1 + C, :] = x
    acc = jnp.zeros((C, d_inner), jnp.float32)
    for k in range(K):                                                  # tiny static unroll
        acc = acc + xbuf[k:k + C, :] * conv_w_ref[k:k + 1, :]
    xconv = _silu(acc + conv_b_ref[...])                                # (C, di) f32
    # stash the last K-1 pre-conv rows for the next chunk
    xbuf[0:K - 1, :] = x[C - (K - 1):, :]

    # ---- x_proj (bf16 matmul) -> dt_low | B | C ----
    x_dbl = jnp.dot(xconv.astype(w_x_ref.dtype), w_x_ref[...],
                    preferred_element_type=jnp.float32)                 # (C, dtr+2*ds)
    dt_low = x_dbl[:, :dtr]                                             # (C, dtr)
    Bm = x_dbl[:, dtr:dtr + d_state]                                    # (C, ds)
    Cm = x_dbl[:, dtr + d_state:dtr + 2 * d_state]                      # (C, ds)

    # ---- dt_proj + delta_bias + softplus.  Kept f32: dt feeds exp(dt*A) and is
    #      exponentially sensitive, bf16 here would drift from the reference. ----
    dt = jnp.dot(dt_low, w_dt_ref[...],
                 preferred_element_type=jnp.float32) + dt_b_ref[...]    # (C, di)
    dt = _softplus(dt)

    # ---- discretization (f32); state layout (ds, di): d_inner on the lane axis ----
    A_T = -jnp.exp(a_logT_ref[...])                                     # (ds, di)
    dA_s[...] = jnp.exp(dt[:, None, :] * A_T[None, :, :])               # (C, ds, di)
    dBx_s[...] = (dt * xconv)[:, None, :] * Bm[:, :, None]              # (C, ds, di)
    c_s[...] = Cm                                                       # (C, ds)

    # ---- sequential selective scan.  h lives in vregs through the loop carry
    #      (no per-step VMEM RMW); y is written in aligned (GROUP, di) blocks. ----
    n_groups = C // GROUP

    def group_body(g, h):
        base = pl.multiple_of(g * GROUP, GROUP)
        dA_blk = dA_s[pl.ds(base, GROUP), :, :]                         # (G, ds, di)
        dBx_blk = dBx_s[pl.ds(base, GROUP), :, :]                       # (G, ds, di)
        c_blk = c_s[pl.ds(base, GROUP), :]                              # (G, ds)
        cb_blk = jnp.broadcast_to(c_blk[:, :, None],
                                  (GROUP, d_state, d_inner))            # registers only
        y_rows = []
        for r in range(GROUP):                                          # static unroll
            h = h * dA_blk[r] + dBx_blk[r]                              # (ds, di)
            y_rows.append(jnp.sum(h * cb_blk[r], axis=0, keepdims=True))  # (1, di)
        y_s[pl.ds(base, GROUP), :] = jnp.concatenate(y_rows, axis=0)    # aligned store
        return h

    h_last = jax.lax.fori_loop(0, n_groups, group_body, h_state[...])
    h_state[...] = h_last                                               # carry across chunks

    # ---- D skip, SiLU(z) gate, out_proj (bf16 matmul) ----
    y = y_s[...] + xconv * d_ref[...]
    y = y * _silu(z)
    out = jnp.dot(y.astype(w_out_ref.dtype), w_out_ref[...],
                  preferred_element_type=jnp.float32)                   # (C, D)
    out_ref[0] = out.astype(out_ref.dtype)


# ------------------------------ host wrapper ------------------------------

def mamba_forward(hidden, params, chunk=128, single_buffer_weights=True):
    B, L, D = hidden.shape
    (W_in_T, conv_w, conv_b, W_x_T, W_dt_T, dt_b, A_logT, Dp, W_out_T) = params
    d_state, d_inner = A_logT.shape
    K = conv_w.shape[0]

    chunk = min(chunk, L)
    assert L % chunk == 0, "seqlen must be a multiple of the chunk size"
    assert chunk % GROUP == 0, "chunk must be a multiple of the y-store group (8)"
    assert chunk >= K - 1, "chunk must cover the conv receptive-field carry"
    num_chunks = L // chunk

    # Invariant weights: whole-array blocks; single-buffered (never re-fetched).
    def weight_spec(arr):
        nd = arr.ndim
        idx = lambda b, c, _nd=nd: (0,) * _nd
        if single_buffer_weights:
            return pl.BlockSpec(arr.shape, idx, pipeline_mode=pl.Buffered(1))
        return pl.BlockSpec(arr.shape, idx)

    in_specs = [pl.BlockSpec((1, chunk, D), lambda b, c: (b, c, 0))]
    in_specs += [weight_spec(p) for p in params]
    out_specs = pl.BlockSpec((1, chunk, D), lambda b, c: (b, c, 0))

    scratch_shapes = [
        pltpu.VMEM((d_state, d_inner), jnp.float32),            # h_state (carried)
        pltpu.VMEM((chunk + K - 1, d_inner), jnp.float32),      # conv input + carry
        pltpu.VMEM((chunk, d_state, d_inner), jnp.float32),     # dA per chunk
        pltpu.VMEM((chunk, d_state, d_inner), jnp.float32),     # dt*B*x per chunk
        pltpu.VMEM((chunk, d_state), jnp.float32),              # C projection per chunk
        pltpu.VMEM((chunk, d_inner), jnp.float32),              # y per chunk
    ]

    # VMEM budget: ~80% of the detected chip's physical VMEM
    # (≈51 MiB on v7x, ≈102 MiB on v5e/v6e), leaving headroom for compiler scratch.
    try:
        vmem_cap = pltpu.get_tpu_info().vmem_capacity_bytes
    except Exception:
        vmem_cap = 128 * 1024 * 1024
    vmem_limit = int(vmem_cap * 0.8)

    return pl.pallas_call(
        mamba_kernel,
        out_shape=jax.ShapeDtypeStruct((B, L, D), jnp.float32),
        grid=(B, num_chunks),
        in_specs=in_specs,
        out_specs=out_specs,
        scratch_shapes=scratch_shapes,
        compiler_params=pltpu.CompilerParams(
            dimension_semantics=("parallel", "arbitrary"),
            vmem_limit_bytes=vmem_limit),
    )(hidden, *params)


# ----------------------------- pure-JAX reference -----------------------------

def mamba_ref(hidden, params):
    (W_in_T, conv_w, conv_b, W_x_T, W_dt_T, dt_b, A_logT, Dp, W_out_T) = params
    B, L, D = hidden.shape
    d_state, d_inner = A_logT.shape
    K = conv_w.shape[0]
    dtr = W_dt_T.shape[0]

    def mm(a, w):  # same mixed precision as the kernel: cast to weight dtype, f32 accum
        return jnp.einsum('...k,kn->...n', a.astype(w.dtype), w,
                          preferred_element_type=jnp.float32)

    xz = mm(hidden, W_in_T)
    x, z = xz[..., :d_inner], xz[..., d_inner:]

    xpad = jnp.pad(x, ((0, 0), (K - 1, 0), (0, 0)))
    xconv = sum(xpad[:, k:k + L, :] * conv_w[k] for k in range(K)) + conv_b
    xconv = xconv * jax.nn.sigmoid(xconv)

    x_dbl = mm(xconv, W_x_T)
    dt_low = x_dbl[..., :dtr]
    Bm = x_dbl[..., dtr:dtr + d_state]
    Cm = x_dbl[..., dtr + d_state:]

    dt = jax.nn.softplus(mm(dt_low, W_dt_T) + dt_b)
    A = -jnp.exp(A_logT.T)                                    # (di, ds)

    def step(h, inp):
        dt_t, x_t, B_t, C_t = inp
        dA = jnp.exp(dt_t[..., None] * A)
        h = h * dA + (dt_t * x_t)[..., None] * B_t[:, None, :]
        y = jnp.sum(h * C_t[:, None, :], axis=-1)
        return h, y

    h0 = jnp.zeros((B, d_inner, d_state), jnp.float32)
    xs = (jnp.swapaxes(dt, 0, 1), jnp.swapaxes(xconv, 0, 1),
          jnp.swapaxes(Bm, 0, 1), jnp.swapaxes(Cm, 0, 1))
    _, ys = jax.lax.scan(step, h0, xs)
    y = jnp.swapaxes(ys, 0, 1)

    y = y + xconv * Dp
    y = y * (z * jax.nn.sigmoid(z))
    return mm(y, W_out_T)


# ----------------------------------- main -----------------------------------

if __name__ == "__main__":
    d_model, d_state, d_conv, expand = 32, 16, 4, 2
    d_inner = expand * d_model                    # 64
    dt_rank = math.ceil(d_model / 16)             # 2
    B, L = 2, 32
    CHUNK = 16        # toy size; use ~64 on v7x, 128-256 on v5e/v6e at real shapes
    dt_min, dt_max, dt_init_floor = 0.001, 0.1, 1e-4

    key = jax.random.PRNGKey(0)
    ks = jax.random.split(key, 8)

    mm_dtype = jnp.bfloat16   # bf16 projection weights: MXU-peak dtype on v5e/v6e/v7x

    # weights stored pre-transposed for the kernel (no in-kernel .T)
    W_in_T = ((jax.random.uniform(ks[0], (2 * d_inner, d_model), jnp.float32, -1.0, 1.0)
               / math.sqrt(d_model)).T).astype(mm_dtype)                # (D, 2*di)
    conv_w = (jax.random.uniform(ks[1], (d_conv, d_inner), jnp.float32, -1.0, 1.0)
              / math.sqrt(d_conv))                                      # torch (di,1,K) -> (K, di)
    conv_b = 0.1 * jax.random.uniform(ks[2], (1, d_inner), jnp.float32, -1.0, 1.0)
    W_x_T = ((jax.random.uniform(ks[3], (dt_rank + 2 * d_state, d_inner),
                                 jnp.float32, -1.0, 1.0)
              / math.sqrt(d_inner)).T).astype(mm_dtype)                 # (di, dtr+2*ds)
    dt_init_std = dt_rank ** -0.5
    W_dt_T = jax.random.uniform(ks[4], (d_inner, dt_rank), jnp.float32,
                                -dt_init_std, dt_init_std).T            # (dtr, di), f32 (dt path)
    dt0 = jnp.exp(jax.random.uniform(ks[5], (d_inner,), jnp.float32)
                  * (math.log(dt_max) - math.log(dt_min)) + math.log(dt_min))
    dt0 = jnp.clip(dt0, dt_init_floor, None)
    inv_dt = dt0 + jnp.log(-jnp.expm1(-dt0))
    dt_b = inv_dt.reshape(1, d_inner).astype(jnp.float32)
    A_logT = jnp.log(jnp.broadcast_to(
        jnp.arange(1, d_state + 1, dtype=jnp.float32)[:, None],
        (d_state, d_inner)))                                            # (ds, di)
    Dp = jnp.ones((1, d_inner), jnp.float32)
    W_out_T = ((jax.random.uniform(ks[6], (d_model, d_inner), jnp.float32, -1.0, 1.0)
                / math.sqrt(d_inner)).T).astype(mm_dtype)               # (di, D)

    params = (W_in_T, conv_w, conv_b, W_x_T, W_dt_T, dt_b, A_logT, Dp, W_out_T)

    hidden = jax.random.normal(ks[7], (B, L, d_model), jnp.float32)

    try:
        out = jax.block_until_ready(
            mamba_forward(hidden, params, chunk=CHUNK, single_buffer_weights=True))
    except Exception:
        # graceful fallback if this JAX build does not support BlockSpec.pipeline_mode
        out = jax.block_until_ready(
            mamba_forward(hidden, params, chunk=CHUNK, single_buffer_weights=False))

    ref = jax.block_until_ready(mamba_ref(hidden, params))
    np.testing.assert_allclose(np.asarray(out), np.asarray(ref), rtol=3e-3, atol=3e-3)

    print("KERNEL_OK")
</pallas_src>

<mosaic_0001>
module attributes {stable_mosaic.version = 11 : i64} {
  func.func @mamba_kernel(%arg0: i32, %arg1: i32, %arg2: memref<1x16x32xf32, #tpu.memory_space<vmem>>, %arg3: memref<32x128xbf16, #tpu.memory_space<vmem>>, %arg4: memref<4x64xf32, #tpu.memory_space<vmem>>, %arg5: memref<1x64xf32, #tpu.memory_space<vmem>>, %arg6: memref<64x34xbf16, #tpu.memory_space<vmem>>, %arg7: memref<2x64xf32, #tpu.memory_space<vmem>>, %arg8: memref<1x64xf32, #tpu.memory_space<vmem>>, %arg9: memref<16x64xf32, #tpu.memory_space<vmem>>, %arg10: memref<1x64xf32, #tpu.memory_space<vmem>>, %arg11: memref<64x32xbf16, #tpu.memory_space<vmem>>, %arg12: memref<1x16x32xf32, #tpu.memory_space<vmem>>, %arg13: memref<16x64xf32, #tpu.memory_space<vmem>>, %arg14: memref<19x64xf32, #tpu.memory_space<vmem>>, %arg15: memref<16x16x64xf32, #tpu.memory_space<vmem>>, %arg16: memref<16x16x64xf32, #tpu.memory_space<vmem>>, %arg17: memref<16x16xf32, #tpu.memory_space<vmem>>, %arg18: memref<16x64xf32, #tpu.memory_space<vmem>>) attributes {dimension_semantics = [#tpu.dimension_semantics<parallel>, #tpu.dimension_semantics<arbitrary>], iteration_bounds = array<i64: 2, 2>, scalar_prefetch = 0 : i64, scratch_operands = 6 : i64, tpu.core_type = #tpu.core_type<tc>, window_params = [{transform_indices = @transform_0, window_bounds = array<i64: 1, 16, 32>}, {pipeline_mode = #tpu.pipeline_mode<synchronous>, transform_indices = @transform_1, window_bounds = array<i64: 32, 128>}, {pipeline_mode = #tpu.pipeline_mode<synchronous>, transform_indices = @transform_2, window_bounds = array<i64: 4, 64>}, {pipeline_mode = #tpu.pipeline_mode<synchronous>, transform_indices = @transform_3, window_bounds = array<i64: 1, 64>}, {pipeline_mode = #tpu.pipeline_mode<synchronous>, transform_indices = @transform_4, window_bounds = array<i64: 64, 34>}, {pipeline_mode = #tpu.pipeline_mode<synchronous>, transform_indices = @transform_5, window_bounds = array<i64: 2, 64>}, {pipeline_mode = #tpu.pipeline_mode<synchronous>, transform_indices = @transform_6, window_bounds = array<i64: 1, 64>}, {pipeline_mode = #tpu.pipeline_mode<synchronous>, transform_indices = @transform_7, window_bounds = array<i64: 16, 64>}, {pipeline_mode = #tpu.pipeline_mode<synchronous>, transform_indices = @transform_8, window_bounds = array<i64: 1, 64>}, {pipeline_mode = #tpu.pipeline_mode<synchronous>, transform_indices = @transform_9, window_bounds = array<i64: 64, 32>}, {transform_indices = @transform_10, window_bounds = array<i64: 1, 16, 32>}]} {
    %c0_i32 = arith.constant 0 : i32
    %0 = arith.cmpi eq, %arg1, %c0_i32 : i32
    %1 = arith.extui %0 : i1 to i32
    %c0_i32_0 = arith.constant 0 : i32
    %2 = arith.cmpi ne, %1, %c0_i32_0 : i32
    scf.if %2 {
      %cst_69 = arith.constant 0.000000e+00 : f32
      %109 = vector.broadcast %cst_69 : f32 to vector<16x64xf32>
      %c0_70 = arith.constant 0 : index
      %c0_71 = arith.constant 0 : index
      %110 = vector.load %arg13[%c0_70, %c0_71] : memref<16x64xf32, #tpu.memory_space<vmem>>, vector<16x64xf32>
      tpu.vector_store %arg13[%c0_70, %c0_71], %109 {strides = array<i32>} : memref<16x64xf32, #tpu.memory_space<vmem>>, vector<16x64xf32>,
      %cst_72 = arith.constant 0.000000e+00 : f32
      %111 = vector.broadcast %cst_72 : f32 to vector<3x64xf32>
      %c0_73 = arith.constant 0 : index
      %c0_74 = arith.constant 0 : index
      %112 = vector.load %arg14[%c0_73, %c0_74] : memref<19x64xf32, #tpu.memory_space<vmem>>, vector<3x64xf32>
      tpu.vector_store %arg14[%c0_73, %c0_74], %111 {strides = array<i32>} : memref<19x64xf32, #tpu.memory_space<vmem>>, vector<3x64xf32>,
    } else {
    }
    %c0 = arith.constant 0 : index
    %c0_1 = arith.constant 0 : index
    %c0_2 = arith.constant 0 : index
    %3 = vector.load %arg2[%c0, %c0_1, %c0_2] : memref<1x16x32xf32, #tpu.memory_space<vmem>>, vector<1x16x32xf32>
    %4 = vector.shape_cast %3 : vector<1x16x32xf32> to vector<16x32xf32>
    %5 = arith.truncf %4 : vector<16x32xf32> to vector<16x32xbf16>
    %c0_3 = arith.constant 0 : index
    %c0_4 = arith.constant 0 : index
    %6 = vector.load %arg3[%c0_3, %c0_4] : memref<32x128xbf16, #tpu.memory_space<vmem>>, vector<32x128xbf16>
    %cst = arith.constant dense<0.000000e+00> : vector<16x128xf32>
    %7 = tpu.matmul %5, %6, %cst {dimension_numbers = #tpu.dot_dimension_numbers<[1], [0], [0], [1], [0, 0, 1, 1], [], []>} : vector<16x32xbf16>, vector<32x128xbf16>, vector<16x128xf32> -> vector<16x128xf32>
    %8 = vector.extract_strided_slice %7 {offsets = [0, 0], sizes = [16, 64], strides = [1, 1]} : vector<16x128xf32> to vector<16x64xf32>
    %9 = vector.extract_strided_slice %7 {offsets = [0, 64], sizes = [16, 64], strides = [1, 1]} : vector<16x128xf32> to vector<16x64xf32>
    %c3 = arith.constant 3 : index
    %c0_5 = arith.constant 0 : index
    %10 = vector.load %arg14[%c3, %c0_5] : memref<19x64xf32, #tpu.memory_space<vmem>>, vector<16x64xf32>
    tpu.vector_store %arg14[%c3, %c0_5], %8 {strides = array<i32>} : memref<19x64xf32, #tpu.memory_space<vmem>>, vector<16x64xf32>,
    %cst_6 = arith.constant 0.000000e+00 : f32
    %11 = vector.broadcast %cst_6 : f32 to vector<16x64xf32>
    %c0_7 = arith.constant 0 : index
    %c0_8 = arith.constant 0 : index
    %12 = vector.load %arg14[%c0_7, %c0_8] : memref<19x64xf32, #tpu.memory_space<vmem>>, vector<16x64xf32>
    %c0_9 = arith.constant 0 : index
    %c0_10 = arith.constant 0 : index
    %13 = vector.load %arg4[%c0_9, %c0_10] : memref<4x64xf32, #tpu.memory_space<vmem>>, vector<1x64xf32>
    %14 = vector.broadcast %13 : vector<1x64xf32> to vector<16x64xf32>
    %15 = arith.mulf %12, %14 : vector<16x64xf32>
    %16 = arith.addf %11, %15 : vector<16x64xf32>
    %c1 = arith.constant 1 : index
    %c0_11 = arith.constant 0 : index
    %17 = vector.load %arg14[%c1, %c0_11] : memref<19x64xf32, #tpu.memory_space<vmem>>, vector<16x64xf32>
    %c1_12 = arith.constant 1 : index
    %c0_13 = arith.constant 0 : index
    %18 = vector.load %arg4[%c1_12, %c0_13] : memref<4x64xf32, #tpu.memory_space<vmem>>, vector<1x64xf32>
    %19 = vector.broadcast %18 : vector<1x64xf32> to vector<16x64xf32>
    %20 = arith.mulf %17, %19 : vector<16x64xf32>
    %21 = arith.addf %16, %20 : vector<16x64xf32>
    %c2 = arith.constant 2 : index
    %c0_14 = arith.constant 0 : index
    %22 = vector.load %arg14[%c2, %c0_14] : memref<19x64xf32, #tpu.memory_space<vmem>>, vector<16x64xf32>
    %c2_15 = arith.constant 2 : index
    %c0_16 = arith.constant 0 : index
    %23 = vector.load %arg4[%c2_15, %c0_16] : memref<4x64xf32, #tpu.memory_space<vmem>>, vector<1x64xf32>
    %24 = vector.broadcast %23 : vector<1x64xf32> to vector<16x64xf32>
    %25 = arith.mulf %22, %24 : vector<16x64xf32>
    %26 = arith.addf %21, %25 : vector<16x64xf32>
    %c3_17 = arith.constant 3 : index
    %c0_18 = arith.constant 0 : index
    %27 = vector.load %arg14[%c3_17, %c0_18] : memref<19x64xf32, #tpu.memory_space<vmem>>, vector<16x64xf32>
    %c3_19 = arith.constant 3 : index
    %c0_20 = arith.constant 0 : index
    %28 = vector.load %arg4[%c3_19, %c0_20] : memref<4x64xf32, #tpu.memory_space<vmem>>, vector<1x64xf32>
    %29 = vector.broadcast %28 : vector<1x64xf32> to vector<16x64xf32>
    %30 = arith.mulf %27, %29 : vector<16x64xf32>
    %31 = arith.addf %26, %30 : vector<16x64xf32>
    %c0_21 = arith.constant 0 : index
    %c0_22 = arith.constant 0 : index
    %32 = vector.load %arg5[%c0_21, %c0_22] : memref<1x64xf32, #tpu.memory_space<vmem>>, vector<1x64xf32>
    %33 = vector.broadcast %32 : vector<1x64xf32> to vector<16x64xf32>
    %34 = arith.addf %31, %33 : vector<16x64xf32>
    %cst_23 = arith.constant 0.000000e+00 : f32
    %35 = vector.broadcast %cst_23 : f32 to vector<16x64xf32>
    %36 = arith.subf %35, %34 : vector<16x64xf32>
    %37 = math.exp %36 : vector<16x64xf32>
    %cst_24 = arith.constant 1.000000e+00 : f32
    %38 = vector.broadcast %cst_24 : f32 to vector<16x64xf32>
    %39 = arith.addf %38, %37 : vector<16x64xf32>
    %cst_25 = arith.constant 1.000000e+00 : f32
    %40 = vector.broadcast %cst_25 : f32 to vector<16x64xf32>
    %41 = arith.divf %40, %39 : vector<16x64xf32>
    %42 = arith.mulf %34, %41 : vector<16x64xf32>
    %43 = vector.extract_strided_slice %8 {offsets = [13, 0], sizes = [3, 64], strides = [1, 1]} : vector<16x64xf32> to vector<3x64xf32>
    %c0_26 = arith.constant 0 : index
    %c0_27 = arith.constant 0 : index
    %44 = vector.load %arg14[%c0_26, %c0_27] : memref<19x64xf32, #tpu.memory_space<vmem>>, vector<3x64xf32>
    tpu.vector_store %arg14[%c0_26, %c0_27], %43 {strides = array<i32>} : memref<19x64xf32, #tpu.memory_space<vmem>>, vector<3x64xf32>,
    %45 = arith.truncf %42 : vector<16x64xf32> to vector<16x64xbf16>
    %c0_28 = arith.constant 0 : index
    %c0_29 = arith.constant 0 : index
    %46 = vector.load %arg6[%c0_28, %c0_29] : memref<64x34xbf16, #tpu.memory_space<vmem>>, vector<64x34xbf16>
    %cst_30 = arith.constant dense<0.000000e+00> : vector<16x34xf32>
    %47 = tpu.matmul %45, %46, %cst_30 {dimension_numbers = #tpu.dot_dimension_numbers<[1], [0], [0], [1], [0, 0, 1, 1], [], []>} : vector<16x64xbf16>, vector<64x34xbf16>, vector<16x34xf32> -> vector<16x34xf32>
    %48 = vector.extract_strided_slice %47 {offsets = [0, 0], sizes = [16, 2], strides = [1, 1]} : vector<16x34xf32> to vector<16x2xf32>
    %49 = vector.extract_strided_slice %47 {offsets = [0, 2], sizes = [16, 16], strides = [1, 1]} : vector<16x34xf32> to vector<16x16xf32>
    %50 = vector.extract_strided_slice %47 {offsets = [0, 18], sizes = [16, 16], strides = [1, 1]} : vector<16x34xf32> to vector<16x16xf32>
    %c0_31 = arith.constant 0 : index
    %c0_32 = arith.constant 0 : index
    %51 = vector.load %arg7[%c0_31, %c0_32] : memref<2x64xf32, #tpu.memory_space<vmem>>, vector<2x64xf32>
    %cst_33 = arith.constant dense<0.000000e+00> : vector<16x64xf32>
    %52 = tpu.matmul %48, %51, %cst_33 {dimension_numbers = #tpu.dot_dimension_numbers<[1], [0], [0], [1], [0, 0, 1, 1], [], []>} : vector<16x2xf32>, vector<2x64xf32>, vector<16x64xf32> -> vector<16x64xf32>
    %c0_34 = arith.constant 0 : index
    %c0_35 = arith.constant 0 : index
    %53 = vector.load %arg8[%c0_34, %c0_35] : memref<1x64xf32, #tpu.memory_space<vmem>>, vector<1x64xf32>
    %54 = vector.broadcast %53 : vector<1x64xf32> to vector<16x64xf32>
    %55 = arith.addf %52, %54 : vector<16x64xf32>
    %cst_36 = arith.constant 0.000000e+00 : f32
    %56 = vector.broadcast %cst_36 : f32 to vector<16x64xf32>
    %57 = arith.maximumf %55, %56 : vector<16x64xf32>
    %58 = math.absf %55 : vector<16x64xf32>
    %cst_37 = arith.constant 0.000000e+00 : f32
    %59 = vector.broadcast %cst_37 : f32 to vector<16x64xf32>
    %60 = arith.subf %59, %58 : vector<16x64xf32>
    %61 = math.exp %60 : vector<16x64xf32>
    %cst_38 = arith.constant 1.000000e+00 : f32
    %62 = vector.broadcast %cst_38 : f32 to vector<16x64xf32>
    %63 = arith.addf %62, %61 : vector<16x64xf32>
    %64 = math.log %63 : vector<16x64xf32>
    %65 = arith.addf %57, %64 : vector<16x64xf32>
    %c0_39 = arith.constant 0 : index
    %c0_40 = arith.constant 0 : index
    %66 = vector.load %arg9[%c0_39, %c0_40] : memref<16x64xf32, #tpu.memory_space<vmem>>, vector<16x64xf32>
    %67 = math.exp %66 : vector<16x64xf32>
    %cst_41 = arith.constant 0.000000e+00 : f32
    %68 = vector.broadcast %cst_41 : f32 to vector<16x64xf32>
    %69 = arith.subf %68, %67 : vector<16x64xf32>
    %70 = vector.shape_cast %65 : vector<16x64xf32> to vector<16x1x64xf32>
    %71 = vector.shape_cast %69 : vector<16x64xf32> to vector<1x16x64xf32>
    %72 = vector.broadcast %70 : vector<16x1x64xf32> to vector<16x16x64xf32>
    %73 = vector.broadcast %71 : vector<1x16x64xf32> to vector<16x16x64xf32>
    %74 = arith.mulf %72, %73 : vector<16x16x64xf32>
    %75 = math.exp %74 : vector<16x16x64xf32>
    %c0_42 = arith.constant 0 : index
    %c0_43 = arith.constant 0 : index
    %c0_44 = arith.constant 0 : index
    %76 = vector.load %arg15[%c0_42, %c0_43, %c0_44] : memref<16x16x64xf32, #tpu.memory_space<vmem>>, vector<16x16x64xf32>
    tpu.vector_store %arg15[%c0_42, %c0_43, %c0_44], %75 {strides = array<i32>} : memref<16x16x64xf32, #tpu.memory_space<vmem>>, vector<16x16x64xf32>,
    %77 = arith.mulf %65, %42 : vector<16x64xf32>
    %78 = vector.shape_cast %77 : vector<16x64xf32> to vector<16x1x64xf32>
    %79 = vector.shape_cast %49 : vector<16x16xf32> to vector<16x16x1xf32>
    %80 = vector.broadcast %78 : vector<16x1x64xf32> to vector<16x16x64xf32>
    %81 = vector.broadcast %79 : vector<16x16x1xf32> to vector<16x16x64xf32>
    %82 = arith.mulf %80, %81 : vector<16x16x64xf32>
    %c0_45 = arith.constant 0 : index
    %c0_46 = arith.constant 0 : index
    %c0_47 = arith.constant 0 : index
    %83 = vector.load %arg16[%c0_45, %c0_46, %c0_47] : memref<16x16x64xf32, #tpu.memory_space<vmem>>, vector<16x16x64xf32>
    tpu.vector_store %arg16[%c0_45, %c0_46, %c0_47], %82 {strides = array<i32>} : memref<16x16x64xf32, #tpu.memory_space<vmem>>, vector<16x16x64xf32>,
    %c0_48 = arith.constant 0 : index
    %c0_49 = arith.constant 0 : index
    %84 = vector.load %arg17[%c0_48, %c0_49] : memref<16x16xf32, #tpu.memory_space<vmem>>, vector<16x16xf32>
    tpu.vector_store %arg17[%c0_48, %c0_49], %50 {strides = array<i32>} : memref<16x16xf32, #tpu.memory_space<vmem>>, vector<16x16xf32>,
    %c0_50 = arith.constant 0 : index
    %c0_51 = arith.constant 0 : index
    %85 = vector.load %arg13[%c0_50, %c0_51] : memref<16x64xf32, #tpu.memory_space<vmem>>, vector<16x64xf32>
    %c0_i32_52 = arith.constant 0 : i32
    %c2_i32 = arith.constant 2 : i32
    %86 = arith.addi %c0_i32_52, %c2_i32 : i32
    %c1_i32 = arith.constant 1 : i32
    %87 = scf.for %arg19 = %c0_i32_52 to %86 step %c1_i32 iter_args(%arg20 = %85) -> (vector<16x64xf32>)  : i32 {
      %c8_i32 = arith.constant 8 : i32
      %109 = arith.muli %arg19, %c8_i32 : i32
      %110 = tpu.assume_multiple %109, 8 : i32
      %111 = arith.index_cast %110 : i32 to index
      %c0_69 = arith.constant 0 : index
      %c0_70 = arith.constant 0 : index
      %112 = vector.load %arg15[%111, %c0_69, %c0_70] : memref<16x16x64xf32, #tpu.memory_space<vmem>>, vector<8x16x64xf32>
      %113 = arith.index_cast %110 : i32 to index
      %c0_71 = arith.constant 0 : index
      %c0_72 = arith.constant 0 : index
      %114 = vector.load %arg16[%113, %c0_71, %c0_72] : memref<16x16x64xf32, #tpu.memory_space<vmem>>, vector<8x16x64xf32>
      %115 = arith.index_cast %110 : i32 to index
      %c0_73 = arith.constant 0 : index
      %116 = vector.load %arg17[%115, %c0_73] : memref<16x16xf32, #tpu.memory_space<vmem>>, vector<8x16xf32>
      %117 = vector.shape_cast %116 : vector<8x16xf32> to vector<8x16x1xf32>
      %118 = vector.shape_cast %117 : vector<8x16x1xf32> to vector<8x16x1xf32>
      %119 = vector.broadcast %118 : vector<8x16x1xf32> to vector<8x16x64xf32>
      %120 = vector.extract_strided_slice %112 {offsets = [0, 0, 0], sizes = [1, 16, 64], strides = [1, 1, 1]} : vector<8x16x64xf32> to vector<1x16x64xf32>
      %121 = vector.shape_cast %120 : vector<1x16x64xf32> to vector<16x64xf32>
      %122 = arith.mulf %arg20, %121 : vector<16x64xf32>
      %123 = vector.extract_strided_slice %114 {offsets = [0, 0, 0], sizes = [1, 16, 64], strides = [1, 1, 1]} : vector<8x16x64xf32> to vector<1x16x64xf32>
      %124 = vector.shape_cast %123 : vector<1x16x64xf32> to vector<16x64xf32>
      %125 = arith.addf %122, %124 : vector<16x64xf32>
      %126 = vector.extract_strided_slice %119 {offsets = [0, 0, 0], sizes = [1, 16, 64], strides = [1, 1, 1]} : vector<8x16x64xf32> to vector<1x16x64xf32>
      %127 = vector.shape_cast %126 : vector<1x16x64xf32> to vector<16x64xf32>
      %128 = arith.mulf %125, %127 : vector<16x64xf32>
      %cst_74 = arith.constant dense<0.000000e+00> : vector<64xf32>
      %129 = vector.multi_reduction <add>, %128, %cst_74 [0] : vector<16x64xf32> to vector<64xf32>
      %130 = vector.shape_cast %129 : vector<64xf32> to vector<1x64xf32>
      %131 = vector.extract_strided_slice %112 {offsets = [1, 0, 0], sizes = [1, 16, 64], strides = [1, 1, 1]} : vector<8x16x64xf32> to vector<1x16x64xf32>
      %132 = vector.shape_cast %131 : vector<1x16x64xf32> to vector<16x64xf32>
      %133 = arith.mulf %125, %132 : vector<16x64xf32>
      %134 = vector.extract_strided_slice %114 {offsets = [1, 0, 0], sizes = [1, 16, 64], strides = [1, 1, 1]} : vector<8x16x64xf32> to vector<1x16x64xf32>
      %135 = vector.shape_cast %134 : vector<1x16x64xf32> to vector<16x64xf32>
      %136 = arith.addf %133, %135 : vector<16x64xf32>
      %137 = vector.extract_strided_slice %119 {offsets = [1, 0, 0], sizes = [1, 16, 64], strides = [1, 1, 1]} : vector<8x16x64xf32> to vector<1x16x64xf32>
      %138 = vector.shape_cast %137 : vector<1x16x64xf32> to vector<16x64xf32>
      %139 = arith.mulf %136, %138 : vector<16x64xf32>
      %cst_75 = arith.constant dense<0.000000e+00> : vector<64xf32>
      %140 = vector.multi_reduction <add>, %139, %cst_75 [0] : vector<16x64xf32> to vector<64xf32>
      %141 = vector.shape_cast %140 : vector<64xf32> to vector<1x64xf32>
      %142 = vector.extract_strided_slice %112 {offsets = [2, 0, 0], sizes = [1, 16, 64], strides = [1, 1, 1]} : vector<8x16x64xf32> to vector<1x16x64xf32>
      %143 = vector.shape_cast %142 : vector<1x16x64xf32> to vector<16x64xf32>
      %144 = arith.mulf %136, %143 : vector<16x64xf32>
      %145 = vector.extract_strided_slice %114 {offsets = [2, 0, 0], sizes = [1, 16, 64], strides = [1, 1, 1]} : vector<8x16x64xf32> to vector<1x16x64xf32>
      %146 = vector.shape_cast %145 : vector<1x16x64xf32> to vector<16x64xf32>
      %147 = arith.addf %144, %146 : vector<16x64xf32>
      %148 = vector.extract_strided_slice %119 {offsets = [2, 0, 0], sizes = [1, 16, 64], strides = [1, 1, 1]} : vector<8x16x64xf32> to vector<1x16x64xf32>
      %149 = vector.shape_cast %148 : vector<1x16x64xf32> to vector<16x64xf32>
      %150 = arith.mulf %147, %149 : vector<16x64xf32>
      %cst_76 = arith.constant dense<0.000000e+00> : vector<64xf32>
      %151 = vector.multi_reduction <add>, %150, %cst_76 [0] : vector<16x64xf32> to vector<64xf32>
      %152 = vector.shape_cast %151 : vector<64xf32> to vector<1x64xf32>
      %153 = vector.extract_strided_slice %112 {offsets = [3, 0, 0], sizes = [1, 16, 64], strides = [1, 1, 1]} : vector<8x16x64xf32> to vector<1x16x64xf32>
      %154 = vector.shape_cast %153 : vector<1x16x64xf32> to vector<16x64xf32>
      %155 = arith.mulf %147, %154 : vector<16x64xf32>
      %156 = vector.extract_strided_slice %114 {offsets = [3, 0, 0], sizes = [1, 16, 64], strides = [1, 1, 1]} : vector<8x16x64xf32> to vector<1x16x64xf32>
      %157 = vector.shape_cast %156 : vector<1x16x64xf32> to vector<16x64xf32>
      %158 = arith.addf %155, %157 : vector<16x64xf32>
      %159 = vector.extract_strided_slice %119 {offsets = [3, 0, 0], sizes = [1, 16, 64], strides = [1, 1, 1]} : vector<8x16x64xf32> to vector<1x16x64xf32>
      %160 = vector.shape_cast %159 : vector<1x16x64xf32> to vector<16x64xf32>
      %161 = arith.mulf %158, %160 : vector<16x64xf32>
      %cst_77 = arith.constant dense<0.000000e+00> : vector<64xf32>
      %162 = vector.multi_reduction <add>, %161, %cst_77 [0] : vector<16x64xf32> to vector<64xf32>
      %163 = vector.shape_cast %162 : vector<64xf32> to vector<1x64xf32>
      %164 = vector.extract_strided_slice %112 {offsets = [4, 0, 0], sizes = [1, 16, 64], strides = [1, 1, 1]} : vector<8x16x64xf32> to vector<1x16x64xf32>
      %165 = vector.shape_cast %164 : vector<1x16x64xf32> to vector<16x64xf32>
      %166 = arith.mulf %158, %165 : vector<16x64xf32>
      %167 = vector.extract_strided_slice %114 {offsets = [4, 0, 0], sizes = [1, 16, 64], strides = [1, 1, 1]} : vector<8x16x64xf32> to vector<1x16x64xf32>
      %168 = vector.shape_cast %167 : vector<1x16x64xf32> to vector<16x64xf32>
      %169 = arith.addf %166, %168 : vector<16x64xf32>
      %170 = vector.extract_strided_slice %119 {offsets = [4, 0, 0], sizes = [1, 16, 64], strides = [1, 1, 1]} : vector<8x16x64xf32> to vector<1x16x64xf32>
      %171 = vector.shape_cast %170 : vector<1x16x64xf32> to vector<16x64xf32>
      %172 = arith.mulf %169, %171 : vector<16x64xf32>
      %cst_78 = arith.constant dense<0.000000e+00> : vector<64xf32>
      %173 = vector.multi_reduction <add>, %172, %cst_78 [0] : vector<16x64xf32> to vector<64xf32>
      %174 = vector.shape_cast %173 : vector<64xf32> to vector<1x64xf32>
      %175 = vector.extract_strided_slice %112 {offsets = [5, 0, 0], sizes = [1, 16, 64], strides = [1, 1, 1]} : vector<8x16x64xf32> to vector<1x16x64xf32>
      %176 = vector.shape_cast %175 : vector<1x16x64xf32> to vector<16x64xf32>
      %177 = arith.mulf %169, %176 : vector<16x64xf32>
      %178 = vector.extract_strided_slice %114 {offsets = [5, 0, 0], sizes = [1, 16, 64], strides = [1, 1, 1]} : vector<8x16x64xf32> to vector<1x16x64xf32>
      %179 = vector.shape_cast %178 : vector<1x16x64xf32> to vector<16x64xf32>
      %180 = arith.addf %177, %179 : vector<16x64xf32>
      %181 = vector.extract_strided_slice %119 {offsets = [5, 0, 0], sizes = [1, 16, 64], strides = [1, 1, 1]} : vector<8x16x64xf32> to vector<1x16x64xf32>
      %182 = vector.shape_cast %181 : vector<1x16x64xf32> to vector<16x64xf32>
      %183 = arith.mulf %180, %182 : vector<16x64xf32>
      %cst_79 = arith.constant dense<0.000000e+00> : vector<64xf32>
      %184 = vector.multi_reduction <add>, %183, %cst_79 [0] : vector<16x64xf32> to vector<64xf32>
      %185 = vector.shape_cast %184 : vector<64xf32> to vector<1x64xf32>
      %186 = vector.extract_strided_slice %112 {offsets = [6, 0, 0], sizes = [1, 16, 64], strides = [1, 1, 1]} : vector<8x16x64xf32> to vector<1x16x64xf32>
      %187 = vector.shape_cast %186 : vector<1x16x64xf32> to vector<16x64xf32>
      %188 = arith.mulf %180, %187 : vector<16x64xf32>
      %189 = vector.extract_strided_slice %114 {offsets = [6, 0, 0], sizes = [1, 16, 64], strides = [1, 1, 1]} : vector<8x16x64xf32> to vector<1x16x64xf32>
      %190 = vector.shape_cast %189 : vector<1x16x64xf32> to vector<16x64xf32>
      %191 = arith.addf %188, %190 : vector<16x64xf32>
      %192 = vector.extract_strided_slice %119 {offsets = [6, 0, 0], sizes = [1, 16, 64], strides = [1, 1, 1]} : vector<8x16x64xf32> to vector<1x16x64xf32>
      %193 = vector.shape_cast %192 : vector<1x16x64xf32> to vector<16x64xf32>
      %194 = arith.mulf %191, %193 : vector<16x64xf32>
      %cst_80 = arith.constant dense<0.000000e+00> : vector<64xf32>
      %195 = vector.multi_reduction <add>, %194, %cst_80 [0] : vector<16x64xf32> to vector<64xf32>
      %196 = vector.shape_cast %195 : vector<64xf32> to vector<1x64xf32>
      %197 = vector.extract_strided_slice %112 {offsets = [7, 0, 0], sizes = [1, 16, 64], strides = [1, 1, 1]} : vector<8x16x64xf32> to vector<1x16x64xf32>
      %198 = vector.shape_cast %197 : vector<1x16x64xf32> to vector<16x64xf32>
      %199 = arith.mulf %191, %198 : vector<16x64xf32>
      %200 = vector.extract_strided_slice %114 {offsets = [7, 0, 0], sizes = [1, 16, 64], strides = [1, 1, 1]} : vector<8x16x64xf32> to vector<1x16x64xf32>
      %201 = vector.shape_cast %200 : vector<1x16x64xf32> to vector<16x64xf32>
      %202 = arith.addf %199, %201 : vector<16x64xf32>
      %203 = vector.extract_strided_slice %119 {offsets = [7, 0, 0], sizes = [1, 16, 64], strides = [1, 1, 1]} : vector<8x16x64xf32> to vector<1x16x64xf32>
      %204 = vector.shape_cast %203 : vector<1x16x64xf32> to vector<16x64xf32>
      %205 = arith.mulf %202, %204 : vector<16x64xf32>
      %cst_81 = arith.constant dense<0.000000e+00> : vector<64xf32>
      %206 = vector.multi_reduction <add>, %205, %cst_81 [0] : vector<16x64xf32> to vector<64xf32>
      %207 = vector.shape_cast %206 : vector<64xf32> to vector<1x64xf32>
      %208 = tpu.concatenate %130, %141, %152, %163, %174, %185, %196, %207 in 0 : vector<1x64xf32>, vector<1x64xf32>, vector<1x64xf32>, vector<1x64xf32>, vector<1x64xf32>, vector<1x64xf32>, vector<1x64xf32>, vector<1x64xf32> -> vector<8x64xf32>
      %209 = arith.index_cast %110 : i32 to index
      %c0_82 = arith.constant 0 : index
      %210 = vector.load %arg18[%209, %c0_82] : memref<16x64xf32, #tpu.memory_space<vmem>>, vector<8x64xf32>
      tpu.vector_store %arg18[%209, %c0_82], %208 {strides = array<i32>} : memref<16x64xf32, #tpu.memory_space<vmem>>, vector<8x64xf32>,
      scf.yield %202 : vector<16x64xf32>
    }
    %c2_i32_53 = arith.constant 2 : i32
    %c0_54 = arith.constant 0 : index
    %c0_55 = arith.constant 0 : index
    %88 = vector.load %arg13[%c0_54, %c0_55] : memref<16x64xf32, #tpu.memory_space<vmem>>, vector<16x64xf32>
    tpu.vector_store %arg13[%c0_54, %c0_55], %87 {strides = array<i32>} : memref<16x64xf32, #tpu.memory_space<vmem>>, vector<16x64xf32>,
    %c0_56 = arith.constant 0 : index
    %c0_57 = arith.constant 0 : index
    %89 = vector.load %arg18[%c0_56, %c0_57] : memref<16x64xf32, #tpu.memory_space<vmem>>, vector<16x64xf32>
    %c0_58 = arith.constant 0 : index
    %c0_59 = arith.constant 0 : index
    %90 = vector.load %arg10[%c0_58, %c0_59] : memref<1x64xf32, #tpu.memory_space<vmem>>, vector<1x64xf32>
    %91 = vector.broadcast %90 : vector<1x64xf32> to vector<16x64xf32>
    %92 = arith.mulf %42, %91 : vector<16x64xf32>
    %93 = arith.addf %89, %92 : vector<16x64xf32>
    %cst_60 = arith.constant 0.000000e+00 : f32
    %94 = vector.broadcast %cst_60 : f32 to vector<16x64xf32>
    %95 = arith.subf %94, %9 : vector<16x64xf32>
    %96 = math.exp %95 : vector<16x64xf32>
    %cst_61 = arith.constant 1.000000e+00 : f32
    %97 = vector.broadcast %cst_61 : f32 to vector<16x64xf32>
    %98 = arith.addf %97, %96 : vector<16x64xf32>
    %cst_62 = arith.constant 1.000000e+00 : f32
    %99 = vector.broadcast %cst_62 : f32 to vector<16x64xf32>
    %100 = arith.divf %99, %98 : vector<16x64xf32>
    %101 = arith.mulf %9, %100 : vector<16x64xf32>
    %102 = arith.mulf %93, %101 : vector<16x64xf32>
    %103 = arith.truncf %102 : vector<16x64xf32> to vector<16x64xbf16>
    %c0_63 = arith.constant 0 : index
    %c0_64 = arith.constant 0 : index
    %104 = vector.load %arg11[%c0_63, %c0_64] : memref<64x32xbf16, #tpu.memory_space<vmem>>, vector<64x32xbf16>
    %cst_65 = arith.constant dense<0.000000e+00> : vector<16x32xf32>
    %105 = tpu.matmul %103, %104, %cst_65 {dimension_numbers = #tpu.dot_dimension_numbers<[1], [0], [0], [1], [0, 0, 1, 1], [], []>} : vector<16x64xbf16>, vector<64x32xbf16>, vector<16x32xf32> -> vector<16x32xf32>
    %c0_66 = arith.constant 0 : index
    %c0_67 = arith.constant 0 : index
    %c0_68 = arith.constant 0 : index
    %106 = vector.load %arg12[%c0_66, %c0_67, %c0_68] : memref<1x16x32xf32, #tpu.memory_space<vmem>>, vector<1x16x32xf32>
    %107 = vector.shape_cast %106 : vector<1x16x32xf32> to vector<16x32xf32>
    %108 = vector.shape_cast %105 : vector<16x32xf32> to vector<1x16x32xf32>
    tpu.vector_store %arg12[%c0_66, %c0_67, %c0_68], %108 {strides = array<i32>} : memref<1x16x32xf32, #tpu.memory_space<vmem>>, vector<1x16x32xf32>,
    return
  }
  func.func @transform_0(%arg0: i32, %arg1: i32) -> (i32, i32, i32) {
    %c0_i32 = arith.constant 0 : i32
    %c0_i32_0 = arith.constant 0 : i32
    return %arg0, %arg1, %c0_i32 : i32, i32, i32
  }
  func.func @transform_1(%arg0: i32, %arg1: i32) -> (i32, i32) {
    %c0_i32 = arith.constant 0 : i32
    %c0_i32_0 = arith.constant 0 : i32
    %c0_i32_1 = arith.constant 0 : i32
    return %c0_i32, %c0_i32_0 : i32, i32
  }
  func.func @transform_2(%arg0: i32, %arg1: i32) -> (i32, i32) {
    %c0_i32 = arith.constant 0 : i32
    %c0_i32_0 = arith.constant 0 : i32
    %c0_i32_1 = arith.constant 0 : i32
    return %c0_i32, %c0_i32_0 : i32, i32
  }
  func.func @transform_3(%arg0: i32, %arg1: i32) -> (i32, i32) {
    %c0_i32 = arith.constant 0 : i32
    %c0_i32_0 = arith.constant 0 : i32
    %c0_i32_1 = arith.constant 0 : i32
    return %c0_i32, %c0_i32_0 : i32, i32
  }
  func.func @transform_4(%arg0: i32, %arg1: i32) -> (i32, i32) {
    %c0_i32 = arith.constant 0 : i32
    %c0_i32_0 = arith.constant 0 : i32
    %c0_i32_1 = arith.constant 0 : i32
    return %c0_i32, %c0_i32_0 : i32, i32
  }
  func.func @transform_5(%arg0: i32, %arg1: i32) -> (i32, i32) {
    %c0_i32 = arith.constant 0 : i32
    %c0_i32_0 = arith.constant 0 : i32
    %c0_i32_1 = arith.constant 0 : i32
    return %c0_i32, %c0_i32_0 : i32, i32
  }
  func.func @transform_6(%arg0: i32, %arg1: i32) -> (i32, i32) {
    %c0_i32 = arith.constant 0 : i32
    %c0_i32_0 = arith.constant 0 : i32
    %c0_i32_1 = arith.constant 0 : i32
    return %c0_i32, %c0_i32_0 : i32, i32
  }
  func.func @transform_7(%arg0: i32, %arg1: i32) -> (i32, i32) {
    %c0_i32 = arith.constant 0 : i32
    %c0_i32_0 = arith.constant 0 : i32
    %c0_i32_1 = arith.constant 0 : i32
    return %c0_i32, %c0_i32_0 : i32, i32
  }
  func.func @transform_8(%arg0: i32, %arg1: i32) -> (i32, i32) {
    %c0_i32 = arith.constant 0 : i32
    %c0_i32_0 = arith.constant 0 : i32
    %c0_i32_1 = arith.constant 0 : i32
    return %c0_i32, %c0_i32_0 : i32, i32
  }
  func.func @transform_9(%arg0: i32, %arg1: i32) -> (i32, i32) {
    %c0_i32 = arith.constant 0 : i32
    %c0_i32_0 = arith.constant 0 : i32
    %c0_i32_1 = arith.constant 0 : i32
    return %c0_i32, %c0_i32_0 : i32, i32
  }
  func.func @transform_10(%arg0: i32, %arg1: i32) -> (i32, i32, i32) {
    %c0_i32 = arith.constant 0 : i32
    %c0_i32_0 = arith.constant 0 : i32
    return %arg0, %arg1, %c0_i32 : i32, i32, i32
  }
}

module attributes {stable_mosaic.version = 11 : i64} {
  func.func @mamba_kernel(%arg0: i32, %arg1: i32, %arg2: memref<1x16x32xf32, #tpu.memory_space<vmem>>, %arg3: memref<32x128xbf16, #tpu.memory_space<vmem>>, %arg4: memref<4x64xf32, #tpu.memory_space<vmem>>, %arg5: memref<1x64xf32, #tpu.memory_space<vmem>>, %arg6: memref<64x34xbf16, #tpu.memory_space<vmem>>, %arg7: memref<2x64xf32, #tpu.memory_space<vmem>>, %arg8: memref<1x64xf32, #tpu.memory_space<vmem>>, %arg9: memref<16x64xf32, #tpu.memory_space<vmem>>, %arg10: memref<1x64xf32, #tpu.memory_space<vmem>>, %arg11: memref<64x32xbf16, #tpu.memory_space<vmem>>, %arg12: memref<1x16x32xf32, #tpu.memory_space<vmem>>, %arg13: memref<16x64xf32, #tpu.memory_space<vmem>>, %arg14: memref<19x64xf32, #tpu.memory_space<vmem>>, %arg15: memref<16x16x64xf32, #tpu.memory_space<vmem>>, %arg16: memref<16x16x64xf32, #tpu.memory_space<vmem>>, %arg17: memref<16x16xf32, #tpu.memory_space<vmem>>, %arg18: memref<16x64xf32, #tpu.memory_space<vmem>>) attributes {dimension_semantics = [#tpu.dimension_semantics<parallel>, #tpu.dimension_semantics<arbitrary>], iteration_bounds = array<i64: 2, 2>, scalar_prefetch = 0 : i64, scratch_operands = 6 : i64, tpu.core_type = #tpu.core_type<tc>, window_params = [{transform_indices = @transform_0, window_bounds = array<i64: 1, 16, 32>}, {pipeline_mode = #tpu.pipeline_mode<synchronous>, transform_indices = @transform_1, window_bounds = array<i64: 32, 128>}, {pipeline_mode = #tpu.pipeline_mode<synchronous>, transform_indices = @transform_2, window_bounds = array<i64: 4, 64>}, {pipeline_mode = #tpu.pipeline_mode<synchronous>, transform_indices = @transform_3, window_bounds = array<i64: 1, 64>}, {pipeline_mode = #tpu.pipeline_mode<synchronous>, transform_indices = @transform_4, window_bounds = array<i64: 64, 34>}, {pipeline_mode = #tpu.pipeline_mode<synchronous>, transform_indices = @transform_5, window_bounds = array<i64: 2, 64>}, {pipeline_mode = #tpu.pipeline_mode<synchronous>, transform_indices = @transform_6, window_bounds = array<i64: 1, 64>}, {pipeline_mode = #tpu.pipeline_mode<synchronous>, transform_indices = @transform_7, window_bounds = array<i64: 16, 64>}, {pipeline_mode = #tpu.pipeline_mode<synchronous>, transform_indices = @transform_8, window_bounds = array<i64: 1, 64>}, {pipeline_mode = #tpu.pipeline_mode<synchronous>, transform_indices = @transform_9, window_bounds = array<i64: 64, 32>}, {transform_indices = @transform_10, window_bounds = array<i64: 1, 16, 32>}]} {
    %c0_i32 = arith.constant 0 : i32
    %0 = arith.cmpi eq, %arg1, %c0_i32 : i32
    %1 = arith.extui %0 : i1 to i32
    %c0_i32_0 = arith.constant 0 : i32
    %2 = arith.cmpi ne, %1, %c0_i32_0 : i32
    scf.if %2 {
      %cst_69 = arith.constant 0.000000e+00 : f32
      %109 = vector.broadcast %cst_69 : f32 to vector<16x64xf32>
      %c0_70 = arith.constant 0 : index
      %c0_71 = arith.constant 0 : index
      %110 = vector.load %arg13[%c0_70, %c0_71] : memref<16x64xf32, #tpu.memory_space<vmem>>, vector<16x64xf32>
      tpu.vector_store %arg13[%c0_70, %c0_71], %109 {strides = array<i32>} : memref<16x64xf32, #tpu.memory_space<vmem>>, vector<16x64xf32>,
      %cst_72 = arith.constant 0.000000e+00 : f32
      %111 = vector.broadcast %cst_72 : f32 to vector<3x64xf32>
      %c0_73 = arith.constant 0 : index
      %c0_74 = arith.constant 0 : index
      %112 = vector.load %arg14[%c0_73, %c0_74] : memref<19x64xf32, #tpu.memory_space<vmem>>, vector<3x64xf32>
      tpu.vector_store %arg14[%c0_73, %c0_74], %111 {strides = array<i32>} : memref<19x64xf32, #tpu.memory_space<vmem>>, vector<3x64xf32>,
    } else {
    }
    %c0 = arith.constant 0 : index
    %c0_1 = arith.constant 0 : index
    %c0_2 = arith.constant 0 : index
    %3 = vector.load %arg2[%c0, %c0_1, %c0_2] : memref<1x16x32xf32, #tpu.memory_space<vmem>>, vector<1x16x32xf32>
    %4 = vector.shape_cast %3 : vector<1x16x32xf32> to vector<16x32xf32>
    %5 = arith.truncf %4 : vector<16x32xf32> to vector<16x32xbf16>
    %c0_3 = arith.constant 0 : index
    %c0_4 = arith.constant 0 : index
    %6 = vector.load %arg3[%c0_3, %c0_4] : memref<32x128xbf16, #tpu.memory_space<vmem>>, vector<32x128xbf16>
    %cst = arith.constant dense<0.000000e+00> : vector<16x128xf32>
    %7 = tpu.matmul %5, %6, %cst {dimension_numbers = #tpu.dot_dimension_numbers<[1], [0], [0], [1], [0, 0, 1, 1], [], []>} : vector<16x32xbf16>, vector<32x128xbf16>, vector<16x128xf32> -> vector<16x128xf32>
    %8 = vector.extract_strided_slice %7 {offsets = [0, 0], sizes = [16, 64], strides = [1, 1]} : vector<16x128xf32> to vector<16x64xf32>
    %9 = vector.extract_strided_slice %7 {offsets = [0, 64], sizes = [16, 64], strides = [1, 1]} : vector<16x128xf32> to vector<16x64xf32>
    %c3 = arith.constant 3 : index
    %c0_5 = arith.constant 0 : index
    %10 = vector.load %arg14[%c3, %c0_5] : memref<19x64xf32, #tpu.memory_space<vmem>>, vector<16x64xf32>
    tpu.vector_store %arg14[%c3, %c0_5], %8 {strides = array<i32>} : memref<19x64xf32, #tpu.memory_space<vmem>>, vector<16x64xf32>,
    %cst_6 = arith.constant 0.000000e+00 : f32
    %11 = vector.broadcast %cst_6 : f32 to vector<16x64xf32>
    %c0_7 = arith.constant 0 : index
    %c0_8 = arith.constant 0 : index
    %12 = vector.load %arg14[%c0_7, %c0_8] : memref<19x64xf32, #tpu.memory_space<vmem>>, vector<16x64xf32>
    %c0_9 = arith.constant 0 : index
    %c0_10 = arith.constant 0 : index
    %13 = vector.load %arg4[%c0_9, %c0_10] : memref<4x64xf32, #tpu.memory_space<vmem>>, vector<1x64xf32>
    %14 = vector.broadcast %13 : vector<1x64xf32> to vector<16x64xf32>
    %15 = arith.mulf %12, %14 : vector<16x64xf32>
    %16 = arith.addf %11, %15 : vector<16x64xf32>
    %c1 = arith.constant 1 : index
    %c0_11 = arith.constant 0 : index
    %17 = vector.load %arg14[%c1, %c0_11] : memref<19x64xf32, #tpu.memory_space<vmem>>, vector<16x64xf32>
    %c1_12 = arith.constant 1 : index
    %c0_13 = arith.constant 0 : index
    %18 = vector.load %arg4[%c1_12, %c0_13] : memref<4x64xf32, #tpu.memory_space<vmem>>, vector<1x64xf32>
    %19 = vector.broadcast %18 : vector<1x64xf32> to vector<16x64xf32>
    %20 = arith.mulf %17, %19 : vector<16x64xf32>
    %21 = arith.addf %16, %20 : vector<16x64xf32>
    %c2 = arith.constant 2 : index
    %c0_14 = arith.constant 0 : index
    %22 = vector.load %arg14[%c2, %c0_14] : memref<19x64xf32, #tpu.memory_space<vmem>>, vector<16x64xf32>
    %c2_15 = arith.constant 2 : index
    %c0_16 = arith.constant 0 : index
    %23 = vector.load %arg4[%c2_15, %c0_16] : memref<4x64xf32, #tpu.memory_space<vmem>>, vector<1x64xf32>
    %24 = vector.broadcast %23 : vector<1x64xf32> to vector<16x64xf32>
    %25 = arith.mulf %22, %24 : vector<16x64xf32>
    %26 = arith.addf %21, %25 : vector<16x64xf32>
    %c3_17 = arith.constant 3 : index
    %c0_18 = arith.constant 0 : index
    %27 = vector.load %arg14[%c3_17, %c0_18] : memref<19x64xf32, #tpu.memory_space<vmem>>, vector<16x64xf32>
    %c3_19 = arith.constant 3 : index
    %c0_20 = arith.constant 0 : index
    %28 = vector.load %arg4[%c3_19, %c0_20] : memref<4x64xf32, #tpu.memory_space<vmem>>, vector<1x64xf32>
    %29 = vector.broadcast %28 : vector<1x64xf32> to vector<16x64xf32>
    %30 = arith.mulf %27, %29 : vector<16x64xf32>
    %31 = arith.addf %26, %30 : vector<16x64xf32>
    %c0_21 = arith.constant 0 : index
    %c0_22 = arith.constant 0 : index
    %32 = vector.load %arg5[%c0_21, %c0_22] : memref<1x64xf32, #tpu.memory_space<vmem>>, vector<1x64xf32>
    %33 = vector.broadcast %32 : vector<1x64xf32> to vector<16x64xf32>
    %34 = arith.addf %31, %33 : vector<16x64xf32>
    %cst_23 = arith.constant 0.000000e+00 : f32
    %35 = vector.broadcast %cst_23 : f32 to vector<16x64xf32>
    %36 = arith.subf %35, %34 : vector<16x64xf32>
    %37 = math.exp %36 : vector<16x64xf32>
    %cst_24 = arith.constant 1.000000e+00 : f32
    %38 = vector.broadcast %cst_24 : f32 to vector<16x64xf32>
    %39 = arith.addf %38, %37 : vector<16x64xf32>
    %cst_25 = arith.constant 1.000000e+00 : f32
    %40 = vector.broadcast %cst_25 : f32 to vector<16x64xf32>
    %41 = arith.divf %40, %39 : vector<16x64xf32>
    %42 = arith.mulf %34, %41 : vector<16x64xf32>
    %43 = vector.extract_strided_slice %8 {offsets = [13, 0], sizes = [3, 64], strides = [1, 1]} : vector<16x64xf32> to vector<3x64xf32>
    %c0_26 = arith.constant 0 : index
    %c0_27 = arith.constant 0 : index
    %44 = vector.load %arg14[%c0_26, %c0_27] : memref<19x64xf32, #tpu.memory_space<vmem>>, vector<3x64xf32>
    tpu.vector_store %arg14[%c0_26, %c0_27], %43 {strides = array<i32>} : memref<19x64xf32, #tpu.memory_space<vmem>>, vector<3x64xf32>,
    %45 = arith.truncf %42 : vector<16x64xf32> to vector<16x64xbf16>
    %c0_28 = arith.constant 0 : index
    %c0_29 = arith.constant 0 : index
    %46 = vector.load %arg6[%c0_28, %c0_29] : memref<64x34xbf16, #tpu.memory_space<vmem>>, vector<64x34xbf16>
    %cst_30 = arith.constant dense<0.000000e+00> : vector<16x34xf32>
    %47 = tpu.matmul %45, %46, %cst_30 {dimension_numbers = #tpu.dot_dimension_numbers<[1], [0], [0], [1], [0, 0, 1, 1], [], []>} : vector<16x64xbf16>, vector<64x34xbf16>, vector<16x34xf32> -> vector<16x34xf32>
    %48 = vector.extract_strided_slice %47 {offsets = [0, 0], sizes = [16, 2], strides = [1, 1]} : vector<16x34xf32> to vector<16x2xf32>
    %49 = vector.extract_strided_slice %47 {offsets = [0, 2], sizes = [16, 16], strides = [1, 1]} : vector<16x34xf32> to vector<16x16xf32>
    %50 = vector.extract_strided_slice %47 {offsets = [0, 18], sizes = [16, 16], strides = [1, 1]} : vector<16x34xf32> to vector<16x16xf32>
    %c0_31 = arith.constant 0 : index
    %c0_32 = arith.constant 0 : index
    %51 = vector.load %arg7[%c0_31, %c0_32] : memref<2x64xf32, #tpu.memory_space<vmem>>, vector<2x64xf32>
    %cst_33 = arith.constant dense<0.000000e+00> : vector<16x64xf32>
    %52 = tpu.matmul %48, %51, %cst_33 {dimension_numbers = #tpu.dot_dimension_numbers<[1], [0], [0], [1], [0, 0, 1, 1], [], []>} : vector<16x2xf32>, vector<2x64xf32>, vector<16x64xf32> -> vector<16x64xf32>
    %c0_34 = arith.constant 0 : index
    %c0_35 = arith.constant 0 : index
    %53 = vector.load %arg8[%c0_34, %c0_35] : memref<1x64xf32, #tpu.memory_space<vmem>>, vector<1x64xf32>
    %54 = vector.broadcast %53 : vector<1x64xf32> to vector<16x64xf32>
    %55 = arith.addf %52, %54 : vector<16x64xf32>
    %cst_36 = arith.constant 0.000000e+00 : f32
    %56 = vector.broadcast %cst_36 : f32 to vector<16x64xf32>
    %57 = arith.maximumf %55, %56 : vector<16x64xf32>
    %58 = math.absf %55 : vector<16x64xf32>
    %cst_37 = arith.constant 0.000000e+00 : f32
    %59 = vector.broadcast %cst_37 : f32 to vector<16x64xf32>
    %60 = arith.subf %59, %58 : vector<16x64xf32>
    %61 = math.exp %60 : vector<16x64xf32>
    %cst_38 = arith.constant 1.000000e+00 : f32
    %62 = vector.broadcast %cst_38 : f32 to vector<16x64xf32>
    %63 = arith.addf %62, %61 : vector<16x64xf32>
    %64 = math.log %63 : vector<16x64xf32>
    %65 = arith.addf %57, %64 : vector<16x64xf32>
    %c0_39 = arith.constant 0 : index
    %c0_40 = arith.constant 0 : index
    %66 = vector.load %arg9[%c0_39, %c0_40] : memref<16x64xf32, #tpu.memory_space<vmem>>, vector<16x64xf32>
    %67 = math.exp %66 : vector<16x64xf32>
    %cst_41 = arith.constant 0.000000e+00 : f32
    %68 = vector.broadcast %cst_41 : f32 to vector<16x64xf32>
    %69 = arith.subf %68, %67 : vector<16x64xf32>
    %70 = vector.shape_cast %65 : vector<16x64xf32> to vector<16x1x64xf32>
    %71 = vector.shape_cast %69 : vector<16x64xf32> to vector<1x16x64xf32>
    %72 = vector.broadcast %70 : vector<16x1x64xf32> to vector<16x16x64xf32>
    %73 = vector.broadcast %71 : vector<1x16x64xf32> to vector<16x16x64xf32>
    %74 = arith.mulf %72, %73 : vector<16x16x64xf32>
    %75 = math.exp %74 : vector<16x16x64xf32>
    %c0_42 = arith.constant 0 : index
    %c0_43 = arith.constant 0 : index
    %c0_44 = arith.constant 0 : index
    %76 = vector.load %arg15[%c0_42, %c0_43, %c0_44] : memref<16x16x64xf32, #tpu.memory_space<vmem>>, vector<16x16x64xf32>
    tpu.vector_store %arg15[%c0_42, %c0_43, %c0_44], %75 {strides = array<i32>} : memref<16x16x64xf32, #tpu.memory_space<vmem>>, vector<16x16x64xf32>,
    %77 = arith.mulf %65, %42 : vector<16x64xf32>
    %78 = vector.shape_cast %77 : vector<16x64xf32> to vector<16x1x64xf32>
    %79 = vector.shape_cast %49 : vector<16x16xf32> to vector<16x16x1xf32>
    %80 = vector.broadcast %78 : vector<16x1x64xf32> to vector<16x16x64xf32>
    %81 = vector.broadcast %79 : vector<16x16x1xf32> to vector<16x16x64xf32>
    %82 = arith.mulf %80, %81 : vector<16x16x64xf32>
    %c0_45 = arith.constant 0 : index
    %c0_46 = arith.constant 0 : index
    %c0_47 = arith.constant 0 : index
    %83 = vector.load %arg16[%c0_45, %c0_46, %c0_47] : memref<16x16x64xf32, #tpu.memory_space<vmem>>, vector<16x16x64xf32>
    tpu.vector_store %arg16[%c0_45, %c0_46, %c0_47], %82 {strides = array<i32>} : memref<16x16x64xf32, #tpu.memory_space<vmem>>, vector<16x16x64xf32>,
    %c0_48 = arith.constant 0 : index
    %c0_49 = arith.constant 0 : index
    %84 = vector.load %arg17[%c0_48, %c0_49] : memref<16x16xf32, #tpu.memory_space<vmem>>, vector<16x16xf32>
    tpu.vector_store %arg17[%c0_48, %c0_49], %50 {strides = array<i32>} : memref<16x16xf32, #tpu.memory_space<vmem>>, vector<16x16xf32>,
    %c0_50 = arith.constant 0 : index
    %c0_51 = arith.constant 0 : index
    %85 = vector.load %arg13[%c0_50, %c0_51] : memref<16x64xf32, #tpu.memory_space<vmem>>, vector<16x64xf32>
    %c0_i32_52 = arith.constant 0 : i32
    %c2_i32 = arith.constant 2 : i32
    %86 = arith.addi %c0_i32_52, %c2_i32 : i32
    %c1_i32 = arith.constant 1 : i32
    %87 = scf.for %arg19 = %c0_i32_52 to %86 step %c1_i32 iter_args(%arg20 = %85) -> (vector<16x64xf32>)  : i32 {
      %c8_i32 = arith.constant 8 : i32
      %109 = arith.muli %arg19, %c8_i32 : i32
      %110 = tpu.assume_multiple %109, 8 : i32
      %111 = arith.index_cast %110 : i32 to index
      %c0_69 = arith.constant 0 : index
      %c0_70 = arith.constant 0 : index
      %112 = vector.load %arg15[%111, %c0_69, %c0_70] : memref<16x16x64xf32, #tpu.memory_space<vmem>>, vector<8x16x64xf32>
      %113 = arith.index_cast %110 : i32 to index
      %c0_71 = arith.constant 0 : index
      %c0_72 = arith.constant 0 : index
      %114 = vector.load %arg16[%113, %c0_71, %c0_72] : memref<16x16x64xf32, #tpu.memory_space<vmem>>, vector<8x16x64xf32>
      %115 = arith.index_cast %110 : i32 to index
      %c0_73 = arith.constant 0 : index
      %116 = vector.load %arg17[%115, %c0_73] : memref<16x16xf32, #tpu.memory_space<vmem>>, vector<8x16xf32>
      %117 = vector.shape_cast %116 : vector<8x16xf32> to vector<8x16x1xf32>
      %118 = vector.shape_cast %117 : vector<8x16x1xf32> to vector<8x16x1xf32>
      %119 = vector.broadcast %118 : vector<8x16x1xf32> to vector<8x16x64xf32>
      %120 = vector.extract_strided_slice %112 {offsets = [0, 0, 0], sizes = [1, 16, 64], strides = [1, 1, 1]} : vector<8x16x64xf32> to vector<1x16x64xf32>
      %121 = vector.shape_cast %120 : vector<1x16x64xf32> to vector<16x64xf32>
      %122 = arith.mulf %arg20, %121 : vector<16x64xf32>
      %123 = vector.extract_strided_slice %114 {offsets = [0, 0, 0], sizes = [1, 16, 64], strides = [1, 1, 1]} : vector<8x16x64xf32> to vector<1x16x64xf32>
      %124 = vector.shape_cast %123 : vector<1x16x64xf32> to vector<16x64xf32>
      %125 = arith.addf %122, %124 : vector<16x64xf32>
      %126 = vector.extract_strided_slice %119 {offsets = [0, 0, 0], sizes = [1, 16, 64], strides = [1, 1, 1]} : vector<8x16x64xf32> to vector<1x16x64xf32>
      %127 = vector.shape_cast %126 : vector<1x16x64xf32> to vector<16x64xf32>
      %128 = arith.mulf %125, %127 : vector<16x64xf32>
      %cst_74 = arith.constant dense<0.000000e+00> : vector<64xf32>
      %129 = vector.multi_reduction <add>, %128, %cst_74 [0] : vector<16x64xf32> to vector<64xf32>
      %130 = vector.shape_cast %129 : vector<64xf32> to vector<1x64xf32>
      %131 = vector.extract_strided_slice %112 {offsets = [1, 0, 0], sizes = [1, 16, 64], strides = [1, 1, 1]} : vector<8x16x64xf32> to vector<1x16x64xf32>
      %132 = vector.shape_cast %131 : vector<1x16x64xf32> to vector<16x64xf32>
      %133 = arith.mulf %125, %132 : vector<16x64xf32>
      %134 = vector.extract_strided_slice %114 {offsets = [1, 0, 0], sizes = [1, 16, 64], strides = [1, 1, 1]} : vector<8x16x64xf32> to vector<1x16x64xf32>
      %135 = vector.shape_cast %134 : vector<1x16x64xf32> to vector<16x64xf32>
      %136 = arith.addf %133, %135 : vector<16x64xf32>
      %137 = vector.extract_strided_slice %119 {offsets = [1, 0, 0], sizes = [1, 16, 64], strides = [1, 1, 1]} : vector<8x16x64xf32> to vector<1x16x64xf32>
      %138 = vector.shape_cast %137 : vector<1x16x64xf32> to vector<16x64xf32>
      %139 = arith.mulf %136, %138 : vector<16x64xf32>
      %cst_75 = arith.constant dense<0.000000e+00> : vector<64xf32>
      %140 = vector.multi_reduction <add>, %139, %cst_75 [0] : vector<16x64xf32> to vector<64xf32>
      %141 = vector.shape_cast %140 : vector<64xf32> to vector<1x64xf32>
      %142 = vector.extract_strided_slice %112 {offsets = [2, 0, 0], sizes = [1, 16, 64], strides = [1, 1, 1]} : vector<8x16x64xf32> to vector<1x16x64xf32>
      %143 = vector.shape_cast %142 : vector<1x16x64xf32> to vector<16x64xf32>
      %144 = arith.mulf %136, %143 : vector<16x64xf32>
      %145 = vector.extract_strided_slice %114 {offsets = [2, 0, 0], sizes = [1, 16, 64], strides = [1, 1, 1]} : vector<8x16x64xf32> to vector<1x16x64xf32>
      %146 = vector.shape_cast %145 : vector<1x16x64xf32> to vector<16x64xf32>
      %147 = arith.addf %144, %146 : vector<16x64xf32>
      %148 = vector.extract_strided_slice %119 {offsets = [2, 0, 0], sizes = [1, 16, 64], strides = [1, 1, 1]} : vector<8x16x64xf32> to vector<1x16x64xf32>
      %149 = vector.shape_cast %148 : vector<1x16x64xf32> to vector<16x64xf32>
      %150 = arith.mulf %147, %149 : vector<16x64xf32>
      %cst_76 = arith.constant dense<0.000000e+00> : vector<64xf32>
      %151 = vector.multi_reduction <add>, %150, %cst_76 [0] : vector<16x64xf32> to vector<64xf32>
      %152 = vector.shape_cast %151 : vector<64xf32> to vector<1x64xf32>
      %153 = vector.extract_strided_slice %112 {offsets = [3, 0, 0], sizes = [1, 16, 64], strides = [1, 1, 1]} : vector<8x16x64xf32> to vector<1x16x64xf32>
      %154 = vector.shape_cast %153 : vector<1x16x64xf32> to vector<16x64xf32>
      %155 = arith.mulf %147, %154 : vector<16x64xf32>
      %156 = vector.extract_strided_slice %114 {offsets = [3, 0, 0], sizes = [1, 16, 64], strides = [1, 1, 1]} : vector<8x16x64xf32> to vector<1x16x64xf32>
      %157 = vector.shape_cast %156 : vector<1x16x64xf32> to vector<16x64xf32>
      %158 = arith.addf %155, %157 : vector<16x64xf32>
      %159 = vector.extract_strided_slice %119 {offsets = [3, 0, 0], sizes = [1, 16, 64], strides = [1, 1, 1]} : vector<8x16x64xf32> to vector<1x16x64xf32>
      %160 = vector.shape_cast %159 : vector<1x16x64xf32> to vector<16x64xf32>
      %161 = arith.mulf %158, %160 : vector<16x64xf32>
      %cst_77 = arith.constant dense<0.000000e+00> : vector<64xf32>
      %162 = vector.multi_reduction <add>, %161, %cst_77 [0] : vector<16x64xf32> to vector<64xf32>
      %163 = vector.shape_cast %162 : vector<64xf32> to vector<1x64xf32>
      %164 = vector.extract_strided_slice %112 {offsets = [4, 0, 0], sizes = [1, 16, 64], strides = [1, 1, 1]} : vector<8x16x64xf32> to vector<1x16x64xf32>
      %165 = vector.shape_cast %164 : vector<1x16x64xf32> to vector<16x64xf32>
      %166 = arith.mulf %158, %165 : vector<16x64xf32>
      %167 = vector.extract_strided_slice %114 {offsets = [4, 0, 0], sizes = [1, 16, 64], strides = [1, 1, 1]} : vector<8x16x64xf32> to vector<1x16x64xf32>
      %168 = vector.shape_cast %167 : vector<1x16x64xf32> to vector<16x64xf32>
      %169 = arith.addf %166, %168 : vector<16x64xf32>
      %170 = vector.extract_strided_slice %119 {offsets = [4, 0, 0], sizes = [1, 16, 64], strides = [1, 1, 1]} : vector<8x16x64xf32> to vector<1x16x64xf32>
      %171 = vector.shape_cast %170 : vector<1x16x64xf32> to vector<16x64xf32>
      %172 = arith.mulf %169, %171 : vector<16x64xf32>
      %cst_78 = arith.constant dense<0.000000e+00> : vector<64xf32>
      %173 = vector.multi_reduction <add>, %172, %cst_78 [0] : vector<16x64xf32> to vector<64xf32>
      %174 = vector.shape_cast %173 : vector<64xf32> to vector<1x64xf32>
      %175 = vector.extract_strided_slice %112 {offsets = [5, 0, 0], sizes = [1, 16, 64], strides = [1, 1, 1]} : vector<8x16x64xf32> to vector<1x16x64xf32>
      %176 = vector.shape_cast %175 : vector<1x16x64xf32> to vector<16x64xf32>
      %177 = arith.mulf %169, %176 : vector<16x64xf32>
      %178 = vector.extract_strided_slice %114 {offsets = [5, 0, 0], sizes = [1, 16, 64], strides = [1, 1, 1]} : vector<8x16x64xf32> to vector<1x16x64xf32>
      %179 = vector.shape_cast %178 : vector<1x16x64xf32> to vector<16x64xf32>
      %180 = arith.addf %177, %179 : vector<16x64xf32>
      %181 = vector.extract_strided_slice %119 {offsets = [5, 0, 0], sizes = [1, 16, 64], strides = [1, 1, 1]} : vector<8x16x64xf32> to vector<1x16x64xf32>
      %182 = vector.shape_cast %181 : vector<1x16x64xf32> to vector<16x64xf32>
      %183 = arith.mulf %180, %182 : vector<16x64xf32>
      %cst_79 = arith.constant dense<0.000000e+00> : vector<64xf32>
      %184 = vector.multi_reduction <add>, %183, %cst_79 [0] : vector<16x64xf32> to vector<64xf32>
      %185 = vector.shape_cast %184 : vector<64xf32> to vector<1x64xf32>
      %186 = vector.extract_strided_slice %112 {offsets = [6, 0, 0], sizes = [1, 16, 64], strides = [1, 1, 1]} : vector<8x16x64xf32> to vector<1x16x64xf32>
      %187 = vector.shape_cast %186 : vector<1x16x64xf32> to vector<16x64xf32>
      %188 = arith.mulf %180, %187 : vector<16x64xf32>
      %189 = vector.extract_strided_slice %114 {offsets = [6, 0, 0], sizes = [1, 16, 64], strides = [1, 1, 1]} : vector<8x16x64xf32> to vector<1x16x64xf32>
      %190 = vector.shape_cast %189 : vector<1x16x64xf32> to vector<16x64xf32>
      %191 = arith.addf %188, %190 : vector<16x64xf32>
      %192 = vector.extract_strided_slice %119 {offsets = [6, 0, 0], sizes = [1, 16, 64], strides = [1, 1, 1]} : vector<8x16x64xf32> to vector<1x16x64xf32>
      %193 = vector.shape_cast %192 : vector<1x16x64xf32> to vector<16x64xf32>
      %194 = arith.mulf %191, %193 : vector<16x64xf32>
      %cst_80 = arith.constant dense<0.000000e+00> : vector<64xf32>
      %195 = vector.multi_reduction <add>, %194, %cst_80 [0] : vector<16x64xf32> to vector<64xf32>
      %196 = vector.shape_cast %195 : vector<64xf32> to vector<1x64xf32>
      %197 = vector.extract_strided_slice %112 {offsets = [7, 0, 0], sizes = [1, 16, 64], strides = [1, 1, 1]} : vector<8x16x64xf32> to vector<1x16x64xf32>
      %198 = vector.shape_cast %197 : vector<1x16x64xf32> to vector<16x64xf32>
      %199 = arith.mulf %191, %198 : vector<16x64xf32>
      %200 = vector.extract_strided_slice %114 {offsets = [7, 0, 0], sizes = [1, 16, 64], strides = [1, 1, 1]} : vector<8x16x64xf32> to vector<1x16x64xf32>
      %201 = vector.shape_cast %200 : vector<1x16x64xf32> to vector<16x64xf32>
      %202 = arith.addf %199, %201 : vector<16x64xf32>
      %203 = vector.extract_strided_slice %119 {offsets = [7, 0, 0], sizes = [1, 16, 64], strides = [1, 1, 1]} : vector<8x16x64xf32> to vector<1x16x64xf32>
      %204 = vector.shape_cast %203 : vector<1x16x64xf32> to vector<16x64xf32>
      %205 = arith.mulf %202, %204 : vector<16x64xf32>
      %cst_81 = arith.constant dense<0.000000e+00> : vector<64xf32>
      %206 = vector.multi_reduction <add>, %205, %cst_81 [0] : vector<16x64xf32> to vector<64xf32>
      %207 = vector.shape_cast %206 : vector<64xf32> to vector<1x64xf32>
      %208 = tpu.concatenate %130, %141, %152, %163, %174, %185, %196, %207 in 0 : vector<1x64xf32>, vector<1x64xf32>, vector<1x64xf32>, vector<1x64xf32>, vector<1x64xf32>, vector<1x64xf32>, vector<1x64xf32>, vector<1x64xf32> -> vector<8x64xf32>
      %209 = arith.index_cast %110 : i32 to index
      %c0_82 = arith.constant 0 : index
      %210 = vector.load %arg18[%209, %c0_82] : memref<16x64xf32, #tpu.memory_space<vmem>>, vector<8x64xf32>
      tpu.vector_store %arg18[%209, %c0_82], %208 {strides = array<i32>} : memref<16x64xf32, #tpu.memory_space<vmem>>, vector<8x64xf32>,
      scf.yield %202 : vector<16x64xf32>
    }
    %c2_i32_53 = arith.constant 2 : i32
    %c0_54 = arith.constant 0 : index
    %c0_55 = arith.constant 0 : index
    %88 = vector.load %arg13[%c0_54, %c0_55] : memref<16x64xf32, #tpu.memory_space<vmem>>, vector<16x64xf32>
    tpu.vector_store %arg13[%c0_54, %c0_55], %87 {strides = array<i32>} : memref<16x64xf32, #tpu.memory_space<vmem>>, vector<16x64xf32>,
    %c0_56 = arith.constant 0 : index
    %c0_57 = arith.constant 0 : index
    %89 = vector.load %arg18[%c0_56, %c0_57] : memref<16x64xf32, #tpu.memory_space<vmem>>, vector<16x64xf32>
    %c0_58 = arith.constant 0 : index
    %c0_59 = arith.constant 0 : index
    %90 = vector.load %arg10[%c0_58, %c0_59] : memref<1x64xf32, #tpu.memory_space<vmem>>, vector<1x64xf32>
    %91 = vector.broadcast %90 : vector<1x64xf32> to vector<16x64xf32>
    %92 = arith.mulf %42, %91 : vector<16x64xf32>
    %93 = arith.addf %89, %92 : vector<16x64xf32>
    %cst_60 = arith.constant 0.000000e+00 : f32
    %94 = vector.broadcast %cst_60 : f32 to vector<16x64xf32>
    %95 = arith.subf %94, %9 : vector<16x64xf32>
    %96 = math.exp %95 : vector<16x64xf32>
    %cst_61 = arith.constant 1.000000e+00 : f32
    %97 = vector.broadcast %cst_61 : f32 to vector<16x64xf32>
    %98 = arith.addf %97, %96 : vector<16x64xf32>
    %cst_62 = arith.constant 1.000000e+00 : f32
    %99 = vector.broadcast %cst_62 : f32 to vector<16x64xf32>
    %100 = arith.divf %99, %98 : vector<16x64xf32>
    %101 = arith.mulf %9, %100 : vector<16x64xf32>
    %102 = arith.mulf %93, %101 : vector<16x64xf32>
    %103 = arith.truncf %102 : vector<16x64xf32> to vector<16x64xbf16>
    %c0_63 = arith.constant 0 : index
    %c0_64 = arith.constant 0 : index
    %104 = vector.load %arg11[%c0_63, %c0_64] : memref<64x32xbf16, #tpu.memory_space<vmem>>, vector<64x32xbf16>
    %cst_65 = arith.constant dense<0.000000e+00> : vector<16x32xf32>
    %105 = tpu.matmul %103, %104, %cst_65 {dimension_numbers = #tpu.dot_dimension_numbers<[1], [0], [0], [1], [0, 0, 1, 1], [], []>} : vector<16x64xbf16>, vector<64x32xbf16>, vector<16x32xf32> -> vector<16x32xf32>
    %c0_66 = arith.constant 0 : index
    %c0_67 = arith.constant 0 : index
    %c0_68 = arith.constant 0 : index
    %106 = vector.load %arg12[%c0_66, %c0_67, %c0_68] : memref<1x16x32xf32, #tpu.memory_space<vmem>>, vector<1x16x32xf32>
    %107 = vector.shape_cast %106 : vector<1x16x32xf32> to vector<16x32xf32>
    %108 = vector.shape_cast %105 : vector<16x32xf32> to vector<1x16x32xf32>
    tpu.vector_store %arg12[%c0_66, %c0_67, %c0_68], %108 {strides = array<i32>} : memref<1x16x32xf32, #tpu.memory_space<vmem>>, vector<1x16x32xf32>,
    return
  }
  func.func @transform_0(%arg0: i32, %arg1: i32) -> (i32, i32, i32) {
    %c0_i32 = arith.constant 0 : i32
    %c0_i32_0 = arith.constant 0 : i32
    return %arg0, %arg1, %c0_i32 : i32, i32, i32
  }
  func.func @transform_1(%arg0: i32, %arg1: i32) -> (i32, i32) {
    %c0_i32 = arith.constant 0 : i32
    %c0_i32_0 = arith.constant 0 : i32
    %c0_i32_1 = arith.constant 0 : i32
    return %c0_i32, %c0_i32_0 : i32, i32
  }
  func.func @transform_2(%arg0: i32, %arg1: i32) -> (i32, i32) {
    %c0_i32 = arith.constant 0 : i32
    %c0_i32_0 = arith.constant 0 : i32
    %c0_i32_1 = arith.constant 0 : i32
    return %c0_i32, %c0_i32_0 : i32, i32
  }
  func.func @transform_3(%arg0: i32, %arg1: i32) -> (i32, i32) {
    %c0_i32 = arith.constant 0 : i32
    %c0_i32_0 = arith.constant 0 : i32
    %c0_i32_1 = arith.constant 0 : i32
    return %c0_i32, %c0_i32_0 : i32, i32
  }
  func.func @transform_4(%arg0: i32, %arg1: i32) -> (i32, i32) {
    %c0_i32 = arith.constant 0 : i32
    %c0_i32_0 = arith.constant 0 : i32
    %c0_i32_1 = arith.constant 0 : i32
    return %c0_i32, %c0_i32_0 : i32, i32
  }
  func.func @transform_5(%arg0: i32, %arg1: i32) -> (i32, i32) {
    %c0_i32 = arith.constant 0 : i32
    %c0_i32_0 = arith.constant 0 : i32
    %c0_i32_1 = arith.constant 0 : i32
    return %c0_i32, %c0_i32_0 : i32, i32
  }
  func.func @transform_6(%arg0: i32, %arg1: i32) -> (i32, i32) {
    %c0_i32 = arith.constant 0 : i32
    %c0_i32_0 = arith.constant 0 : i32
    %c0_i32_1 = arith.constant 0 : i32
    return %c0_i32, %c0_i32_0 : i32, i32
  }
  func.func @transform_7(%arg0: i32, %arg1: i32) -> (i32, i32) {
    %c0_i32 = arith.constant 0 : i32
    %c0_i32_0 = arith.constant 0 : i32
    %c0_i32_1 = arith.constant 0 : i32
    return %c0_i32, %c0_i32_0 : i32, i32
  }
  func.func @transform_8(%arg0: i32, %arg1: i32) -> (i32, i32) {
    %c0_i32 = arith.constant 0 : i32
    %c0_i32_0 = arith.constant 0 : i32
    %c0_i32_1 = arith.constant 0 : i32
    return %c0_i32, %c0_i32_0 : i32, i32
  }
  func.func @transform_9(%arg0: i32, %arg1: i32) -> (i32, i32) {
    %c0_i32 = arith.constant 0 : i32
    %c0_i32_0 = arith.constant 0 : i32
    %c0_i32_1 = arith.constant 0 : i32
    return %c0_i32, %c0_i32_0 : i32, i32
  }
  func.func @transform_10(%arg0: i32, %arg1: i32) -> (i32, i32, i32) {
    %c0_i32 = arith.constant 0 : i32
    %c0_i32_0 = arith.constant 0 : i32
    return %arg0, %arg1, %c0_i32 : i32, i32, i32
  }
}

</mosaic_0001>

<bundles_post_ra>
// kernel: tpu_custom_call.1
= control target key start
LH: loop header
LB: loop body
LE: loop exit
PB: predicated region body
PF: predicated region fallthrough
CT: control target
= control target key end

     0   :  { %s2814_s0 = inlined_call_operand.vmem [shape: f32[2,32,32], index: 0, kind: input, shape index: {}]   ;;  %s2815_s1 = inlined_call_operand.vmem [shape: bf16[32,128], index: 1, kind: input, shape index: {}]   ;;  %s2816_s2 = inlined_call_operand.vmem [shape: f32[4,64], index: 2, kind: input, shape index: {}]   ;;  %s2817_s3 = inlined_call_operand.vmem [shape: f32[1,64], index: 3, kind: input, shape index: {}]   ;;  %s2818_s4 = inlined_call_operand.vmem [shape: bf16[64,34], index: 4, kind: input, shape index: {}]   ;;  %s2819_s5 = inlined_call_operand.vmem [shape: f32[2,64], index: 5, kind: input, shape index: {}]   ;;  %s2820_s6 = inlined_call_operand.vmem [shape: f32[1,64], index: 6, kind: input, shape index: {}]   ;;  %s2821_s7 = inlined_call_operand.hbm [shape: f32[16,64], index: 7, kind: input, shape index: {}]   ;;  %s2822_s8 = inlined_call_operand.vmem [shape: f32[1,64], index: 8, kind: input, shape index: {}]   ;;  %s2823_s9 = inlined_call_operand.vmem [shape: bf16[64,32], index: 9, kind: input, shape index: {}]   ;;  %s2824_s10 = inlined_call_operand.hbm [shape: f32[2,32,32], index: 10, kind: output, shape index: {}]  }
   0x1   :  { %2830 = sst [smem:[#allocation18_spill]] %s2821_s7 }
   0x2   :  { %15 = vsyncpa [#allocation9], 0 }
   0x3   :  { %16 = vsyncpa [#allocation10], 0 }
   0x4   :  { %18 = vsyncpa [#allocation10 + $0x1], 0  ;;  %s2230_s13 = smov 0   ;;  %s2232_s14 = smov 0  }
   0x5   :  { %s2234_s15 = smov 0   ;;  %s2236_s16 = smov 0  }
   0x6   :  { %s2238_s17 = smov 0   ;;  %s2240_s18 = smov 0  }
   0x7   :  { %s2242_s19 = smov 0   ;;  %s2244_s20 = smov 0  }
   0x8 LB: > { %2831 = sst [smem:[#allocation14_spill]] %s2145_s18  ;;  %s1690_s21 = sadd.s32 4294967295, %s2153_s20   ;;  %s2153_s20 = sphi %s2244_s20, %s24_s20   ;;  %s2149_s19 = sphi %s2242_s19, %s2852_s19   ;;  %s2145_s18 = sphi %s2240_s18, %s2846_s18   ;;  %s2141_s17 = sphi %s2238_s17, %s2851_s17   ;;  %s2137_s16 = sphi %s2236_s16, %s2845_s16   ;;  %s2133_s15 = sphi %s2234_s15, %s2850_s15   ;;  %s2129_s14 = sphi %s2232_s14, %s2849_s14   ;;  %s2125_s13 = sphi %s2230_s13, %s2848_s13  }
   0x9   : > { %s1691_s22 = sadd.s32 4294967294, %s2153_s20   ;;  %s33_s23 = sadd.s32 1, %s2145_s18 }
   0xa   : > { %s36_s24 = sadd.s32 1, %s2149_s19  ;;  %p34_p0 = scmp.ge.s32.totalorder %s33_s23, 2 }
   0xb   : > { %s262_s25 = sadd.s32 1, %s2133_s15  ;;  %p272_p1 = scmp.ne.s32.totalorder %s2133_s15, %s2129_s14 }
   0xc   : > { %p273_p2 = scmp.eq.s32.totalorder %s1690_s21, 3  ;;  %s2854_s23 = smov (%p34_p0, %s33_s23), 0 }
   0xd   : > { %2832 = sst [smem:[#allocation15_spill]] %s2854_s23  ;;  %s2856_s24 = smov (!%p34_p0, %s36_s24), %s2149_s19 }
   0xe   : > { %s258_s26 = ssub.s32 %s2145_s18, %s2854_s23  ;;  %p2282_p3 = por %p273_p2, %p272_p1 }
   0xf   : > { %p38_p4 = scmp.ge.s32.totalorder %s2856_s24, 2  ;;  %p278_p5 = scmp.ne.s32.totalorder %s2129_s14, %s2125_s13 }
  0x10   : > { %p279_p6 = scmp.eq.s32.totalorder %s1691_s22, 3  ;;  %p1692_p7 = scmp.ge.s32.totalorder %s2153_s20, 1 }
  0x11   : > { %s2858_s24 = smov (%p38_p4, %s2856_s24), 0  ;;  %p286_p9 = scmp.lt.s32.totalorder %s2153_s20, 5 }
  0x12   : > { %2834 = sst [smem:[#allocation16_spill]] %s2858_s24  ;;  %p2291_p8 = por %p279_p6, %p278_p5 }
  0x13   : > { %s257_s29 = ssub.s32 %s2149_s19, %s2858_s24  ;;  %p2298_p10 = pnand %p1692_p7, %p286_p9 }
  0x14   : > { %s2835_s28 = scalar_select %p2291_p8, 1, 0 }
  0x15   : > { %s259_s30 = sor.u32 %s258_s26, %s257_s29  ;;  %p2302_p12 = scmp.eq.s32.totalorder %s1690_s21, 0 }
  0x16   : > { %2836 = sst [smem:[#allocation17_spill]] %s2835_s28  ;;  %p260_p11 = scmp.eq.s32.totalorder %s259_s30, 0 }
  0x17   : > { %p1773_p13 = pneg %p2298_p10  ;;  %s2839_s7 = sld [smem:[#allocation18_spill]] }
  0x18   : > { %s2312_s28 = scalar_select %p260_p11, %s2133_s15, %s262_s25  }
  0x19   : > { %s2167_s26 = smov [#allocation8]   ;;  %p1774_p0 = pnand %p2302_p12, %p1773_p13 }
  0x1a   : > { %s317_s29 = sshll.u32 %s2167_s26, 4  ;;  %s2168_s30 = smov 128   ;;  %s318_s29 = int_to_ptr.vmem [resolvable:$true] %s317_s29 }
  0x1b   : > { %s2169_s21 = smov 8   ;;  %352 = sbr.rel (%p2298_p10) target bundleno = 1124 (0x464), region = 60 }
  0x1d   : > { %s315_s18 = sshll.u32 %s2839_s7, 4  ;;  %s316_s18 = int_to_ptr.hbm [resolvable:$true] %s315_s18 }
  0x1e   : > { %1776 = dma.hbm_to_vmem [thread:$0]  (!%p1774_p0), %s316_s18, 256, %s318_s29, [#allocation9], %s2168_s30, %s2168_s30, %s2169_s21  }
  0x20   : > { %2116 = dma.done.wait (%p2302_p12), [#allocation9], 256  }
  0x21   : > { %2118 = vsyncadd (%p2302_p12), [#allocation9], 4294967040  ;;  %s2829_s23 = sand.u32 1, %s2129_s14   ;;  %s2324_s25 = sshll.u32 %s2137_s16, 1 }
  0x22   : > { %s1697_s18 = sshll.u32 %s2829_s23, 4  ;;  %p396_p1 = scmp.lt.s32.totalorder %s2141_s17, 1 }
  0x23   : > { %p398_p2 = scmp.lt.s32.totalorder %s2324_s25, 3  ;;  %s2335_s24 = scalar_lea.vmem [#allocation11], %s1697_s18 }
  0x24   : > { %s397_s11 = scalar_select %p396_p1, %s2141_s17, 1 }
  0x25   : > { %s399_s22 = scalar_select %p398_p2, %s2324_s25, 3 }
  0x26   : > { %s1699_s26 = sshll.u32 %s397_s11, 2  ;;  %p1701_p4 = scmp.ne.s32.totalorder %s2137_s16, 0 }
  0x27   : > { %s401_s29 = sadd.s32 %s1699_s26, %s399_s22 }
  0x28   : > { %s1700_s12 = sshll.u32 %s401_s29, 3  ;;  %410 = sbr.rel (%p1701_p4) target bundleno = 49 (0x31), region = 68 }
  0x29   : > { %s403_s7 = scalar_lea.vmem %s2814_s0, %s1700_s12 }
  0x2d   : > { %vm411_vm0 = vcmask 523264   ;;  %vm414_vm1 = vcmask 518144   ;;  %v2170_v0 = vmov 0.0  }
  0x2e   : > { %412 = vst.msk [vmem:[#allocation2] sm:$0xff] %vm411_vm0, %v2170_v0 }
  0x2f   : > { %413 = vst.msk [vmem:[#allocation2 + $0x8] sm:$0xff] %vm411_vm0, %v2170_v0 }
  0x30   : > { %415 = vst.msk [vmem:[#allocation3] sm:$0x7] %vm414_vm1, %v2170_v0 }
  0x31 PF: > { %v1757_v1 = vld [vmem:[%s2815_s1 + $0x8] sm:$0xff]  ;;  %v1756_v2 = vld [vmem:[%s2815_s1] sm:$0xff]  ;;  %vm435_vm2 = vcmask 261120   ;;  %v1761_v6 = vld [vmem:[%s2818_s4 + $0x18] sm:$0xff]  ;;  %vm453_vm3 = vcmask 523264   ;;  %vm534_vm4 = vcmask 523269   ;;  %v846_v46 = vlaneseq }
  0x32   : > { %v416_v3 = vld [vmem:[%s403_s7] sm:$0xff]  ;;  %v417_v4 = vld [vmem:[%s403_s7 + $0x8] sm:$0xff]  ;;  %445 = vmatpush.bf16.msra.mxu0 %v1757_v1  ;;  %576 = vmatpush.bf16.msra.mxu1 %v1761_v6  ;;  %v1760_v7 = vld [vmem:[%s2818_s4 + $0x10] sm:$0xff]  ;;  %vm598_vm13 = vcmask 1041408   ;;  %vm591_vm14 = vcmask 15360   ;;  %s2171_s22 = smov 110  }
  0x33   : > { %v418_v5 = vpack.c.bf16 %v417_v4, %v416_v3  ;;  %v1759_v8 = vld [vmem:[%s2818_s4 + $0x8] sm:$0xff]  ;;  %v1758_v9 = vld [vmem:[%s2818_s4] sm:$0xff]  ;;  %v2381_v48 = vshrl.u32 %v846_v46, 7  ;;  %vm1155_vm15 = vcmask 130048   ;;  %s2654_s18 = smov 0  }
  0x34   : > { %v1903_v11 = vld [vmem:[%s2816_s2] ss:$0 sm:$0xff]  ;;  %v1904_v12 = vld [vmem:[%s2816_s2 + $0x1] ss:$0 sm:$0xff]  ;;  %v1905_v13 = vld [vmem:[%s2816_s2 + $0x2] ss:$0 sm:$0xff] }
  0x35   : > { %v1906_v20 = vld [vmem:[%s2816_s2 + $0x3] ss:$0 sm:$0xff]  ;;  %v1907_v26 = vld [vmem:[%s2817_s3] ss:$0 sm:$0xff]  ;;  %v2384_v49 = vadd.s32 2, %v2381_v48 }
  0x36   : > { %446 = vmatpush.bf16.msra.mxu0 %v1756_v2  ;;  %577 = vmatpush.bf16.msra.mxu1 %v1760_v7 }
  0x37   : > { %1884 = vset.pattern.permute.xlu2 %v2384_v49  ;;  %1882 = vset.pattern.permute.xlu1 %v2384_v49 }
  0x38   : > { %1880 = vset.pattern.permute.xlu0 %v2384_v49 }
  0x39   : > { %1710 = vmatmul.msk.bf16.vlgmr.msra.gmra.mxu0 %vm435_vm2, %v418_v5 }
  0x3a   : > { %578 = vmatpush.bf16.msra.mxu1 %v1759_v8 }
  0x3e   : > { %579 = vmatpush.bf16.msra.mxu1 %v1758_v9 }
  0xb6   : > { %v2357_v10 = vpop.f32.mrf.mxu0 }
  0xb7   : > { %454 = vst.msk [vmem:[#allocation3 + $0x3] sm:$0xff] %vm453_vm3, %v2357_v10 }
  0xbe   : > { %v2370_v14 = vpop.f32.mrf.mxu0  ;;  %v456_v15 = vld [vmem:[#allocation3] sm:$0xff] }
  0xbf   : > { %v464_v16 = vld [vmem:[#allocation3 + $0x1] sm:$0xff]  ;;  %455 = vst.msk [vmem:[#allocation3 + $0xb] sm:$0xff] %vm453_vm3, %v2370_v14  ;;  %v460_v18 = vmul.f32 %v1903_v11, %v456_v15 }
  0xc0   : > { %v472_v17 = vld [vmem:[#allocation3 + $0x2] sm:$0xff]  ;;  %v468_v19 = vmul.f32 %v1904_v12, %v464_v16 }
  0xc1   : > { %535 = vst.msk [vmem:[#allocation3 - $0x5] sm:$0xe0] %vm534_vm4, %v2370_v14  ;;  %v480_v21 = vld [vmem:[#allocation3 + $0x3] sm:$0xff]  ;;  %v476_v22 = vmul.f32 %v1905_v13, %v472_v17 }
  0xc2   : > { %v470_v23 = vadd.f32 %v468_v19, %v460_v18  ;;  %v484_v25 = vmul.f32 %v1906_v20, %v480_v21  ;;  %v2407_v18 = vadd.s32 10, %v2381_v48 }
  0xc4   : > { %v478_v24 = vadd.f32 %v476_v22, %v470_v23 }
  0xc6   : > { %v486_v27 = vadd.f32 %v484_v25, %v478_v24  ;;  %v457_v28 = vld [vmem:[#allocation3 + $0x8] sm:$0xff] }
  0xc7   : > { %v465_v29 = vld [vmem:[#allocation3 + $0x9] sm:$0xff]  ;;  %v461_v31 = vmul.f32 %v1903_v11, %v457_v28 }
  0xc8   : > { %v473_v30 = vld [vmem:[#allocation3 + $0xa] sm:$0xff]  ;;  %v469_v32 = vmul.f32 %v1904_v12, %v465_v29  ;;  %v492_v33 = vadd.f32 %v1907_v26, %v486_v27 }
  0xc9   : > { %v481_v34 = vld [vmem:[#allocation3 + $0xb] sm:$0xff]  ;;  %v477_v36 = vmul.f32 %v1905_v13, %v473_v30 }
  0xca   : > { %v471_v35 = vadd.f32 %v469_v32, %v461_v31  ;;  %v494_v37 = vsub.f32 0.0, %v492_v33  ;;  %v485_v39 = vmul.f32 %v1906_v20, %v481_v34  ;;  %v586_v12 = vld [vmem:[%s2819_s5] sm:$0x3] }
  0xcb   : > { %1728 = vmatpush.msk.msra.mxu2 %vm598_vm13, %v586_v12  ;;  %v1908_v32 = vld [vmem:[%s2820_s6] ss:$0 sm:$0xff] }
  0xcc   : > { %v479_v38 = vadd.f32 %v477_v36, %v471_v35  ;;  %v496_v40 = vmul.f32 1.442695, %v494_v37 }
  0xce   : > { %v487_v41 = vadd.f32 %v485_v39, %v479_v38  ;;  %1909 = vpow2.f32 %v496_v40 }
  0xd0   : > { %v493_v42 = vadd.f32 %v1907_v26, %v487_v41 }
  0xd2   : > { %v495_v43 = vsub.f32 0.0, %v493_v42 }
  0xd4   : > { %v1910_v44 = vpop.eup %1909  ;;  %v498_v45 = vmul.f32 1.442695, %v495_v43 }
  0xd5   : > { %v500_v47 = vadd.f32 1.0, %v1910_v44  ;;  %v643_v44 = vld [vmem:[#allocation8] sm:$0xff] }
  0xd6   : > { %1911 = vpow2.f32 %v498_v45  ;;  %v644_v45 = vld [vmem:[#allocation8 + $0x8] sm:$0xff] }
  0xd7   : > { %1913 = vrcp.f32 %v500_v47  ;;  %v513_v59 = vand.u32 2147483648, %v500_v47  ;;  %vm507_vm6 = vweird.f32 %v500_v47  ;;  %v511_v60 = vand.u32 2147483647, %v500_v47 }
  0xd9   : > { %v514_v2 = vor.u32 1.1754944e-38, %v513_v59  ;;  %vm512_vm9 = vcmp.eq.f32.partialorder %v511_v60, 8.507059e+37 }
  0xdc   : > { %v1912_v50 = vpop.eup %1911 }
  0xdd   : > { %v1914_v51 = vpop.eup %1913  ;;  %v501_v52 = vadd.f32 1.0, %v1912_v50 }
  0xde   : > { %v503_v53 = vmul.f32 %v1914_v51, %v500_v47  ;;  %vm508_vm5 = vweird.f32 %v1914_v51 }
  0xdf   : > { %1915 = vrcp.f32 %v501_v52  ;;  %vm509_vm7 = vmor %vm507_vm6, %vm508_vm5  ;;  %v528_v62 = vand.u32 2147483648, %v501_v52  ;;  %v526_v1 = vand.u32 2147483647, %v501_v52  ;;  %vm522_vm10 = vweird.f32 %v501_v52 }
  0xe0   : > { %v504_v54 = vsub.f32 1.0, %v503_v53 }
  0xe1   : > { %v529_v5 = vor.u32 1.1754944e-38, %v528_v62  ;;  %vm527_vm12 = vcmp.eq.f32.partialorder %v526_v1, 8.507059e+37 }
  0xe2   : > { %v505_v55 = vmul.f32 %v1914_v51, %v504_v54 }
  0xe4   : > { %v506_v57 = vadd.f32 %v1914_v51, %v505_v55 }
  0xe5   : > { %v1916_v56 = vpop.eup %1915 }
  0xe6   : > { %v518_v58 = vmul.f32 %v1916_v56, %v501_v52  ;;  %v510_v63 = vsel %vm509_vm7, %v1914_v51, %v506_v57  ;;  %vm523_vm8 = vweird.f32 %v1916_v56  ;;  %v647_v51 = vmul.f32 1.442695, %v644_v45 }
  0xe7   : > { %v515_v4 = vsel %vm512_vm9, %v514_v2, %v510_v63  ;;  %vm524_vm11 = vmor %vm522_vm10, %vm523_vm8 }
  0xe8   : > { %v519_v61 = vsub.f32 1.0, %v518_v58  ;;  %v2389_v8 = vmul.f32 %v515_v4, %v492_v33 }
  0xea   : > { %v520_v0 = vmul.f32 %v1916_v56, %v519_v61 }
  0xec   : > { %v521_v3 = vadd.f32 %v1916_v56, %v520_v0 }
  0xee   : > { %v525_v6 = vsel %vm524_vm11, %v1916_v56, %v521_v3 }
  0xef   : > { %v530_v7 = vsel %vm527_vm12, %v529_v5, %v525_v6 }
  0xf0   : > { %v2391_v9 = vmul.f32 %v530_v7, %v493_v42 }
  0xf2   : > { %v536_v11 = vpack.c.bf16 %v2391_v9, %v2389_v8 }
  0xf4   : > { %1727 = vmatmul.msk.bf16.vlgmr.msra.gmra.mxu1 %vm453_vm3, %v536_v11 }
 0x171   : > { %v2400_v13 = vpop.f32.mrf.mxu1 }
 0x172   : > { %1729 = vmatmul.msk.f32.vlgmr.msra.gmra.mxu2 %vm591_vm14, %v2400_v13  ;;  %v871_v15 = vperm.slane %v2400_v13, 2  ;;  %v858_v16 = vperm.slane %v2400_v13, 1  ;;  %v845_v17 = vperm.slane %v2400_v13, 0  ;;  %v884_v20 = vperm.slane %v2400_v13, 3 }
 0x173   : > { %v897_v21 = vperm.slane %v2400_v13, 4  ;;  %v910_v22 = vperm.slane %v2400_v13, 5  ;;  %v923_v23 = vperm.slane %v2400_v13, 6  ;;  %v936_v24 = vperm.slane %v2400_v13, 7 }
 0x174   : > { %876 = vperm.xlu2 %1884, %v871_v15   ;;  %863 = vperm.xlu1 %1882, %v858_v16  }
 0x175   : > { %850 = vperm.xlu0 %1880, %v845_v17  }
 0x179   : > { %v2409_v19 = vpop.f32.mrf.mxu1 }
 0x17a   : > { %1730 = vmatmul.msk.f32.gmra.mxu2 %vm591_vm14, %v2409_v19  ;;  %v962_v25 = vperm.slane %v2409_v19, 1  ;;  %v949_v26 = vperm.slane %v2409_v19, 0  ;;  %v988_v27 = vperm.slane %v2409_v19, 3  ;;  %v975_v28 = vperm.slane %v2409_v19, 2 }
 0x17b   : > { %v1027_v29 = vperm.slane %v2409_v19, 6  ;;  %v1001_v30 = vperm.slane %v2409_v19, 4  ;;  %v1014_v31 = vperm.slane %v2409_v19, 5  ;;  %v1040_v38 = vperm.slane %v2409_v19, 7 }
 0x17c   : > { %1885 = vset.pattern.permute.xlu2 %v2407_v18  ;;  %1883 = vset.pattern.permute.xlu1 %v2407_v18 }
 0x17d   : > { %1881 = vset.pattern.permute.xlu0 %v2407_v18 }
 0x184   : > { %882 = vperm.xlu2 %1885, %v871_v15   ;;  %869 = vperm.xlu1 %1883, %v858_v16  }
 0x185   : > { %856 = vperm.xlu0 %1881, %v845_v17  }
 0x18c   : > { %895 = vperm.xlu2 %1885, %v884_v20   ;;  %1886 = vset.pattern.permute.xlu1 %v2384_v49 }
 0x18d   : > { %1887 = vset.pattern.permute.xlu0 %v2384_v49 }
 0x194   : > { %1889 = vset.pattern.permute.xlu2 %v2384_v49  ;;  %889 = vperm.xlu1 %1886, %v884_v20  }
 0x195   : > { %902 = vperm.xlu0 %1887, %v897_v21  }
 0x19c   : > { %915 = vperm.xlu2 %1889, %v910_v22   ;;  %1888 = vset.pattern.permute.xlu1 %v2407_v18 }
 0x19d   : > { %1890 = vset.pattern.permute.xlu0 %v2407_v18 }
 0x1a4   : > { %928 = vperm.xlu2 %1889, %v923_v23   ;;  %908 = vperm.xlu1 %1888, %v897_v21  }
 0x1a5   : > { %934 = vperm.xlu0 %1890, %v923_v23  }
 0x1ac   : > { %1892 = vset.pattern.permute.xlu2 %v2407_v18  ;;  %921 = vperm.xlu1 %1888, %v910_v22  }
 0x1ad   : > { %1893 = vset.pattern.permute.xlu0 %v2384_v49 }
 0x1b4   : > { %947 = vperm.xlu2 %1892, %v936_v24   ;;  %1891 = vset.pattern.permute.xlu1 %v2384_v49 }
 0x1b5   : > { %967 = vperm.xlu0 %1893, %v962_v25  }
 0x1bc   : > { %941 = vperm.xlu1 %1891, %v936_v24   ;;  %960 = vperm.xlu2 %1892, %v949_v26  }
 0x1bd   : > { %1896 = vset.pattern.permute.xlu0 %v2407_v18 }
 0x1c4   : > { %1895 = vset.pattern.permute.xlu2 %v2384_v49  ;;  %954 = vperm.xlu1 %1891, %v949_v26  }
 0x1c5   : > { %999 = vperm.xlu0 %1896, %v988_v27  }
 0x1cc   : > { %980 = vperm.xlu2 %1895, %v975_v28   ;;  %1894 = vset.pattern.permute.xlu1 %v2407_v18 }
 0x1cd   : > { %1899 = vset.pattern.permute.xlu0 %v2384_v49 }
 0x1ce   : > { %v2448_v33 = vpop.permute.xlu2 %876 }
 0x1d4   : > { %993 = vperm.xlu2 %1895, %v988_v27   ;;  %973 = vperm.xlu1 %1894, %v962_v25  }
 0x1d5   : > { %1032 = vperm.xlu0 %1899, %v1027_v29  }
 0x1dc   : > { %1898 = vset.pattern.permute.xlu2 %v2407_v18  ;;  %986 = vperm.xlu1 %1894, %v975_v28  }
 0x1dd   : > { %1151 = vrot.lane.b32.xlu0 %v2409_v19, %s2171_s22 }
 0x1de   : > { %1902 = vset.pattern.permute.xlu0 %v2407_v18  ;;  %v2452_v40 = vpop.permute.xlu2 %882 }
 0x1e4   : > { %1012 = vperm.xlu2 %1898, %v1001_v30   ;;  %1897 = vset.pattern.permute.xlu1 %v2384_v49 }
 0x1e6   : > { %v2459_v53 = vpop.permute.xlu2 %895  ;;  %v2463_v62 = vpop.permute.xlu1 %863 }
 0x1ec   : > { %1025 = vperm.xlu2 %1898, %v1014_v31   ;;  %1006 = vperm.xlu1 %1897, %v1001_v30  }
 0x1f4   : > { %1901 = vset.pattern.permute.xlu2 %v2384_v49  ;;  %1019 = vperm.xlu1 %1897, %v1014_v31   ;;  %v645_v49 = vmul.f32 1.442695, %v643_v44 }
 0x1f5   : > { %v619_v34 = vpop.f32.mrf.mxu2 }
 0x1f6   : > { %v620_v35 = vadd.f32 %v1908_v32, %v619_v34  ;;  %v2461_v59 = vpop.permute.xlu2 %915  ;;  %v2476_v27 = vpop.permute.xlu1 %869 }
 0x1f8   : > { %v627_v36 = vand.u32 2147483647, %v620_v35  ;;  %v625_v56 = vmax.f32 %v620_v35, 0.0 }
 0x1fa   : > { %v629_v37 = vsub.f32 0.0, %v627_v36 }
 0x1fc   : > { %v631_v39 = vmul.f32 1.442695, %v629_v37  ;;  %1045 = vperm.xlu2 %1901, %v1040_v38   ;;  %1900 = vset.pattern.permute.xlu1 %v2407_v18 }
 0x1fd   : > { %v622_v41 = vpop.f32.mrf.mxu2 }
 0x1fe   : > { %1917 = vpow2.f32 %v631_v39  ;;  %v2454_v42 = vadd.f32 %v1908_v32, %v622_v41  ;;  %v2478_v28 = vpop.permute.xlu2 %928 }
 0x200   : > { %v628_v43 = vand.u32 2147483647, %v2454_v42 }
 0x202   : > { %v630_v46 = vsub.f32 0.0, %v628_v43 }
 0x204   : > { %v1918_v47 = vpop.eup %1917  ;;  %1149 = vrot.lane.b32.xlu2 %v2400_v13, %s2171_s22  ;;  %1038 = vperm.xlu1 %1900, %v1027_v29   ;;  %v633_v52 = vmul.f32 1.442695, %v630_v46 }
 0x205   : > { %v635_v50 = vadd.f32 1.0, %v1918_v47  ;;  %v626_v47 = vmax.f32 %v2454_v42, 0.0 }
 0x206   : > { %v2494_v42 = vpop.permute.xlu1 %889 }
 0x207   : > { %1919 = vlog2.f32 %v635_v50 }
 0x208   : > { %1921 = vpow2.f32 %v645_v49  ;;  %v2486_v49 = vpop.permute.xlu0 %850 }
 0x209   : > { %1923 = vpow2.f32 %v647_v51 }
 0x20a   : > { %1925 = vpow2.f32 %v633_v52 }
 0x20c   : > { %1051 = vperm.xlu1 %1900, %v1040_v38  }
 0x20d   : > { %v1920_v54 = vpop.eup %1919 }
 0x20e   : > { %v1922_v55 = vpop.eup %1921  ;;  %v638_v57 = vmul.f32 0.6931472, %v1920_v54 }
 0x20f   : > { %v1924_v58 = vpop.eup %1923  ;;  %v2465_v63 = vsub.f32 0.0, %v1922_v55 }
 0x210   : > { %v1926_v60 = vpop.eup %1925  ;;  %v641_v61 = vadd.f32 %v638_v57, %v625_v56  ;;  %v2467_v0 = vsub.f32 0.0, %v1924_v58 }
 0x211   : > { %v636_v6 = vadd.f32 1.0, %v1926_v60 }
 0x212   : > { %v653_v1 = vrot.slane %v641_v61, 1  ;;  %v654_v2 = vrot.slane %v641_v61, 2  ;;  %v655_v3 = vrot.slane %v641_v61, 3  ;;  %v656_v4 = vrot.slane %v641_v61, 4 }
 0x213   : > { %v667_v5 = vperm.slane %v641_v61, 0  ;;  %v657_v12 = vrot.slane %v641_v61, 5  ;;  %v658_v19 = vrot.slane %v641_v61, 6  ;;  %1927 = vlog2.f32 %v636_v6 }
 0x214   : > { %v668_v7 = vperm.slane %v653_v1, 0  ;;  %v669_v11 = vperm.slane %v654_v2, 0  ;;  %v670_v13 = vperm.slane %v655_v3, 0  ;;  %v671_v20 = vperm.slane %v656_v4, 0  ;;  %v2496_v1 = vpop.permute.xlu2 %947 }
 0x215   : > { %v699_v15 = vmul.f32 %v667_v5, %v2465_v63  ;;  %v700_v16 = vmul.f32 %v667_v5, %v2467_v0  ;;  %v659_v23 = vrot.slane %v641_v61, 7  ;;  %v672_v24 = vperm.slane %v657_v12, 0 }
 0x216   : > { %v701_v17 = vmul.f32 %v668_v7, %v2465_v63  ;;  %v702_v18 = vmul.f32 %v668_v7, %v2467_v0  ;;  %v703_v21 = vmul.f32 %v669_v11, %v2465_v63  ;;  %v704_v22 = vmul.f32 %v669_v11, %v2467_v0 }
 0x217   : > { %v705_v25 = vmul.f32 %v670_v13, %v2465_v63  ;;  %v731_v26 = vmul.f32 1.442695, %v699_v15  ;;  %v706_v29 = vmul.f32 %v670_v13, %v2467_v0  ;;  %v733_v30 = vmul.f32 1.442695, %v700_v16 }
 0x218   : > { %v735_v31 = vmul.f32 1.442695, %v701_v17  ;;  %v737_v32 = vmul.f32 1.442695, %v702_v18  ;;  %v673_v34 = vperm.slane %v658_v19, 0  ;;  %v707_v35 = vmul.f32 %v671_v20, %v2465_v63 }
 0x219   : > { %1929 = vpow2.f32 %v731_v26  ;;  %v739_v36 = vmul.f32 1.442695, %v703_v21  ;;  %v708_v37 = vmul.f32 %v671_v20, %v2467_v0  ;;  %v741_v38 = vmul.f32 1.442695, %v704_v22  ;;  %v1928_v39 = vpop.eup %1927 }
 0x21a   : > { %1931 = vpow2.f32 %v733_v30  ;;  %v674_v41 = vperm.slane %v659_v23, 0  ;;  %v709_v43 = vmul.f32 %v672_v24, %v2465_v63  ;;  %v743_v44 = vmul.f32 1.442695, %v705_v25 }
 0x21b   : > { %1933 = vpow2.f32 %v735_v31  ;;  %v710_v45 = vmul.f32 %v672_v24, %v2467_v0  ;;  %v745_v46 = vmul.f32 1.442695, %v706_v29  ;;  %v711_v50 = vmul.f32 %v673_v34, %v2465_v63  ;;  %v2513_v24 = vpop.permute.xlu0 %856 }
 0x21c   : > { %1935 = vpow2.f32 %v737_v32  ;;  %v712_v51 = vmul.f32 %v673_v34, %v2467_v0  ;;  %v747_v52 = vmul.f32 1.442695, %v707_v35  ;;  %v749_v54 = vmul.f32 1.442695, %v708_v37  ;;  %v2522_v37 = vpop.permute.xlu1 %908 }
 0x21d   : > { %1937 = vpow2.f32 %v739_v36  ;;  %v2491_v55 = vmul.f32 %v641_v61, %v2389_v8  ;;  %v640_v56 = vmul.f32 0.6931472, %v1928_v39  ;;  %v713_v58 = vmul.f32 %v674_v41, %v2465_v63 }
 0x21e   : > { %1939 = vpow2.f32 %v741_v38  ;;  %v751_v60 = vmul.f32 1.442695, %v709_v43  ;;  %v714_v3 = vmul.f32 %v674_v41, %v2467_v0  ;;  %v753_v4 = vmul.f32 1.442695, %v710_v45 }
 0x21f   : > { %v1930_v57 = vpop.eup %1929  ;;  %1941 = vpow2.f32 %v743_v44  ;;  %v2500_v5 = vadd.f32 %v640_v56, %v626_v47  ;;  %v755_v6 = vmul.f32 1.442695, %v711_v50  ;;  %v757_v11 = vmul.f32 1.442695, %v712_v51  ;;  %v2531_v51 = vpop.permute.xlu2 %960 }
 0x220   : > { %v1932_v2 = vpop.eup %1931  ;;  %1943 = vpow2.f32 %v745_v46  ;;  %795 = vst.msk [vmem:[#allocation4] sm:$0xff] %vm453_vm3, %v1930_v57  ;;  %v832_v12 = vrot.slane %v2491_v55, 2  ;;  %v759_v16 = vmul.f32 1.442695, %v713_v58  ;;  %v835_v17 = vrot.slane %v2491_v55, 5 }
 0x221   : > { %v1934_v61 = vpop.eup %1933  ;;  %1945 = vpow2.f32 %v747_v52  ;;  %796 = vst.msk [vmem:[#allocation4 + $0x8] sm:$0xff] %vm453_vm3, %v1932_v2  ;;  %v660_v13 = vrot.slane %v2500_v5, 1  ;;  %v661_v18 = vrot.slane %v2500_v5, 2  ;;  %v761_v20 = vmul.f32 1.442695, %v714_v3 }
 0x222   : > { %v1936_v7 = vpop.eup %1935  ;;  %1947 = vpow2.f32 %v749_v54  ;;  %797 = vst.msk [vmem:[#allocation4 + $0x10] sm:$0xff] %vm453_vm3, %v1934_v61  ;;  %v662_v21 = vrot.slane %v2500_v5, 3  ;;  %v831_v23 = vrot.slane %v2491_v55, 1  ;;  %v675_v25 = vperm.slane %v2500_v5, 0 }
 0x223   : > { %v1938_v15 = vpop.eup %1937  ;;  %1949 = vpow2.f32 %v751_v60  ;;  %798 = vst.msk [vmem:[#allocation4 + $0x18] sm:$0xff] %vm453_vm3, %v1936_v7  ;;  %v676_v26 = vperm.slane %v660_v13, 0  ;;  %v1055_v30 = vperm.slane %v832_v12, 0  ;;  %v663_v31 = vrot.slane %v2500_v5, 4 }
 0x224   : > { %v1940_v19 = vpop.eup %1939  ;;  %1951 = vpow2.f32 %v753_v4  ;;  %799 = vst.msk [vmem:[#allocation4 + $0x20] sm:$0xff] %vm453_vm3, %v1938_v15  ;;  %v677_v32 = vperm.slane %v661_v18, 0  ;;  %v2519_v35 = vperm.slane %v835_v17, 0  ;;  %v664_v36 = vrot.slane %v2500_v5, 5  ;;  %v2548_v17 = vpop.permute.xlu0 %902 }
 0x225   : > { %v1942_v22 = vpop.eup %1941  ;;  %1953 = vpow2.f32 %v755_v6  ;;  %800 = vst.msk [vmem:[#allocation4 + $0x28] sm:$0xff] %vm453_vm3, %v1940_v19  ;;  %v678_v39 = vperm.slane %v662_v21, 0  ;;  %v715_v41 = vmul.f32 %v675_v25, %v2465_v63  ;;  %v716_v43 = vmul.f32 %v675_v25, %v2467_v0 }
 0x226   : > { %v1944_v29 = vpop.eup %1943  ;;  %1955 = vpow2.f32 %v757_v11  ;;  %801 = vst.msk [vmem:[#allocation4 + $0x30] sm:$0xff] %vm453_vm3, %v1942_v22  ;;  %v1054_v45 = vperm.slane %v831_v23, 0  ;;  %v1053_v46 = vperm.slane %v2491_v55, 0  ;;  %v717_v47 = vmul.f32 %v676_v26, %v2465_v63 }
 0x227   : > { %v1946_v34 = vpop.eup %1945  ;;  %1957 = vpow2.f32 %v759_v16  ;;  %802 = vst.msk [vmem:[#allocation4 + $0x38] sm:$0xff] %vm453_vm3, %v1944_v29  ;;  %v718_v50 = vmul.f32 %v676_v26, %v2467_v0  ;;  %v1089_v54 = vmul.f32 %v1055_v30, %v2448_v33  ;;  %v665_v56 = vrot.slane %v2500_v5, 6 }
 0x228   : > { %v1948_v38 = vpop.eup %1947  ;;  %1959 = vpow2.f32 %v761_v20  ;;  %803 = vst.msk [vmem:[#allocation4 + $0x40] sm:$0xff] %vm453_vm3, %v1946_v34  ;;  %v679_v57 = vperm.slane %v663_v31, 0  ;;  %v719_v58 = vmul.f32 %v677_v32, %v2465_v63  ;;  %v1090_v2 = vmul.f32 %v1055_v30, %v2452_v40  ;;  %v2557_v30 = vpop.permute.xlu1 %921 }
 0x229   : > { %v1950_v44 = vpop.eup %1949  ;;  %804 = vst.msk [vmem:[#allocation4 + $0x48] sm:$0xff] %vm453_vm3, %v1948_v38  ;;  %v1095_v3 = vmul.f32 %v2519_v35, %v2461_v59  ;;  %v666_v4 = vrot.slane %v2500_v5, 7  ;;  %v720_v61 = vmul.f32 %v677_v32, %v2467_v0  ;;  %v680_v33 = vperm.slane %v664_v36, 0  ;;  %v2562_v34 = vpop.permute.xlu2 %980 }
 0x22a   : > { %v1952_v52 = vpop.eup %1951  ;;  %805 = vst.msk [vmem:[#allocation4 + $0x50] sm:$0xff] %vm453_vm3, %v1950_v44  ;;  %v721_v7 = vmul.f32 %v678_v39, %v2465_v63  ;;  %v763_v11 = vmul.f32 1.442695, %v715_v41  ;;  %v765_v12 = vmul.f32 1.442695, %v716_v43  ;;  %v1087_v40 = vmul.f32 %v1054_v45, %v2463_v62 }
 0x22b   : > { %v1954_v60 = vpop.eup %1953  ;;  %806 = vst.msk [vmem:[#allocation4 + $0x58] sm:$0xff] %vm453_vm3, %v1952_v52  ;;  %v722_v15 = vmul.f32 %v678_v39, %v2467_v0  ;;  %v767_v59 = vmul.f32 1.442695, %v717_v47  ;;  %v769_v16 = vmul.f32 1.442695, %v718_v50  ;;  %v681_v19 = vperm.slane %v665_v56, 0 }
 0x22c   : > { %v1956_v6 = vpop.eup %1955  ;;  %807 = vst.msk [vmem:[#allocation4 + $0x60] sm:$0xff] %vm453_vm3, %v1954_v60  ;;  %v723_v20 = vmul.f32 %v679_v57, %v2465_v63  ;;  %1961 = vpow2.f32 %v763_v11  ;;  %v771_v21 = vmul.f32 1.442695, %v719_v58  ;;  %v1088_v22 = vmul.f32 %v1054_v45, %v2476_v27  ;;  %v2573_v50 = vpop.permute.xlu0 %934 }
 0x22d   : > { %v1958_v13 = vpop.eup %1957  ;;  %808 = vst.msk [vmem:[#allocation4 + $0x68] sm:$0xff] %vm453_vm3, %v1956_v6  ;;  %v724_v62 = vmul.f32 %v679_v57, %v2467_v0  ;;  %1963 = vpow2.f32 %v765_v12  ;;  %v773_v23 = vmul.f32 1.442695, %v720_v61  ;;  %v682_v25 = vperm.slane %v666_v4, 0 }
 0x22e   : > { %v1960_v18 = vpop.eup %1959  ;;  %809 = vst.msk [vmem:[#allocation4 + $0x70] sm:$0xff] %vm453_vm3, %v1958_v13  ;;  %v725_v26 = vmul.f32 %v680_v33, %v2465_v63  ;;  %1965 = vpow2.f32 %v767_v59  ;;  %v775_v29 = vmul.f32 1.442695, %v721_v7  ;;  %v1085_v31 = vmul.f32 %v1053_v46, %v2486_v49 }
 0x22f   : > { %810 = vst.msk [vmem:[#allocation4 + $0x78] sm:$0xff] %vm453_vm3, %v1960_v18  ;;  %v726_v32 = vmul.f32 %v680_v33, %v2467_v0  ;;  %1967 = vpow2.f32 %v769_v16  ;;  %v777_v27 = vmul.f32 1.442695, %v722_v15  ;;  %v1086_v36 = vmul.f32 %v1053_v46, %v2513_v24 }
 0x230   : > { %1121 = vst.msk [vmem:[#allocation5 + $0x20] sm:$0xff] %vm453_vm3, %v1089_v54  ;;  %v727_v38 = vmul.f32 %v681_v19, %v2465_v63  ;;  %1969 = vpow2.f32 %v771_v21  ;;  %v779_v39 = vmul.f32 1.442695, %v723_v20  ;;  %v728_v41 = vmul.f32 %v681_v19, %v2467_v0 }
 0x231   : > { %1122 = vst.msk [vmem:[#allocation5 + $0x28] sm:$0xff] %vm453_vm3, %v1090_v2  ;;  %1971 = vpow2.f32 %v773_v23  ;;  %v781_v49 = vmul.f32 1.442695, %v724_v62  ;;  %v729_v44 = vmul.f32 %v682_v25, %v2465_v63  ;;  %v783_v45 = vmul.f32 1.442695, %v725_v26  ;;  %v2582_v4 = vpop.permute.xlu2 %993 }
 0x232   : > { %1127 = vst.msk [vmem:[#allocation5 + $0x50] sm:$0xff] %vm453_vm3, %v1095_v3  ;;  %v1962_v43 = vpop.eup %1961  ;;  %1973 = vpow2.f32 %v775_v29  ;;  %v730_v24 = vmul.f32 %v682_v25, %v2467_v0  ;;  %v785_v46 = vmul.f32 1.442695, %v726_v32  ;;  %v787_v54 = vmul.f32 1.442695, %v727_v38  ;;  %v2578_v0 = vpop.permute.xlu1 %941 }
 0x233   : > { %1119 = vst.msk [vmem:[#allocation5 + $0x10] sm:$0xff] %vm453_vm3, %v1087_v40  ;;  %v1964_v47 = vpop.eup %1963  ;;  %1975 = vpow2.f32 %v777_v27  ;;  %v789_v57 = vmul.f32 1.442695, %v728_v41  ;;  %v791_v58 = vmul.f32 1.442695, %v729_v44  ;;  %v836_v6 = vrot.slane %v2491_v55, 6 }
 0x234   : > { %1120 = vst.msk [vmem:[#allocation5 + $0x18] sm:$0xff] %vm453_vm3, %v1088_v22  ;;  %v1966_v52 = vpop.eup %1965  ;;  %1977 = vpow2.f32 %v779_v39  ;;  %v793_v2 = vmul.f32 1.442695, %v730_v24  ;;  %v833_v7 = vrot.slane %v2491_v55, 3  ;;  %v968_v12 = vpop.permute.xlu0 %967  ;;  %v834_v40 = vrot.slane %v2491_v55, 4 }
 0x235   : > { %1117 = vst.msk [vmem:[#allocation5] sm:$0xff] %vm453_vm3, %v1085_v31  ;;  %v1968_v56 = vpop.eup %1967  ;;  %1979 = vpow2.f32 %v781_v49  ;;  %v1059_v59 = vperm.slane %v836_v6, 0  ;;  %v837_v16 = vrot.slane %v2491_v55, 7  ;;  %v2598_v62 = vmul.f32 %v2500_v5, %v2391_v9 }
 0x236   : > { %1118 = vst.msk [vmem:[#allocation5 + $0x8] sm:$0xff] %vm453_vm3, %v1086_v36  ;;  %v1970_v63 = vpop.eup %1969  ;;  %1981 = vpow2.f32 %v783_v45  ;;  %v1056_v19 = vperm.slane %v833_v7, 0  ;;  %v1057_v22 = vperm.slane %v834_v40, 0 }
 0x237   : > { %811 = vst.msk [vmem:[#allocation4 + $0x80] sm:$0xff] %vm453_vm3, %v1962_v43  ;;  %v1972_v60 = vpop.eup %1971  ;;  %1983 = vpow2.f32 %v785_v46  ;;  %v1097_v55 = vmul.f32 %v1059_v59, %v2478_v28  ;;  %v1060_v29 = vperm.slane %v837_v16, 0  ;;  %v1061_v36 = vperm.slane %v2598_v62, 0 }
 0x238   : > { %812 = vst.msk [vmem:[#allocation4 + $0x88] sm:$0xff] %vm453_vm3, %v1964_v47  ;;  %v1974_v3 = vpop.eup %1973  ;;  %1985 = vpow2.f32 %v787_v54  ;;  %v1091_v31 = vmul.f32 %v1056_v19, %v2494_v42  ;;  %v1092_v32 = vmul.f32 %v1056_v19, %v2459_v53  ;;  %v1093_v5 = vmul.f32 %v1057_v22, %v2548_v17 }
 0x239   : > { %813 = vst.msk [vmem:[#allocation4 + $0x90] sm:$0xff] %vm453_vm3, %v1966_v52  ;;  %v1976_v61 = vpop.eup %1975  ;;  %1987 = vpow2.f32 %v789_v57  ;;  %v838_v38 = vrot.slane %v2598_v62, 1  ;;  %v1100_v28 = vmul.f32 %v1060_v29, %v2496_v1  ;;  %v839_v39 = vrot.slane %v2598_v62, 2 }
 0x23a   : > { %814 = vst.msk [vmem:[#allocation4 + $0x98] sm:$0xff] %vm453_vm3, %v1968_v56  ;;  %v1978_v33 = vpop.eup %1977  ;;  %1989 = vpow2.f32 %v791_v58  ;;  %v955_v23 = vpop.permute.xlu1 %954  ;;  %v1094_v42 = vmul.f32 %v1057_v22, %v2522_v37  ;;  %v1098_v53 = vmul.f32 %v1059_v59, %v2573_v50  ;;  %v840_v17 = vrot.slane %v2598_v62, 3  ;;  %v1159_v59 = vld [vmem:[#allocation2 + $0x8] sm:$0xff]  }
 0x23b   : > { %815 = vst.msk [vmem:[#allocation4 + $0xa0] sm:$0xff] %vm453_vm3, %v1970_v63  ;;  %v1980_v11 = vpop.eup %1979  ;;  %1991 = vpow2.f32 %v793_v2  ;;  %v1102_v41 = vmul.f32 %v1061_v36, %v2531_v51  ;;  %v1062_v49 = vperm.slane %v838_v38, 0  ;;  %v1096_v1 = vmul.f32 %v2519_v35, %v2557_v30 }
 0x23c   : > { %816 = vst.msk [vmem:[#allocation4 + $0xa8] sm:$0xff] %vm453_vm3, %v1972_v60  ;;  %v1982_v13 = vpop.eup %1981  ;;  %v1000_v27 = vpop.permute.xlu0 %999  ;;  %v1063_v44 = vperm.slane %v839_v39, 0  ;;  %v841_v45 = vrot.slane %v2598_v62, 4  ;;  %v1064_v46 = vperm.slane %v840_v17, 0  ;;  %v843_v50 = vrot.slane %v2598_v62, 6 }
 0x23d   : > { %817 = vst.msk [vmem:[#allocation4 + $0xb0] sm:$0xff] %vm453_vm3, %v1974_v3  ;;  %v1984_v15 = vpop.eup %1983  ;;  %v1103_v37 = vmul.f32 %v1062_v49, %v968_v12  ;;  %v1099_v52 = vmul.f32 %v1060_v29, %v2578_v0  ;;  %v842_v35 = vrot.slane %v2598_v62, 5  ;;  %v844_v0 = vrot.slane %v2598_v62, 7 }
 0x23e   : > { %818 = vst.msk [vmem:[#allocation4 + $0xb8] sm:$0xff] %vm453_vm3, %v1976_v61  ;;  %v1986_v18 = vpop.eup %1985  ;;  %v1013_v25 = vpop.permute.xlu2 %1012  ;;  %v1105_v24 = vmul.f32 %v1063_v44, %v2562_v34  ;;  %v1107_v30 = vmul.f32 %v1064_v46, %v2582_v4  ;;  %v1108_v54 = vmul.f32 %v1064_v46, %v1000_v27  ;;  %v1065_v56 = vperm.slane %v841_v45, 0 }
 0x23f   : > { %819 = vst.msk [vmem:[#allocation4 + $0xc0] sm:$0xff] %vm453_vm3, %v1978_v33  ;;  %v1988_v20 = vpop.eup %1987  ;;  %v1101_v34 = vmul.f32 %v1061_v36, %v955_v23  ;;  %v1067_v57 = vperm.slane %v843_v50, 0  ;;  %v1066_v58 = vperm.slane %v842_v35, 0  ;;  %v1068_v6 = vperm.slane %v844_v0, 0 }
 0x240   : > { %820 = vst.msk [vmem:[#allocation4 + $0xc8] sm:$0xff] %vm453_vm3, %v1980_v11  ;;  %v1990_v21 = vpop.eup %1989  ;;  %v1110_v63 = vmul.f32 %v1065_v56, %v1013_v25 }
 0x241   : > { %821 = vst.msk [vmem:[#allocation4 + $0xd0] sm:$0xff] %vm453_vm3, %v1982_v13  ;;  %v1992_v26 = vpop.eup %1991 }
 0x242   : > { %822 = vst.msk [vmem:[#allocation4 + $0xd8] sm:$0xff] %vm453_vm3, %v1984_v15  ;;  %v1158_v15 = vld [vmem:[#allocation2] sm:$0xff]  }
 0x243   : > { %823 = vst.msk [vmem:[#allocation4 + $0xe0] sm:$0xff] %vm453_vm3, %v1986_v18 }
 0x244   : > { %824 = vst.msk [vmem:[#allocation4 + $0xe8] sm:$0xff] %vm453_vm3, %v1988_v20 }
 0x245   : > { %825 = vst.msk [vmem:[#allocation4 + $0xf0] sm:$0xff] %vm453_vm3, %v1990_v21 }
 0x246   : > { %826 = vst.msk [vmem:[#allocation4 + $0xf8] sm:$0xff] %vm453_vm3, %v1992_v26  ;;  %v974_v43 = vpop.permute.xlu1 %973  ;;  %v1026_v47 = vpop.permute.xlu2 %1025 }
 0x247   : > { %1129 = vst.msk [vmem:[#allocation5 + $0x60] sm:$0xff] %vm453_vm3, %v1097_v55  ;;  %v1033_v51 = vpop.permute.xlu0 %1032  ;;  %v1112_v2 = vmul.f32 %v1066_v58, %v1026_v47  ;;  %v1104_v61 = vmul.f32 %v1062_v49, %v974_v43 }
 0x248   : > { %1123 = vst.msk [vmem:[#allocation5 + $0x30] sm:$0xff] %vm453_vm3, %v1091_v31  ;;  %v1113_v60 = vmul.f32 %v1067_v57, %v1033_v51 }
 0x249   : > { %1124 = vst.msk [vmem:[#allocation5 + $0x38] sm:$0xff] %vm453_vm3, %v1092_v32 }
 0x24a   : > { %1125 = vst.msk [vmem:[#allocation5 + $0x40] sm:$0xff] %vm453_vm3, %v1093_v5 }
 0x24b   : > { %1132 = vst.msk [vmem:[#allocation5 + $0x78] sm:$0xff] %vm453_vm3, %v1100_v28 }
 0x24c   : > { %1126 = vst.msk [vmem:[#allocation5 + $0x48] sm:$0xff] %vm453_vm3, %v1094_v42 }
 0x24d   : > { %1130 = vst.msk [vmem:[#allocation5 + $0x68] sm:$0xff] %vm453_vm3, %v1098_v53 }
 0x24e   : > { %1134 = vst.msk [vmem:[#allocation5 + $0x88] sm:$0xff] %vm453_vm3, %v1102_v41  ;;  %v987_v3 = vpop.permute.xlu1 %986 }
 0x24f   : > { %1128 = vst.msk [vmem:[#allocation5 + $0x58] sm:$0xff] %vm453_vm3, %v1096_v1  ;;  %v1152_v33 = vpop.permute.xlu0 %1151  ;;  %v1106_v7 = vmul.f32 %v1063_v44, %v987_v3 }
 0x250   : > { %1135 = vst.msk [vmem:[#allocation5 + $0x90] sm:$0xff] %vm453_vm3, %v1103_v37 }
 0x251   : > { %1137 = vst.msk [vmem:[#allocation5 + $0xa0] sm:$0xff] %vm453_vm3, %v1105_v24 }
 0x252   : > { %1131 = vst.msk [vmem:[#allocation5 + $0x70] sm:$0xff] %vm453_vm3, %v1099_v52 }
 0x253   : > { %1139 = vst.msk [vmem:[#allocation5 + $0xb0] sm:$0xff] %vm453_vm3, %v1107_v30 }
 0x254   : > { %1140 = vst.msk [vmem:[#allocation5 + $0xb8] sm:$0xff] %vm453_vm3, %v1108_v54 }
 0x255   : > { %1133 = vst.msk [vmem:[#allocation5 + $0x80] sm:$0xff] %vm453_vm3, %v1101_v34 }
 0x256   : > { %v1046_v4 = vpop.permute.xlu2 %1045  ;;  %1142 = vst.msk [vmem:[#allocation5 + $0xc8] sm:$0xff] %vm453_vm3, %v1110_v63 }
 0x257   : > { %1145 = vst.msk [vmem:[#allocation5 + $0xe0] sm:$0xff] %vm453_vm3, %v1113_v60  ;;  %v1115_v11 = vmul.f32 %v1068_v6, %v1046_v4 }
 0x258   : > { %1144 = vst.msk [vmem:[#allocation5 + $0xd8] sm:$0xff] %vm453_vm3, %v1112_v2 }
 0x259   : > { %1136 = vst.msk [vmem:[#allocation5 + $0x98] sm:$0xff] %vm453_vm3, %v1104_v61 }
 0x25a   : > { %1157 = vst.msk [vmem:[#allocation6 + $0x8] sm:$0xff] %vm1155_vm15, %v1152_v33 }
 0x25b   : > { %1138 = vst.msk [vmem:[#allocation5 + $0xa8] sm:$0xff] %vm453_vm3, %v1106_v7 }
 0x25c   : > { %1147 = vst.msk [vmem:[#allocation5 + $0xf0] sm:$0xff] %vm453_vm3, %v1115_v11 }
 0x25e   : > { %v1150_v12 = vpop.permute.xlu2 %1149  ;;  %v1007_v13 = vpop.permute.xlu1 %1006 }
 0x25f   : > { %1156 = vst.msk [vmem:[#allocation6] sm:$0xff] %vm1155_vm15, %v1150_v12  ;;  %v1109_v40 = vmul.f32 %v1065_v56, %v1007_v13 }
 0x261   : > { %1141 = vst.msk [vmem:[#allocation5 + $0xc0] sm:$0xff] %vm453_vm3, %v1109_v40 }
 0x266   : > { %v1020_v16 = vpop.permute.xlu1 %1019 }
 0x267   : > { %v1111_v18 = vmul.f32 %v1066_v58, %v1020_v16 }
 0x269   : > { %1143 = vst.msk [vmem:[#allocation5 + $0xd0] sm:$0xff] %vm453_vm3, %v1111_v18 }
 0x276   : > { %v1039_v19 = vpop.permute.xlu1 %1038 }
 0x277   : > { %v1114_v20 = vmul.f32 %v1067_v57, %v1039_v19 }
 0x279   : > { %1146 = vst.msk [vmem:[#allocation5 + $0xe8] sm:$0xff] %vm453_vm3, %v1114_v20 }
 0x27e   : > { %v1052_v21 = vpop.permute.xlu1 %1051 }
 0x27f   : > { %v1116_v22 = vmul.f32 %v1068_v6, %v1052_v21 }
 0x281   : > { %1148 = vst.msk [vmem:[#allocation5 + $0xf8] sm:$0xff] %vm453_vm3, %v1116_v22 }
 0x282 LB: >> { %1994 = vset.pattern.permute.xlu1 %v2381_v48  ;;  %1993 = vset.pattern.permute.xlu0 %v2381_v48  ;;  %s1731_s29 = sshll.u32 %s2165_s18, 3  ;;  %v1215_v55 = vadd.s32 8, %v2381_v48  ;;  %s1762_s12 = sshll.u32 %s2165_s18, 7  ;;  %vm1430_vm0 = vcmask 1040384   ;;  %vm1433_vm1 = vcmask 1042432   ;;  %vm1435_vm4 = vcmask 1043456   ;;  %s2165_s18 = sphi %s2654_s18, %s1165_s18   ;;  %v2161_v15 = vphi %v1158_v15, %v2842_v15   ;;  %v2157_v59 = vphi %v1159_v59, %v2841_v59  }
 0x283   : >> { %1995 = vset.pattern.permute.xlu2 %v2381_v48  ;;  %s1204_s23 = scalar_lea.vmem [#allocation6], %s1731_s29  ;;  %s2672_s30 = scalar_lea.vmem [#allocation4], %s1762_s12  ;;  %vm1437_vm5 = vcmask 1044480   ;;  %vm1439_vm6 = vcmask 1045504   ;;  %vm1441_vm7 = vcmask 1046528  }
 0x284   : >> { %v1205_v62 = vld [vmem:[%s1204_s23] sm:$0xff]  ;;  %v1172_v28 = vld [vmem:[%s2672_s30 + $0x8] sm:$0xff]  ;;  %s2676_s7 = scalar_lea.vmem [#allocation5], %s1762_s12  ;;  %v1173_v41 = vld [vmem:[%s2672_s30 + $0x10] sm:$0xff]  ;;  %s1443_s21 = scalar_lea.vmem [#allocation7], %s1731_s29 }
 0x285   : >> { %v1219_v23 = vperm.slane %v1205_v62, 1  ;;  %v1206_v25 = vperm.slane %v1205_v62, 0  ;;  %v1232_v26 = vperm.slane %v1205_v62, 2  ;;  %v1258_v29 = vperm.slane %v1205_v62, 4  ;;  %v1171_v36 = vld [vmem:[%s2672_s30] sm:$0xff]  ;;  %v1174_v1 = vld [vmem:[%s2672_s30 + $0x18] sm:$0xff] }
 0x286   : >> { %v1245_v31 = vperm.slane %v1205_v62, 3  ;;  %v1284_v32 = vperm.slane %v1205_v62, 6  ;;  %v1271_v27 = vperm.slane %v1205_v62, 5  ;;  %v1297_v5 = vperm.slane %v1205_v62, 7  ;;  %v1175_v24 = vld [vmem:[%s2672_s30 + $0x20] sm:$0xff]  ;;  %v1176_v52 = vld [vmem:[%s2672_s30 + $0x28] sm:$0xff] }
 0x287   : >> { %v1310_v38 = vmul.f32 %v2161_v15, %v1171_v36  ;;  %v1311_v42 = vmul.f32 %v2157_v59, %v1172_v28  ;;  %v1177_v30 = vld [vmem:[%s2672_s30 + $0x30] sm:$0xff]  ;;  %v1178_v58 = vld [vmem:[%s2672_s30 + $0x38] sm:$0xff]  ;;  %v1179_v33 = vld [vmem:[%s2672_s30 + $0x40] sm:$0xff]  ;;  %s1165_s18 = sadd.s32 1, %s2165_s18  }
 0x288   : >> { %v1188_v39 = vld [vmem:[%s2676_s7] sm:$0xff]  ;;  %v1189_v17 = vld [vmem:[%s2676_s7 + $0x8] sm:$0xff]  ;;  %v1190_v44 = vld [vmem:[%s2676_s7 + $0x10] sm:$0xff]  ;;  %p1162_p5 = scmp.ge.s32.totalorder %s1165_s18, 2  }
 0x289   : >> { %v1312_v53 = vadd.f32 %v1310_v38, %v1188_v39  ;;  %v1313_v49 = vadd.f32 %v1311_v42, %v1189_v17  ;;  %v1191_v47 = vld [vmem:[%s2676_s7 + $0x18] sm:$0xff]  ;;  %v1192_v35 = vld [vmem:[%s2676_s7 + $0x20] sm:$0xff]  ;;  %v1193_v34 = vld [vmem:[%s2676_s7 + $0x28] sm:$0xff]  ;;  %s2172_s26 = smov (%p1162_p5), 64   ;;  %s1752_s11 = sshll.u32 (%p1162_p5), %s2141_s17, 2 }
 0x28a   : >> { %1224 = vperm.xlu1 %1994, %v1219_v23   ;;  %1211 = vperm.xlu0 %1993, %v1206_v25   ;;  %v1194_v2 = vld [vmem:[%s2676_s7 + $0x30] sm:$0xff]  ;;  %v1195_v6 = vld [vmem:[%s2676_s7 + $0x38] sm:$0xff]  ;;  %v1180_v7 = vld [vmem:[%s2672_s30 + $0x48] sm:$0xff]  ;;  %s1571_s22 = sadd.s32 (%p1162_p5), %s1752_s11, %s2324_s25  ;;  %s1574_s23 = sshll.u32 (%p1162_p5), %s2335_s24, 4  ;;  %s1575_s23 = int_to_ptr.vmem [resolvable:$true] %s1574_s23 }
 0x28b   : >> { %1237 = vperm.xlu2 %1995, %v1232_v26   ;;  %v1325_v43 = vmul.f32 %v1312_v53, %v1173_v41  ;;  %v1326_v37 = vmul.f32 %v1313_v49, %v1174_v1  ;;  %v1196_v40 = vld [vmem:[%s2676_s7 + $0x40] sm:$0xff]  ;;  %v1197_v16 = vld [vmem:[%s2676_s7 + $0x48] sm:$0xff]  ;;  %v1181_v21 = vld [vmem:[%s2672_s30 + $0x50] sm:$0xff] }
 0x28c   : >> { %v1182_v22 = vld [vmem:[%s2672_s30 + $0x58] sm:$0xff]  ;;  %v1184_v28 = vld [vmem:[%s2672_s30 + $0x68] sm:$0xff]  ;;  %v1200_v17 = vld [vmem:[%s2676_s7 + $0x60] sm:$0xff] }
 0x28d   : >> { %v1327_v45 = vadd.f32 %v1325_v43, %v1190_v44  ;;  %v1328_v51 = vadd.f32 %v1326_v37, %v1191_v47 }
 0x28f   : >> { %v1340_v50 = vmul.f32 %v1327_v45, %v1175_v24  ;;  %v1341_v54 = vmul.f32 %v1328_v51, %v1176_v52  ;;  %v1201_v24 = vld [vmem:[%s2676_s7 + $0x68] sm:$0xff] }
 0x291   : >> { %v1342_v56 = vadd.f32 %v1340_v50, %v1192_v35  ;;  %v1343_v60 = vadd.f32 %v1341_v54, %v1193_v34 }
 0x292   : >> { %1996 = vset.pattern.permute.xlu1 %v1215_v55  ;;  %1263 = vperm.xlu0 %1993, %v1258_v29  }
 0x293   : >> { %1998 = vset.pattern.permute.xlu2 %v1215_v55  ;;  %v1355_v63 = vmul.f32 %v1342_v56, %v1177_v30  ;;  %v1356_v4 = vmul.f32 %v1343_v60, %v1178_v58 }
 0x295   : >> { %v1357_v61 = vadd.f32 %v1355_v63, %v1194_v2  ;;  %v1358_v11 = vadd.f32 %v1356_v4, %v1195_v6 }
 0x297   : >> { %v1370_v12 = vmul.f32 %v1357_v61, %v1179_v33  ;;  %v1371_v59 = vmul.f32 %v1358_v11, %v1180_v7 }
 0x299   : >> { %v1372_v19 = vadd.f32 %v1370_v12, %v1196_v40  ;;  %v1373_v20 = vadd.f32 %v1371_v59, %v1197_v16  ;;  %v1186_v59 = vld [vmem:[%s2672_s30 + $0x78] sm:$0xff] }
 0x29a   : >> { %1230 = vperm.xlu1 %1996, %v1219_v23   ;;  %1999 = vset.pattern.permute.xlu0 %v1215_v55 }
 0x29b   : >> { %1243 = vperm.xlu2 %1998, %v1232_v26   ;;  %v1385_v62 = vmul.f32 %v1372_v19, %v1181_v21  ;;  %v1386_v26 = vmul.f32 %v1373_v20, %v1182_v22 }
 0x2a2   : >> { %1997 = vset.pattern.permute.xlu1 %v2381_v48  ;;  %1217 = vperm.xlu0 %1999, %v1206_v25   ;;  %v1198_v25 = vld [vmem:[%s2676_s7 + $0x50] sm:$0xff] }
 0x2a3   : >> { %1256 = vperm.xlu2 %1998, %v1245_v31  }
 0x2aa   : >> { %1250 = vperm.xlu1 %1997, %v1245_v31   ;;  %1295 = vperm.xlu0 %1999, %v1284_v32  }
 0x2ab   : >> { %2001 = vset.pattern.permute.xlu2 %v2381_v48 }
 0x2b2   : >> { %2000 = vset.pattern.permute.xlu1 %v1215_v55 }
 0x2b3   : >> { %1276 = vperm.xlu2 %2001, %v1271_v27  }
 0x2ba   : >> { %1269 = vperm.xlu1 %2000, %v1258_v29  }
 0x2bb   : >> { %1289 = vperm.xlu2 %2001, %v1284_v32   ;;  %v1387_v32 = vadd.f32 %v1385_v62, %v1198_v25 }
 0x2c2   : >> { %1282 = vperm.xlu1 %2000, %v1271_v27   ;;  %v1183_v27 = vld [vmem:[%s2672_s30 + $0x60] sm:$0xff] }
 0x2c3   : >> { %2003 = vset.pattern.permute.xlu2 %v1215_v55  ;;  %v1199_v55 = vld [vmem:[%s2676_s7 + $0x58] sm:$0xff]  ;;  %v1400_v42 = vmul.f32 %v1387_v32, %v1183_v27 }
 0x2ca   : >> { %2002 = vset.pattern.permute.xlu1 %v2381_v48 }
 0x2cb   : >> { %1308 = vperm.xlu2 %2003, %v1297_v5  }
 0x2d2   : >> { %1302 = vperm.xlu1 %2002, %v1297_v5   ;;  %v1388_v5 = vadd.f32 %v1386_v26, %v1199_v55 }
 0x2d4   : >> { %v1401_v41 = vmul.f32 %v1388_v5, %v1184_v28 }
 0x2e5   : >> { %v1238_v46 = vpop.permute.xlu2 %1237 }
 0x2e6   : >> { %v1344_v50 = vmul.f32 %v1342_v56, %v1238_v46 }
 0x2f5   : >> { %v1244_v3 = vpop.permute.xlu2 %1243 }
 0x2f6   : >> { %v1345_v52 = vmul.f32 %v1343_v60, %v1244_v3 }
 0x2f8   : >> { %v1347_v46 = vsel %vm453_vm3, %v1345_v52, 0.0 }
 0x2fc   : >> { %v1212_v57 = vpop.permute.xlu0 %1211  ;;  %v1225_v0 = vpop.permute.xlu1 %1224 }
 0x2fd   : >> { %v1257_v18 = vpop.permute.xlu2 %1256  ;;  %v1314_v36 = vmul.f32 %v1312_v53, %v1212_v57  ;;  %v1329_v1 = vmul.f32 %v1327_v45, %v1225_v0  ;;  %v1403_v57 = vadd.f32 %v1401_v41, %v1201_v24  ;;  %v1346_v0 = vsel %vm453_vm3, %v1344_v50, 0.0 }
 0x2fe   : >> { %v1360_v53 = vmul.f32 %v1358_v11, %v1257_v18  ;;  %v1348_v12 = vadd.f32 %v1347_v46, %v1346_v0 }
 0x2ff   : >> { %v1316_v44 = vsel %vm453_vm3, %v1314_v36, 0.0  ;;  %v1331_v63 = vsel %vm453_vm3, %v1329_v1, 0.0  ;;  %v1416_v26 = vmul.f32 %v1403_v57, %v1186_v59  ;;  %v1202_v1 = vld [vmem:[%s2676_s7 + $0x70] sm:$0xff] }
 0x300   : >> { %v1362_v2 = vsel %vm453_vm3, %v1360_v53, 0.0 }
 0x304   : >> { %v1264_v15 = vpop.permute.xlu0 %1263 }
 0x305   : >> { %v1374_v54 = vmul.f32 %v1372_v19, %v1264_v15 }
 0x30c   : >> { %v1231_v13 = vpop.permute.xlu1 %1230 }
 0x30d   : >> { %v1277_v31 = vpop.permute.xlu2 %1276  ;;  %v1330_v39 = vmul.f32 %v1328_v51, %v1231_v13 }
 0x30e   : >> { %v1389_v3 = vmul.f32 %v1387_v32, %v1277_v31  ;;  %v1203_v31 = vld [vmem:[%s2676_s7 + $0x78] sm:$0xff]  ;;  %v1185_v32 = vld [vmem:[%s2672_s30 + $0x70] sm:$0xff]  ;;  %s2843_s30 = sand.u32 (%p1162_p5), 1, %s2129_s14  }
 0x30f   : >> { %v1332_v30 = vsel %vm453_vm3, %v1330_v39, 0.0  ;;  %v2721_v59 = vadd.f32 %v1416_v26, %v1203_v31   ;;  %s1560_s7 = scalar_lea.sflag (%p1162_p5), [#allocation10], %s2843_s30 }
 0x310   : >> { %v1333_v56 = vadd.f32 %v1332_v30, %v1331_v63  ;;  %v1391_v16 = vsel %vm453_vm3, %v1389_v3, 0.0 }
 0x311   : >> { %v2840_v39 = vmov %v2721_v59 }
 0x312   : >> { %v1334_v15 = vrot.slane %v1333_v56, 4  ;;  %1446 = vst.msk [vmem:[#allocation2 + $0x8] sm:$0xff] (%p1162_p5), %vm453_vm3, %v2840_v39 }
 0x314   : >> { %v1218_v29 = vpop.permute.xlu0 %1217  ;;  %v1335_v55 = vadd.f32 %v1334_v15, %v1333_v56 }
 0x315   : >> { %v1315_v38 = vmul.f32 %v1313_v49, %v1218_v29  ;;  %v1402_v49 = vadd.f32 %v1400_v42, %v1200_v17  ;;  %v1290_v34 = vpop.permute.xlu2 %1289 }
 0x316   : >> { %v1336_v17 = vrot.slane %v1335_v55, 2 }
 0x317   : >> { %v1317_v37 = vsel %vm453_vm3, %v1315_v38, 0.0  ;;  %v1404_v4 = vmul.f32 %v1402_v49, %v1290_v34  ;;  %v1415_v42 = vmul.f32 %v1402_v49, %v1185_v32 }
 0x318   : >> { %v1318_v51 = vadd.f32 %v1317_v37, %v1316_v44  ;;  %v1337_v30 = vadd.f32 %v1336_v17, %v1335_v55 }
 0x319   : >> { %v1406_v18 = vsel %vm453_vm3, %v1404_v4, 0.0 }
 0x31a   : >> { %v1319_v6 = vrot.slane %v1318_v51, 4  ;;  %v1338_v0 = vrot.slane %v1337_v30, 1 }
 0x31c   : >> { %v1251_v23 = vpop.permute.xlu1 %1250  ;;  %v1296_v58 = vpop.permute.xlu0 %1295 }
 0x31d   : >> { %v1359_v47 = vmul.f32 %v1357_v61, %v1251_v23  ;;  %v1376_v61 = vsel %vm453_vm3, %v1374_v54, 0.0  ;;  %v1405_v7 = vmul.f32 %v1403_v57, %v1296_v58  ;;  %v1349_v23 = vrot.slane %v1348_v12, 4 }
 0x31f   : >> { %v1361_v45 = vsel %vm453_vm3, %v1359_v47, 0.0  ;;  %v1407_v22 = vsel %vm453_vm3, %v1405_v7, 0.0  ;;  %v1350_v38 = vadd.f32 %v1349_v23, %v1348_v12 }
 0x320   : >> { %v1363_v33 = vadd.f32 %v1362_v2, %v1361_v45  ;;  %v1408_v27 = vadd.f32 %v1407_v22, %v1406_v18 }
 0x321   : >> { %v1351_v24 = vrot.slane %v1350_v38, 2 }
 0x322   : >> { %v1364_v21 = vrot.slane %v1363_v33, 4  ;;  %v1409_v44 = vrot.slane %v1408_v27, 4 }
 0x323   : >> { %v1352_v63 = vadd.f32 %v1351_v24, %v1350_v38 }
 0x324   : >> { %v1365_v36 = vadd.f32 %v1364_v21, %v1363_v33  ;;  %v1410_v54 = vadd.f32 %v1409_v44, %v1408_v27  ;;  %v1339_v33 = vadd.f32 %v1338_v0, %v1337_v30  ;;  %v1457_v27 = vsub.f32 (%p1162_p5), 0.0, %v2357_v10 }
 0x326   : >> { %v1366_v47 = vrot.slane %v1365_v36, 2  ;;  %v1411_v56 = vrot.slane %v1410_v54, 2 }
 0x328   : >> { %v1367_v34 = vadd.f32 %v1366_v47, %v1365_v36  ;;  %v1412_v12 = vadd.f32 %v1411_v56, %v1410_v54  ;;  %v1459_v36 = vmul.f32 (%p1162_p5), 1.442695, %v1457_v27  ;;  %v1765_v56 = vld [vmem:[%s2823_s9 + $0x10] sm:$0xff] (%p1162_p5) }
 0x32a   : >> { %v1368_v3 = vrot.slane %v1367_v34, 1  ;;  %v1413_v21 = vrot.slane %v1412_v12, 1  ;;  %2005 = vpow2.f32 (%p1162_p5), %v1459_v36 }
 0x32c   : >> { %v1270_v43 = vpop.permute.xlu1 %1269  ;;  %v1414_v55 = vadd.f32 %v1413_v21, %v1412_v12 }
 0x32d   : >> { %v1375_v35 = vmul.f32 %v1373_v20, %v1270_v43  ;;  %v1320_v20 = vadd.f32 %v1319_v6, %v1318_v51  ;;  %v1309_v43 = vpop.permute.xlu2 %1308 }
 0x32e   : >> { %v1420_v52 = vmul.f32 %v2840_v39, %v1309_v43 }
 0x32f   : >> { %v1377_v60 = vsel %vm453_vm3, %v1375_v35, 0.0  ;;  %v1417_v35 = vadd.f32 %v1415_v42, %v1202_v1  }
 0x330   : >> { %v1378_v13 = vadd.f32 %v1377_v60, %v1376_v61  ;;  %v1422_v45 = vsel %vm453_vm3, %v1420_v52, 0.0  ;;  %v1353_v61 = vrot.slane %v1352_v63, 1  ;;  %v2006_v42 = vpop.eup (%p1162_p5), %2005 }
 0x331   : > { %1445 = vst.msk [vmem:[#allocation2] sm:$0xff] (%p1162_p5), %vm453_vm3, %v1417_v35  ;;  %v1463_v48 = vadd.f32 (%p1162_p5), 1.0, %v2006_v42 }
 0x332   : >> { %v1379_v25 = vrot.slane %v1378_v13, 4  ;;  %v1354_v59 = vadd.f32 %v1353_v61, %v1352_v63 }
 0x333   : > { %vm1470_vm8 = vweird.f32 (%p1162_p5), %v1463_v48  ;;  %v1474_v24 = vand.u32 (%p1162_p5), 2147483647, %v1463_v48 }
 0x334   : >> { %v1283_v11 = vpop.permute.xlu1 %1282  ;;  %v1380_v28 = vadd.f32 %v1379_v25, %v1378_v13 }
 0x335   : >> { %v1390_v40 = vmul.f32 %v1388_v5, %v1283_v11  ;;  %v1321_v5 = vrot.slane %v1320_v20, 2 }
 0x336   : >> { %v1381_v50 = vrot.slane %v1380_v28, 2 }
 0x337   : >> { %v1392_v19 = vsel %vm453_vm3, %v1390_v40, 0.0  ;;  %v1322_v37 = vadd.f32 %v1321_v5, %v1320_v20  ;;  %v1369_v40 = vadd.f32 %v1368_v3, %v1367_v34  ;;  %v1458_v5 = vsub.f32 (%p1162_p5), 0.0, %v2370_v14 }
 0x338   : >> { %v1393_v62 = vadd.f32 %v1392_v19, %v1391_v16  ;;  %v1382_v49 = vadd.f32 %v1381_v50, %v1380_v28  ;;  %v1766_v28 = vld [vmem:[%s2823_s9 + $0x18] sm:$0xff] (%p1162_p5) }
 0x339   : >> { %v1323_v51 = vrot.slane %v1322_v37, 1  ;;  %v1461_v38 = vmul.f32 (%p1162_p5), 1.442695, %v1458_v5  ;;  %1547 = vmatpush.bf16.msra.mxu3 (%p1162_p5), %v1766_v28 }
 0x33a   : >> { %v1394_v29 = vrot.slane %v1393_v62, 4  ;;  %v1383_v6 = vrot.slane %v1382_v49, 1 }
 0x33b   : >> { %v1324_v2 = vadd.f32 %v1323_v51, %v1322_v37  ;;  %2007 = vpow2.f32 (%p1162_p5), %v1461_v38  ;;  %v1476_v37 = vand.u32 (%p1162_p5), 2147483648, %v1463_v48 }
 0x33c   : >> { %v1395_v41 = vadd.f32 %v1394_v29, %v1393_v62  ;;  %v1384_v16 = vadd.f32 %v1383_v6, %v1382_v49  ;;  %2009 = vrcp.f32 (%p1162_p5), %v1463_v48 }
 0x33d   : >> { %v1431_v13 = vsel %vm1430_vm0, %v1324_v2, %v1339_v33  ;;  %1548 = vmatpush.bf16.msra.mxu3 (%p1162_p5), %v1765_v56 }
 0x33e   : >> { %v1396_v53 = vrot.slane %v1395_v41, 2  ;;  %v1432_v20 = vsel %vm598_vm13, %v1431_v13, %v1354_v59  ;;  %v2841_v59 = vmov %v2840_v39  ;;  %vm1475_vm13 = vcmp.eq.f32.partialorder (%p1162_p5), %v1474_v24, 8.507059e+37 }
 0x33f   : >> { %v1434_v22 = vsel %vm1433_vm1, %v1432_v20, %v1369_v40 }
 0x340   : >> { %v1397_v46 = vadd.f32 %v1396_v53, %v1395_v41  ;;  %v1436_v23 = vsel %vm1435_vm4, %v1434_v22, %v1384_v16 }
 0x341   : > { %v2008_v17 = vpop.eup (%p1162_p5), %2007 }
 0x342   : >> { %v1398_v7 = vrot.slane %v1397_v46, 1  ;;  %v1464_v41 = vadd.f32 (%p1162_p5), 1.0, %v2008_v17  ;;  %v2010_v43 = vpop.eup (%p1162_p5), %2009 }
 0x343   : > { %v1466_v44 = vmul.f32 (%p1162_p5), %v2010_v43, %v1463_v48  ;;  %vm1471_vm9 = vweird.f32 (%p1162_p5), %v2010_v43 }
 0x344   : >> { %v1303_v57 = vpop.permute.xlu1 %1302  ;;  %v1399_v18 = vadd.f32 %v1398_v7, %v1397_v46  ;;  %2011 = vrcp.f32 (%p1162_p5), %v1464_v41  ;;  %vm1485_vm10 = vweird.f32 (%p1162_p5), %v1464_v41  ;;  %vm1472_vm12 = vmor (%p1162_p5), %vm1470_vm8, %vm1471_vm9  ;;  %v1491_v53 = vand.u32 (%p1162_p5), 2147483648, %v1464_v41 }
 0x345   : >> { %v1419_v58 = vmul.f32 %v1417_v35, %v1303_v57  ;;  %v1467_v47 = vsub.f32 (%p1162_p5), 1.0, %v1466_v44  ;;  %v1489_v51 = vand.u32 (%p1162_p5), 2147483647, %v1464_v41 }
 0x346   : >> { %v1438_v25 = vsel %vm1437_vm5, %v1436_v23, %v1399_v18  ;;  %v1492_v49 = vor.u32 (%p1162_p5), 1.1754944e-38, %v1491_v53 }
 0x347   : >> { %v1421_v60 = vsel %vm453_vm3, %v1419_v58, 0.0  ;;  %v1440_v31 = vsel %vm1439_vm6, %v1438_v25, %v1414_v55  ;;  %v1468_v52 = vmul.f32 (%p1162_p5), %v2010_v43, %v1467_v47  ;;  %vm1490_vm15 = vcmp.eq.f32.partialorder (%p1162_p5), %v1489_v51, 8.507059e+37 }
 0x348   : >> { %v1423_v4 = vadd.f32 %v1422_v45, %v1421_v60  ;;  %v1764_v60 = vld [vmem:[%s2823_s9 + $0x8] sm:$0xff] (%p1162_p5) }
 0x349   : > { %v1469_v54 = vadd.f32 (%p1162_p5), %v2010_v43, %v1468_v52  ;;  %1549 = vmatpush.bf16.msra.mxu3 (%p1162_p5), %v1764_v60 }
 0x34a   : >> { %v1424_v11 = vrot.slane %v1423_v4, 4  ;;  %v2012_v1 = vpop.eup (%p1162_p5), %2011 }
 0x34b   : > { %v1481_v39 = vmul.f32 (%p1162_p5), %v2012_v1, %v1464_v41  ;;  %vm1486_vm11 = vweird.f32 (%p1162_p5), %v2012_v1  ;;  %v1473_v57 = vsel (%p1162_p5), %vm1472_vm12, %v2010_v43, %v1469_v54 }
 0x34c   : >> { %v1425_v15 = vadd.f32 %v1424_v11, %v1423_v4  ;;  %vm1487_vm14 = vmor (%p1162_p5), %vm1485_vm10, %vm1486_vm11 }
 0x34d   : > { %v1482_v50 = vsub.f32 (%p1162_p5), 1.0, %v1481_v39 }
 0x34e   : >> { %v1426_v19 = vrot.slane %v1425_v15, 2 }
 0x34f   : > { %v1483_v30 = vmul.f32 (%p1162_p5), %v2012_v1, %v1482_v50 }
 0x350   : >> { %v1427_v62 = vadd.f32 %v1426_v19, %v1425_v15  ;;  %v2842_v15 = vmov %v1417_v35  ;;  %v1477_v35 = vor.u32 (%p1162_p5), 1.1754944e-38, %v1476_v37 }
 0x351   : > { %v1484_v34 = vadd.f32 (%p1162_p5), %v2012_v1, %v1483_v30 }
 0x352   : >> { %v1428_v26 = vrot.slane %v1427_v62, 1  ;;  %v1478_v63 = vsel (%p1162_p5), %vm1475_vm13, %v1477_v35, %v1473_v57 }
 0x353   : > { %1164 = sbr.rel (!%p1162_p5) target bundleno = 642 (0x282), region = 115  ;;  %v1495_v45 = vmul.f32 (%p1162_p5), %v1478_v63, %v2357_v10  ;;  %v1488_v58 = vsel (%p1162_p5), %vm1487_vm14, %v2012_v1, %v1484_v34  ;;  %v1763_v10 = vld [vmem:[%s2823_s9] sm:$0xff] (%p1162_p5) }
 0x354   : >> { %v1429_v29 = vadd.f32 %v1428_v26, %v1427_v62  ;;  %v1493_v0 = vsel (%p1162_p5), %vm1490_vm15, %v1492_v49, %v1488_v58  ;;  %1550 = vmatpush.bf16.msra.mxu3 (%p1162_p5), %v1763_v10 }
 0x355   : > { %1499 = vrot.lane.b32.xlu0 (%p1162_p5), %v1495_v45, %s2172_s26  ;;  %v1496_v46 = vmul.f32 (%p1162_p5), %v1493_v0, %v2370_v14  ;;  %v2004_v14 = vld [vmem:[%s2822_s8] ss:$0 sm:$0xff] (%p1162_p5) }
 0x356   : >> { %v1442_v32 = vsel %vm1441_vm7, %v1440_v31, %v1429_v29  ;;  %v1453_v3 = vmul.f32 (%p1162_p5), %v2004_v14, %v2389_v8  ;;  %v1454_v4 = vmul.f32 (%p1162_p5), %v2004_v14, %v2391_v9 }
 0x357   : >> { %1444 = vst.msk [vmem:[%s1443_s21] sm:$0xff] %vm453_vm3, %v1442_v32 }
 0x35d   : > { %1501 = vrot.lane.b32.xlu0 %v1496_v46, %s2172_s26  ;;  %s1753_s26 = sshll.u32 %s1571_s22, 3  ;;  %s2063_s22 = scalar_lea.hbm %s2824_s10, 64 }
 0x35e   : > { %v1447_v61 = vld [vmem:[#allocation7] sm:$0xff]  ;;  %v1448_v6 = vld [vmem:[#allocation7 + $0x8] sm:$0xff]  ;;  %s1573_s29 = scalar_lea.hbm %s2824_s10, %s1753_s26 }
 0x35f   : > { %v1455_v33 = vadd.f32 %v1453_v3, %v1447_v61  ;;  %v1456_v7 = vadd.f32 %v1454_v4, %v1448_v6  ;;  %s1576_s12 = sshll.u32 %s1573_s29, 4  ;;  %s1577_s12 = int_to_ptr.hbm [resolvable:$true] %s1576_s12 }
 0x360   : > { %s2057_s17 = sshra.s32 %s1577_s12, 4  ;;  %s2058_s17 = int_to_ptr.hbm [resolvable:$true] %s2057_s17 }
 0x361   : > { %s2059_s25 = scalar_lea.hbm %s2058_s17, 16  ;;  %p2064_p10 = scmp.lt.s32.totalorder %s2058_s17, %s2824_s10 }
 0x362   : > { %p2060_p6 = scmp.ne.s32.totalorder %s2058_s17, %s2059_s25  ;;  %p2065_p11 = scmp.lt.s32.totalorder %s2063_s22, %s2059_s25 }
 0x364   : > { %p2061_p7 = pnand %p2060_p6, %p2282_p3  ;;  %p2066_p12 = por %p2065_p11, %p2064_p10 }
 0x366   : > { %p2062_p9 = pneg %p2061_p7 }
 0x368   : > { %p2067_p13 = pnand %p2066_p12, %p2062_p9 }
 0x3c7   : > { %v1500_v2 = vpop.permute.xlu0 %1499 }
 0x3c8   : > { %v1505_v12 = vmul.f32 %v1500_v2, %v1455_v33 }
 0x3cf   : > { %v1502_v11 = vpop.permute.xlu0 %1501 }
 0x3d0   : > { %v1506_v13 = vmul.f32 %v1502_v11, %v1456_v7 }
 0x3d2   : > { %v1507_v40 = vpack.c.bf16 %v1506_v13, %v1505_v12 }
 0x3d4   : > { %1749 = vmatmul.msk.bf16.vlgmr.msra.gmra.mxu3 %vm453_vm3, %v1507_v40 }
 0x457   : > { %v1552_v8 = vpop.f32.mrf.mxu3 }
 0x458   : > { %1557 = vst.msk [vmem:[%s2335_s24] sm:$0xff] %vm435_vm2, %v1552_v8 }
 0x45f   : > { %v1554_v9 = vpop.f32.mrf.mxu3 }
 0x460   : > { %1558 = vst.msk [vmem:[%s2335_s24 + $0x8] sm:$0xff] %vm435_vm2, %v1554_v9 }
 0x461   : > { %2070 = shalt.err (!%p2067_p13)
}
 0x462   : > { %s2173_s24 = smov 128   ;;  %s2174_s18 = smov 8  }
 0x463   : > { %1771 = dma.vmem_to_hbm [thread:$0]  (%p2282_p3), %s1575_s23, 256, %s1577_s12, %s1560_s7, %s2173_s24, %s2173_s24, %s2174_s18  }
 0x464 PF: > { %p1783_p0 = scmp.ge.s32.totalorder %s2153_s20, 2  ;;  %s1591_s30 = sand.u32 1, %s2125_s13  }
 0x465   : > { %s1592_s21 = scalar_lea.sflag [#allocation10], %s1591_s30 }
 0x466   : > { %p1778_p1 = pnand %p1783_p0, %p2291_p8 }
 0x468   : > { %p1779_p2 = pneg %p1778_p1 }
 0x46a   : > { %2120 = dma.done.wait (%p1779_p2), %s1592_s21, 256  }
 0x46b   : > { %2122 = vsyncadd (%p1779_p2), %s1592_s21, 4294967040  ;;  %s24_s20 = sadd.s32 1, %s2153_s20   ;;  %s2845_s16 = sld [smem:[#allocation14_spill]] }
 0x46c   : > { %p21_p4 = scmp.ge.s32.totalorder %s24_s20, 6   ;;  %s2846_s18 = sld [smem:[#allocation15_spill]] }
 0x46d   : > { %s2847_s27 = sld [smem:[#allocation16_spill]]  ;;  %s2848_s13 = smov %s2129_s14 }
 0x46e   : > { %s2849_s14 = smov %s2133_s15  ;;  %s2850_s15 = smov %s2312_s28 }
 0x46f   : > { %s2851_s17 = smov %s2149_s19  ;;  %23 = sbr.rel (!%p21_p4) target bundleno = 8 (0x8), region = 126 }
 0x473   : > { %s2852_s19 = smov %s2847_s27 }
 0x474   :  { %1598 = vsyncpa [#allocation9], 1 }
 0x475   :  { %1600 = vsyncpa [#allocation9 + $0x1], 1 }
 0x476   :  { %1601 = vsyncpa [#allocation10], 1 }
 0x477   :  { %1603 = vsyncpa [#allocation10 + $0x1], 1 }

// kernel: tpu_custom_call.1
= control target key start
LH: loop header
LB: loop body
LE: loop exit
PB: predicated region body
PF: predicated region fallthrough
CT: control target
= control target key end

     0   :  { %s2814_s0 = inlined_call_operand.vmem [shape: f32[2,32,32], index: 0, kind: input, shape index: {}]   ;;  %s2815_s1 = inlined_call_operand.vmem [shape: bf16[32,128], index: 1, kind: input, shape index: {}]   ;;  %s2816_s2 = inlined_call_operand.vmem [shape: f32[4,64], index: 2, kind: input, shape index: {}]   ;;  %s2817_s3 = inlined_call_operand.vmem [shape: f32[1,64], index: 3, kind: input, shape index: {}]   ;;  %s2818_s4 = inlined_call_operand.vmem [shape: bf16[64,34], index: 4, kind: input, shape index: {}]   ;;  %s2819_s5 = inlined_call_operand.vmem [shape: f32[2,64], index: 5, kind: input, shape index: {}]   ;;  %s2820_s6 = inlined_call_operand.vmem [shape: f32[1,64], index: 6, kind: input, shape index: {}]   ;;  %s2821_s7 = inlined_call_operand.hbm [shape: f32[16,64], index: 7, kind: input, shape index: {}]   ;;  %s2822_s8 = inlined_call_operand.vmem [shape: f32[1,64], index: 8, kind: input, shape index: {}]   ;;  %s2823_s9 = inlined_call_operand.vmem [shape: bf16[64,32], index: 9, kind: input, shape index: {}]   ;;  %s2824_s10 = inlined_call_operand.hbm [shape: f32[2,32,32], index: 10, kind: output, shape index: {}]  }
   0x1   :  { %2830 = sst [smem:[#allocation18_spill]] %s2821_s7 }
   0x2   :  { %15 = vsyncpa [#allocation9], 0 }
   0x3   :  { %16 = vsyncpa [#allocation10], 0 }
   0x4   :  { %18 = vsyncpa [#allocation10 + $0x1], 0  ;;  %s2230_s13 = smov 0   ;;  %s2232_s14 = smov 0  }
   0x5   :  { %s2234_s15 = smov 0   ;;  %s2236_s16 = smov 0  }
   0x6   :  { %s2238_s17 = smov 0   ;;  %s2240_s18 = smov 0  }
   0x7   :  { %s2242_s19 = smov 0   ;;  %s2244_s20 = smov 0  }
   0x8 LB: > { %2831 = sst [smem:[#allocation14_spill]] %s2145_s18  ;;  %s1690_s21 = sadd.s32 4294967295, %s2153_s20   ;;  %s2153_s20 = sphi %s2244_s20, %s24_s20   ;;  %s2149_s19 = sphi %s2242_s19, %s2852_s19   ;;  %s2145_s18 = sphi %s2240_s18, %s2846_s18   ;;  %s2141_s17 = sphi %s2238_s17, %s2851_s17   ;;  %s2137_s16 = sphi %s2236_s16, %s2845_s16   ;;  %s2133_s15 = sphi %s2234_s15, %s2850_s15   ;;  %s2129_s14 = sphi %s2232_s14, %s2849_s14   ;;  %s2125_s13 = sphi %s2230_s13, %s2848_s13  }
   0x9   : > { %s1691_s22 = sadd.s32 4294967294, %s2153_s20   ;;  %s33_s23 = sadd.s32 1, %s2145_s18 }
   0xa   : > { %s36_s24 = sadd.s32 1, %s2149_s19  ;;  %p34_p0 = scmp.ge.s32.totalorder %s33_s23, 2 }
   0xb   : > { %s262_s25 = sadd.s32 1, %s2133_s15  ;;  %p272_p1 = scmp.ne.s32.totalorder %s2133_s15, %s2129_s14 }
   0xc   : > { %p273_p2 = scmp.eq.s32.totalorder %s1690_s21, 3  ;;  %s2854_s23 = smov (%p34_p0, %s33_s23), 0 }
   0xd   : > { %2832 = sst [smem:[#allocation15_spill]] %s2854_s23  ;;  %s2856_s24 = smov (!%p34_p0, %s36_s24), %s2149_s19 }
   0xe   : > { %s258_s26 = ssub.s32 %s2145_s18, %s2854_s23  ;;  %p2282_p3 = por %p273_p2, %p272_p1 }
   0xf   : > { %p38_p4 = scmp.ge.s32.totalorder %s2856_s24, 2  ;;  %p278_p5 = scmp.ne.s32.totalorder %s2129_s14, %s2125_s13 }
  0x10   : > { %p279_p6 = scmp.eq.s32.totalorder %s1691_s22, 3  ;;  %p1692_p7 = scmp.ge.s32.totalorder %s2153_s20, 1 }
  0x11   : > { %s2858_s24 = smov (%p38_p4, %s2856_s24), 0  ;;  %p286_p9 = scmp.lt.s32.totalorder %s2153_s20, 5 }
  0x12   : > { %2834 = sst [smem:[#allocation16_spill]] %s2858_s24  ;;  %p2291_p8 = por %p279_p6, %p278_p5 }
  0x13   : > { %s257_s29 = ssub.s32 %s2149_s19, %s2858_s24  ;;  %p2298_p10 = pnand %p1692_p7, %p286_p9 }
  0x14   : > { %s2835_s28 = scalar_select %p2291_p8, 1, 0 }
  0x15   : > { %s259_s30 = sor.u32 %s258_s26, %s257_s29  ;;  %p2302_p12 = scmp.eq.s32.totalorder %s1690_s21, 0 }
  0x16   : > { %2836 = sst [smem:[#allocation17_spill]] %s2835_s28  ;;  %p260_p11 = scmp.eq.s32.totalorder %s259_s30, 0 }
  0x17   : > { %p1773_p13 = pneg %p2298_p10  ;;  %s2839_s7 = sld [smem:[#allocation18_spill]] }
  0x18   : > { %s2312_s28 = scalar_select %p260_p11, %s2133_s15, %s262_s25  }
  0x19   : > { %s2167_s26 = smov [#allocation8]   ;;  %p1774_p0 = pnand %p2302_p12, %p1773_p13 }
  0x1a   : > { %s317_s29 = sshll.u32 %s2167_s26, 4  ;;  %s2168_s30 = smov 128   ;;  %s318_s29 = int_to_ptr.vmem [resolvable:$true] %s317_s29 }
  0x1b   : > { %s2169_s21 = smov 8   ;;  %352 = sbr.rel (%p2298_p10) target bundleno = 1124 (0x464), region = 60 }
  0x1d   : > { %s315_s18 = sshll.u32 %s2839_s7, 4  ;;  %s316_s18 = int_to_ptr.hbm [resolvable:$true] %s315_s18 }
  0x1e   : > { %1776 = dma.hbm_to_vmem [thread:$0]  (!%p1774_p0), %s316_s18, 256, %s318_s29, [#allocation9], %s2168_s30, %s2168_s30, %s2169_s21  }
  0x20   : > { %2116 = dma.done.wait (%p2302_p12), [#allocation9], 256  }
  0x21   : > { %2118 = vsyncadd (%p2302_p12), [#allocation9], 4294967040  ;;  %s2829_s23 = sand.u32 1, %s2129_s14   ;;  %s2324_s25 = sshll.u32 %s2137_s16, 1 }
  0x22   : > { %s1697_s18 = sshll.u32 %s2829_s23, 4  ;;  %p396_p1 = scmp.lt.s32.totalorder %s2141_s17, 1 }
  0x23   : > { %p398_p2 = scmp.lt.s32.totalorder %s2324_s25, 3  ;;  %s2335_s24 = scalar_lea.vmem [#allocation11], %s1697_s18 }
  0x24   : > { %s397_s11 = scalar_select %p396_p1, %s2141_s17, 1 }
  0x25   : > { %s399_s22 = scalar_select %p398_p2, %s2324_s25, 3 }
  0x26   : > { %s1699_s26 = sshll.u32 %s397_s11, 2  ;;  %p1701_p4 = scmp.ne.s32.totalorder %s2137_s16, 0 }
  0x27   : > { %s401_s29 = sadd.s32 %s1699_s26, %s399_s22 }
  0x28   : > { %s1700_s12 = sshll.u32 %s401_s29, 3  ;;  %410 = sbr.rel (%p1701_p4) target bundleno = 49 (0x31), region = 68 }
  0x29   : > { %s403_s7 = scalar_lea.vmem %s2814_s0, %s1700_s12 }
  0x2d   : > { %vm411_vm0 = vcmask 523264   ;;  %vm414_vm1 = vcmask 518144   ;;  %v2170_v0 = vmov 0.0  }
  0x2e   : > { %412 = vst.msk [vmem:[#allocation2] sm:$0xff] %vm411_vm0, %v2170_v0 }
  0x2f   : > { %413 = vst.msk [vmem:[#allocation2 + $0x8] sm:$0xff] %vm411_vm0, %v2170_v0 }
  0x30   : > { %415 = vst.msk [vmem:[#allocation3] sm:$0x7] %vm414_vm1, %v2170_v0 }
  0x31 PF: > { %v1757_v1 = vld [vmem:[%s2815_s1 + $0x8] sm:$0xff]  ;;  %v1756_v2 = vld [vmem:[%s2815_s1] sm:$0xff]  ;;  %vm435_vm2 = vcmask 261120   ;;  %v1761_v6 = vld [vmem:[%s2818_s4 + $0x18] sm:$0xff]  ;;  %vm453_vm3 = vcmask 523264   ;;  %vm534_vm4 = vcmask 523269   ;;  %v846_v46 = vlaneseq }
  0x32   : > { %v416_v3 = vld [vmem:[%s403_s7] sm:$0xff]  ;;  %v417_v4 = vld [vmem:[%s403_s7 + $0x8] sm:$0xff]  ;;  %445 = vmatpush.bf16.msra.mxu0 %v1757_v1  ;;  %576 = vmatpush.bf16.msra.mxu1 %v1761_v6  ;;  %v1760_v7 = vld [vmem:[%s2818_s4 + $0x10] sm:$0xff]  ;;  %vm598_vm13 = vcmask 1041408   ;;  %vm591_vm14 = vcmask 15360   ;;  %s2171_s22 = smov 110  }
  0x33   : > { %v418_v5 = vpack.c.bf16 %v417_v4, %v416_v3  ;;  %v1759_v8 = vld [vmem:[%s2818_s4 + $0x8] sm:$0xff]  ;;  %v1758_v9 = vld [vmem:[%s2818_s4] sm:$0xff]  ;;  %v2381_v48 = vshrl.u32 %v846_v46, 7  ;;  %vm1155_vm15 = vcmask 130048   ;;  %s2654_s18 = smov 0  }
  0x34   : > { %v1903_v11 = vld [vmem:[%s2816_s2] ss:$0 sm:$0xff]  ;;  %v1904_v12 = vld [vmem:[%s2816_s2 + $0x1] ss:$0 sm:$0xff]  ;;  %v1905_v13 = vld [vmem:[%s2816_s2 + $0x2] ss:$0 sm:$0xff] }
  0x35   : > { %v1906_v20 = vld [vmem:[%s2816_s2 + $0x3] ss:$0 sm:$0xff]  ;;  %v1907_v26 = vld [vmem:[%s2817_s3] ss:$0 sm:$0xff]  ;;  %v2384_v49 = vadd.s32 2, %v2381_v48 }
  0x36   : > { %446 = vmatpush.bf16.msra.mxu0 %v1756_v2  ;;  %577 = vmatpush.bf16.msra.mxu1 %v1760_v7 }
  0x37   : > { %1884 = vset.pattern.permute.xlu2 %v2384_v49  ;;  %1882 = vset.pattern.permute.xlu1 %v2384_v49 }
  0x38   : > { %1880 = vset.pattern.permute.xlu0 %v2384_v49 }
  0x39   : > { %1710 = vmatmul.msk.bf16.vlgmr.msra.gmra.mxu0 %vm435_vm2, %v418_v5 }
  0x3a   : > { %578 = vmatpush.bf16.msra.mxu1 %v1759_v8 }
  0x3e   : > { %579 = vmatpush.bf16.msra.mxu1 %v1758_v9 }
  0xb6   : > { %v2357_v10 = vpop.f32.mrf.mxu0 }
  0xb7   : > { %454 = vst.msk [vmem:[#allocation3 + $0x3] sm:$0xff] %vm453_vm3, %v2357_v10 }
  0xbe   : > { %v2370_v14 = vpop.f32.mrf.mxu0  ;;  %v456_v15 = vld [vmem:[#allocation3] sm:$0xff] }
  0xbf   : > { %v464_v16 = vld [vmem:[#allocation3 + $0x1] sm:$0xff]  ;;  %455 = vst.msk [vmem:[#allocation3 + $0xb] sm:$0xff] %vm453_vm3, %v2370_v14  ;;  %v460_v18 = vmul.f32 %v1903_v11, %v456_v15 }
  0xc0   : > { %v472_v17 = vld [vmem:[#allocation3 + $0x2] sm:$0xff]  ;;  %v468_v19 = vmul.f32 %v1904_v12, %v464_v16 }
  0xc1   : > { %535 = vst.msk [vmem:[#allocation3 - $0x5] sm:$0xe0] %vm534_vm4, %v2370_v14  ;;  %v480_v21 = vld [vmem:[#allocation3 + $0x3] sm:$0xff]  ;;  %v476_v22 = vmul.f32 %v1905_v13, %v472_v17 }
  0xc2   : > { %v470_v23 = vadd.f32 %v468_v19, %v460_v18  ;;  %v484_v25 = vmul.f32 %v1906_v20, %v480_v21  ;;  %v2407_v18 = vadd.s32 10, %v2381_v48 }
  0xc4   : > { %v478_v24 = vadd.f32 %v476_v22, %v470_v23 }
  0xc6   : > { %v486_v27 = vadd.f32 %v484_v25, %v478_v24  ;;  %v457_v28 = vld [vmem:[#allocation3 + $0x8] sm:$0xff] }
  0xc7   : > { %v465_v29 = vld [vmem:[#allocation3 + $0x9] sm:$0xff]  ;;  %v461_v31 = vmul.f32 %v1903_v11, %v457_v28 }
  0xc8   : > { %v473_v30 = vld [vmem:[#allocation3 + $0xa] sm:$0xff]  ;;  %v469_v32 = vmul.f32 %v1904_v12, %v465_v29  ;;  %v492_v33 = vadd.f32 %v1907_v26, %v486_v27 }
  0xc9   : > { %v481_v34 = vld [vmem:[#allocation3 + $0xb] sm:$0xff]  ;;  %v477_v36 = vmul.f32 %v1905_v13, %v473_v30 }
  0xca   : > { %v471_v35 = vadd.f32 %v469_v32, %v461_v31  ;;  %v494_v37 = vsub.f32 0.0, %v492_v33  ;;  %v485_v39 = vmul.f32 %v1906_v20, %v481_v34  ;;  %v586_v12 = vld [vmem:[%s2819_s5] sm:$0x3] }
  0xcb   : > { %1728 = vmatpush.msk.msra.mxu2 %vm598_vm13, %v586_v12  ;;  %v1908_v32 = vld [vmem:[%s2820_s6] ss:$0 sm:$0xff] }
  0xcc   : > { %v479_v38 = vadd.f32 %v477_v36, %v471_v35  ;;  %v496_v40 = vmul.f32 1.442695, %v494_v37 }
  0xce   : > { %v487_v41 = vadd.f32 %v485_v39, %v479_v38  ;;  %1909 = vpow2.f32 %v496_v40 }
  0xd0   : > { %v493_v42 = vadd.f32 %v1907_v26, %v487_v41 }
  0xd2   : > { %v495_v43 = vsub.f32 0.0, %v493_v42 }
  0xd4   : > { %v1910_v44 = vpop.eup %1909  ;;  %v498_v45 = vmul.f32 1.442695, %v495_v43 }
  0xd5   : > { %v500_v47 = vadd.f32 1.0, %v1910_v44  ;;  %v643_v44 = vld [vmem:[#allocation8] sm:$0xff] }
  0xd6   : > { %1911 = vpow2.f32 %v498_v45  ;;  %v644_v45 = vld [vmem:[#allocation8 + $0x8] sm:$0xff] }
  0xd7   : > { %1913 = vrcp.f32 %v500_v47  ;;  %v513_v59 = vand.u32 2147483648, %v500_v47  ;;  %vm507_vm6 = vweird.f32 %v500_v47  ;;  %v511_v60 = vand.u32 2147483647, %v500_v47 }
  0xd9   : > { %v514_v2 = vor.u32 1.1754944e-38, %v513_v59  ;;  %vm512_vm9 = vcmp.eq.f32.partialorder %v511_v60, 8.507059e+37 }
  0xdc   : > { %v1912_v50 = vpop.eup %1911 }
  0xdd   : > { %v1914_v51 = vpop.eup %1913  ;;  %v501_v52 = vadd.f32 1.0, %v1912_v50 }
  0xde   : > { %v503_v53 = vmul.f32 %v1914_v51, %v500_v47  ;;  %vm508_vm5 = vweird.f32 %v1914_v51 }
  0xdf   : > { %1915 = vrcp.f32 %v501_v52  ;;  %vm509_vm7 = vmor %vm507_vm6, %vm508_vm5  ;;  %v528_v62 = vand.u32 2147483648, %v501_v52  ;;  %v526_v1 = vand.u32 2147483647, %v501_v52  ;;  %vm522_vm10 = vweird.f32 %v501_v52 }
  0xe0   : > { %v504_v54 = vsub.f32 1.0, %v503_v53 }
  0xe1   : > { %v529_v5 = vor.u32 1.1754944e-38, %v528_v62  ;;  %vm527_vm12 = vcmp.eq.f32.partialorder %v526_v1, 8.507059e+37 }
  0xe2   : > { %v505_v55 = vmul.f32 %v1914_v51, %v504_v54 }
  0xe4   : > { %v506_v57 = vadd.f32 %v1914_v51, %v505_v55 }
  0xe5   : > { %v1916_v56 = vpop.eup %1915 }
  0xe6   : > { %v518_v58 = vmul.f32 %v1916_v56, %v501_v52  ;;  %v510_v63 = vsel %vm509_vm7, %v1914_v51, %v506_v57  ;;  %vm523_vm8 = vweird.f32 %v1916_v56  ;;  %v647_v51 = vmul.f32 1.442695, %v644_v45 }
  0xe7   : > { %v515_v4 = vsel %vm512_vm9, %v514_v2, %v510_v63  ;;  %vm524_vm11 = vmor %vm522_vm10, %vm523_vm8 }
  0xe8   : > { %v519_v61 = vsub.f32 1.0, %v518_v58  ;;  %v2389_v8 = vmul.f32 %v515_v4, %v492_v33 }
  0xea   : > { %v520_v0 = vmul.f32 %v1916_v56, %v519_v61 }
  0xec   : > { %v521_v3 = vadd.f32 %v1916_v56, %v520_v0 }
  0xee   : > { %v525_v6 = vsel %vm524_vm11, %v1916_v56, %v521_v3 }
  0xef   : > { %v530_v7 = vsel %vm527_vm12, %v529_v5, %v525_v6 }
  0xf0   : > { %v2391_v9 = vmul.f32 %v530_v7, %v493_v42 }
  0xf2   : > { %v536_v11 = vpack.c.bf16 %v2391_v9, %v2389_v8 }
  0xf4   : > { %1727 = vmatmul.msk.bf16.vlgmr.msra.gmra.mxu1 %vm453_vm3, %v536_v11 }
 0x171   : > { %v2400_v13 = vpop.f32.mrf.mxu1 }
 0x172   : > { %1729 = vmatmul.msk.f32.vlgmr.msra.gmra.mxu2 %vm591_vm14, %v2400_v13  ;;  %v871_v15 = vperm.slane %v2400_v13, 2  ;;  %v858_v16 = vperm.slane %v2400_v13, 1  ;;  %v845_v17 = vperm.slane %v2400_v13, 0  ;;  %v884_v20 = vperm.slane %v2400_v13, 3 }
 0x173   : > { %v897_v21 = vperm.slane %v2400_v13, 4  ;;  %v910_v22 = vperm.slane %v2400_v13, 5  ;;  %v923_v23 = vperm.slane %v2400_v13, 6  ;;  %v936_v24 = vperm.slane %v2400_v13, 7 }
 0x174   : > { %876 = vperm.xlu2 %1884, %v871_v15   ;;  %863 = vperm.xlu1 %1882, %v858_v16  }
 0x175   : > { %850 = vperm.xlu0 %1880, %v845_v17  }
 0x179   : > { %v2409_v19 = vpop.f32.mrf.mxu1 }
 0x17a   : > { %1730 = vmatmul.msk.f32.gmra.mxu2 %vm591_vm14, %v2409_v19  ;;  %v962_v25 = vperm.slane %v2409_v19, 1  ;;  %v949_v26 = vperm.slane %v2409_v19, 0  ;;  %v988_v27 = vperm.slane %v2409_v19, 3  ;;  %v975_v28 = vperm.slane %v2409_v19, 2 }
 0x17b   : > { %v1027_v29 = vperm.slane %v2409_v19, 6  ;;  %v1001_v30 = vperm.slane %v2409_v19, 4  ;;  %v1014_v31 = vperm.slane %v2409_v19, 5  ;;  %v1040_v38 = vperm.slane %v2409_v19, 7 }
 0x17c   : > { %1885 = vset.pattern.permute.xlu2 %v2407_v18  ;;  %1883 = vset.pattern.permute.xlu1 %v2407_v18 }
 0x17d   : > { %1881 = vset.pattern.permute.xlu0 %v2407_v18 }
 0x184   : > { %882 = vperm.xlu2 %1885, %v871_v15   ;;  %869 = vperm.xlu1 %1883, %v858_v16  }
 0x185   : > { %856 = vperm.xlu0 %1881, %v845_v17  }
 0x18c   : > { %895 = vperm.xlu2 %1885, %v884_v20   ;;  %1886 = vset.pattern.permute.xlu1 %v2384_v49 }
 0x18d   : > { %1887 = vset.pattern.permute.xlu0 %v2384_v49 }
 0x194   : > { %1889 = vset.pattern.permute.xlu2 %v2384_v49  ;;  %889 = vperm.xlu1 %1886, %v884_v20  }
 0x195   : > { %902 = vperm.xlu0 %1887, %v897_v21  }
 0x19c   : > { %915 = vperm.xlu2 %1889, %v910_v22   ;;  %1888 = vset.pattern.permute.xlu1 %v2407_v18 }
 0x19d   : > { %1890 = vset.pattern.permute.xlu0 %v2407_v18 }
 0x1a4   : > { %928 = vperm.xlu2 %1889, %v923_v23   ;;  %908 = vperm.xlu1 %1888, %v897_v21  }
 0x1a5   : > { %934 = vperm.xlu0 %1890, %v923_v23  }
 0x1ac   : > { %1892 = vset.pattern.permute.xlu2 %v2407_v18  ;;  %921 = vperm.xlu1 %1888, %v910_v22  }
 0x1ad   : > { %1893 = vset.pattern.permute.xlu0 %v2384_v49 }
 0x1b4   : > { %947 = vperm.xlu2 %1892, %v936_v24   ;;  %1891 = vset.pattern.permute.xlu1 %v2384_v49 }
 0x1b5   : > { %967 = vperm.xlu0 %1893, %v962_v25  }
 0x1bc   : > { %941 = vperm.xlu1 %1891, %v936_v24   ;;  %960 = vperm.xlu2 %1892, %v949_v26  }
 0x1bd   : > { %1896 = vset.pattern.permute.xlu0 %v2407_v18 }
 0x1c4   : > { %1895 = vset.pattern.permute.xlu2 %v2384_v49  ;;  %954 = vperm.xlu1 %1891, %v949_v26  }
 0x1c5   : > { %999 = vperm.xlu0 %1896, %v988_v27  }
 0x1cc   : > { %980 = vperm.xlu2 %1895, %v975_v28   ;;  %1894 = vset.pattern.permute.xlu1 %v2407_v18 }
 0x1cd   : > { %1899 = vset.pattern.permute.xlu0 %v2384_v49 }
 0x1ce   : > { %v2448_v33 = vpop.permute.xlu2 %876 }
 0x1d4   : > { %993 = vperm.xlu2 %1895, %v988_v27   ;;  %973 = vperm.xlu1 %1894, %v962_v25  }
 0x1d5   : > { %1032 = vperm.xlu0 %1899, %v1027_v29  }
 0x1dc   : > { %1898 = vset.pattern.permute.xlu2 %v2407_v18  ;;  %986 = vperm.xlu1 %1894, %v975_v28  }
 0x1dd   : > { %1151 = vrot.lane.b32.xlu0 %v2409_v19, %s2171_s22 }
 0x1de   : > { %1902 = vset.pattern.permute.xlu0 %v2407_v18  ;;  %v2452_v40 = vpop.permute.xlu2 %882 }
 0x1e4   : > { %1012 = vperm.xlu2 %1898, %v1001_v30   ;;  %1897 = vset.pattern.permute.xlu1 %v2384_v49 }
 0x1e6   : > { %v2459_v53 = vpop.permute.xlu2 %895  ;;  %v2463_v62 = vpop.permute.xlu1 %863 }
 0x1ec   : > { %1025 = vperm.xlu2 %1898, %v1014_v31   ;;  %1006 = vperm.xlu1 %1897, %v1001_v30  }
 0x1f4   : > { %1901 = vset.pattern.permute.xlu2 %v2384_v49  ;;  %1019 = vperm.xlu1 %1897, %v1014_v31   ;;  %v645_v49 = vmul.f32 1.442695, %v643_v44 }
 0x1f5   : > { %v619_v34 = vpop.f32.mrf.mxu2 }
 0x1f6   : > { %v620_v35 = vadd.f32 %v1908_v32, %v619_v34  ;;  %v2461_v59 = vpop.permute.xlu2 %915  ;;  %v2476_v27 = vpop.permute.xlu1 %869 }
 0x1f8   : > { %v627_v36 = vand.u32 2147483647, %v620_v35  ;;  %v625_v56 = vmax.f32 %v620_v35, 0.0 }
 0x1fa   : > { %v629_v37 = vsub.f32 0.0, %v627_v36 }
 0x1fc   : > { %v631_v39 = vmul.f32 1.442695, %v629_v37  ;;  %1045 = vperm.xlu2 %1901, %v1040_v38   ;;  %1900 = vset.pattern.permute.xlu1 %v2407_v18 }
 0x1fd   : > { %v622_v41 = vpop.f32.mrf.mxu2 }
 0x1fe   : > { %1917 = vpow2.f32 %v631_v39  ;;  %v2454_v42 = vadd.f32 %v1908_v32, %v622_v41  ;;  %v2478_v28 = vpop.permute.xlu2 %928 }
 0x200   : > { %v628_v43 = vand.u32 2147483647, %v2454_v42 }
 0x202   : > { %v630_v46 = vsub.f32 0.0, %v628_v43 }
 0x204   : > { %v1918_v47 = vpop.eup %1917  ;;  %1149 = vrot.lane.b32.xlu2 %v2400_v13, %s2171_s22  ;;  %1038 = vperm.xlu1 %1900, %v1027_v29   ;;  %v633_v52 = vmul.f32 1.442695, %v630_v46 }
 0x205   : > { %v635_v50 = vadd.f32 1.0, %v1918_v47  ;;  %v626_v47 = vmax.f32 %v2454_v42, 0.0 }
 0x206   : > { %v2494_v42 = vpop.permute.xlu1 %889 }
 0x207   : > { %1919 = vlog2.f32 %v635_v50 }
 0x208   : > { %1921 = vpow2.f32 %v645_v49  ;;  %v2486_v49 = vpop.permute.xlu0 %850 }
 0x209   : > { %1923 = vpow2.f32 %v647_v51 }
 0x20a   : > { %1925 = vpow2.f32 %v633_v52 }
 0x20c   : > { %1051 = vperm.xlu1 %1900, %v1040_v38  }
 0x20d   : > { %v1920_v54 = vpop.eup %1919 }
 0x20e   : > { %v1922_v55 = vpop.eup %1921  ;;  %v638_v57 = vmul.f32 0.6931472, %v1920_v54 }
 0x20f   : > { %v1924_v58 = vpop.eup %1923  ;;  %v2465_v63 = vsub.f32 0.0, %v1922_v55 }
 0x210   : > { %v1926_v60 = vpop.eup %1925  ;;  %v641_v61 = vadd.f32 %v638_v57, %v625_v56  ;;  %v2467_v0 = vsub.f32 0.0, %v1924_v58 }
 0x211   : > { %v636_v6 = vadd.f32 1.0, %v1926_v60 }
 0x212   : > { %v653_v1 = vrot.slane %v641_v61, 1  ;;  %v654_v2 = vrot.slane %v641_v61, 2  ;;  %v655_v3 = vrot.slane %v641_v61, 3  ;;  %v656_v4 = vrot.slane %v641_v61, 4 }
 0x213   : > { %v667_v5 = vperm.slane %v641_v61, 0  ;;  %v657_v12 = vrot.slane %v641_v61, 5  ;;  %v658_v19 = vrot.slane %v641_v61, 6  ;;  %1927 = vlog2.f32 %v636_v6 }
 0x214   : > { %v668_v7 = vperm.slane %v653_v1, 0  ;;  %v669_v11 = vperm.slane %v654_v2, 0  ;;  %v670_v13 = vperm.slane %v655_v3, 0  ;;  %v671_v20 = vperm.slane %v656_v4, 0  ;;  %v2496_v1 = vpop.permute.xlu2 %947 }
 0x215   : > { %v699_v15 = vmul.f32 %v667_v5, %v2465_v63  ;;  %v700_v16 = vmul.f32 %v667_v5, %v2467_v0  ;;  %v659_v23 = vrot.slane %v641_v61, 7  ;;  %v672_v24 = vperm.slane %v657_v12, 0 }
 0x216   : > { %v701_v17 = vmul.f32 %v668_v7, %v2465_v63  ;;  %v702_v18 = vmul.f32 %v668_v7, %v2467_v0  ;;  %v703_v21 = vmul.f32 %v669_v11, %v2465_v63  ;;  %v704_v22 = vmul.f32 %v669_v11, %v2467_v0 }
 0x217   : > { %v705_v25 = vmul.f32 %v670_v13, %v2465_v63  ;;  %v731_v26 = vmul.f32 1.442695, %v699_v15  ;;  %v706_v29 = vmul.f32 %v670_v13, %v2467_v0  ;;  %v733_v30 = vmul.f32 1.442695, %v700_v16 }
 0x218   : > { %v735_v31 = vmul.f32 1.442695, %v701_v17  ;;  %v737_v32 = vmul.f32 1.442695, %v702_v18  ;;  %v673_v34 = vperm.slane %v658_v19, 0  ;;  %v707_v35 = vmul.f32 %v671_v20, %v2465_v63 }
 0x219   : > { %1929 = vpow2.f32 %v731_v26  ;;  %v739_v36 = vmul.f32 1.442695, %v703_v21  ;;  %v708_v37 = vmul.f32 %v671_v20, %v2467_v0  ;;  %v741_v38 = vmul.f32 1.442695, %v704_v22  ;;  %v1928_v39 = vpop.eup %1927 }
 0x21a   : > { %1931 = vpow2.f32 %v733_v30  ;;  %v674_v41 = vperm.slane %v659_v23, 0  ;;  %v709_v43 = vmul.f32 %v672_v24, %v2465_v63  ;;  %v743_v44 = vmul.f32 1.442695, %v705_v25 }
 0x21b   : > { %1933 = vpow2.f32 %v735_v31  ;;  %v710_v45 = vmul.f32 %v672_v24, %v2467_v0  ;;  %v745_v46 = vmul.f32 1.442695, %v706_v29  ;;  %v711_v50 = vmul.f32 %v673_v34, %v2465_v63  ;;  %v2513_v24 = vpop.permute.xlu0 %856 }
 0x21c   : > { %1935 = vpow2.f32 %v737_v32  ;;  %v712_v51 = vmul.f32 %v673_v34, %v2467_v0  ;;  %v747_v52 = vmul.f32 1.442695, %v707_v35  ;;  %v749_v54 = vmul.f32 1.442695, %v708_v37  ;;  %v2522_v37 = vpop.permute.xlu1 %908 }
 0x21d   : > { %1937 = vpow2.f32 %v739_v36  ;;  %v2491_v55 = vmul.f32 %v641_v61, %v2389_v8  ;;  %v640_v56 = vmul.f32 0.6931472, %v1928_v39  ;;  %v713_v58 = vmul.f32 %v674_v41, %v2465_v63 }
 0x21e   : > { %1939 = vpow2.f32 %v741_v38  ;;  %v751_v60 = vmul.f32 1.442695, %v709_v43  ;;  %v714_v3 = vmul.f32 %v674_v41, %v2467_v0  ;;  %v753_v4 = vmul.f32 1.442695, %v710_v45 }
 0x21f   : > { %v1930_v57 = vpop.eup %1929  ;;  %1941 = vpow2.f32 %v743_v44  ;;  %v2500_v5 = vadd.f32 %v640_v56, %v626_v47  ;;  %v755_v6 = vmul.f32 1.442695, %v711_v50  ;;  %v757_v11 = vmul.f32 1.442695, %v712_v51  ;;  %v2531_v51 = vpop.permute.xlu2 %960 }
 0x220   : > { %v1932_v2 = vpop.eup %1931  ;;  %1943 = vpow2.f32 %v745_v46  ;;  %795 = vst.msk [vmem:[#allocation4] sm:$0xff] %vm453_vm3, %v1930_v57  ;;  %v832_v12 = vrot.slane %v2491_v55, 2  ;;  %v759_v16 = vmul.f32 1.442695, %v713_v58  ;;  %v835_v17 = vrot.slane %v2491_v55, 5 }
 0x221   : > { %v1934_v61 = vpop.eup %1933  ;;  %1945 = vpow2.f32 %v747_v52  ;;  %796 = vst.msk [vmem:[#allocation4 + $0x8] sm:$0xff] %vm453_vm3, %v1932_v2  ;;  %v660_v13 = vrot.slane %v2500_v5, 1  ;;  %v661_v18 = vrot.slane %v2500_v5, 2  ;;  %v761_v20 = vmul.f32 1.442695, %v714_v3 }
 0x222   : > { %v1936_v7 = vpop.eup %1935  ;;  %1947 = vpow2.f32 %v749_v54  ;;  %797 = vst.msk [vmem:[#allocation4 + $0x10] sm:$0xff] %vm453_vm3, %v1934_v61  ;;  %v662_v21 = vrot.slane %v2500_v5, 3  ;;  %v831_v23 = vrot.slane %v2491_v55, 1  ;;  %v675_v25 = vperm.slane %v2500_v5, 0 }
 0x223   : > { %v1938_v15 = vpop.eup %1937  ;;  %1949 = vpow2.f32 %v751_v60  ;;  %798 = vst.msk [vmem:[#allocation4 + $0x18] sm:$0xff] %vm453_vm3, %v1936_v7  ;;  %v676_v26 = vperm.slane %v660_v13, 0  ;;  %v1055_v30 = vperm.slane %v832_v12, 0  ;;  %v663_v31 = vrot.slane %v2500_v5, 4 }
 0x224   : > { %v1940_v19 = vpop.eup %1939  ;;  %1951 = vpow2.f32 %v753_v4  ;;  %799 = vst.msk [vmem:[#allocation4 + $0x20] sm:$0xff] %vm453_vm3, %v1938_v15  ;;  %v677_v32 = vperm.slane %v661_v18, 0  ;;  %v2519_v35 = vperm.slane %v835_v17, 0  ;;  %v664_v36 = vrot.slane %v2500_v5, 5  ;;  %v2548_v17 = vpop.permute.xlu0 %902 }
 0x225   : > { %v1942_v22 = vpop.eup %1941  ;;  %1953 = vpow2.f32 %v755_v6  ;;  %800 = vst.msk [vmem:[#allocation4 + $0x28] sm:$0xff] %vm453_vm3, %v1940_v19  ;;  %v678_v39 = vperm.slane %v662_v21, 0  ;;  %v715_v41 = vmul.f32 %v675_v25, %v2465_v63  ;;  %v716_v43 = vmul.f32 %v675_v25, %v2467_v0 }
 0x226   : > { %v1944_v29 = vpop.eup %1943  ;;  %1955 = vpow2.f32 %v757_v11  ;;  %801 = vst.msk [vmem:[#allocation4 + $0x30] sm:$0xff] %vm453_vm3, %v1942_v22  ;;  %v1054_v45 = vperm.slane %v831_v23, 0  ;;  %v1053_v46 = vperm.slane %v2491_v55, 0  ;;  %v717_v47 = vmul.f32 %v676_v26, %v2465_v63 }
 0x227   : > { %v1946_v34 = vpop.eup %1945  ;;  %1957 = vpow2.f32 %v759_v16  ;;  %802 = vst.msk [vmem:[#allocation4 + $0x38] sm:$0xff] %vm453_vm3, %v1944_v29  ;;  %v718_v50 = vmul.f32 %v676_v26, %v2467_v0  ;;  %v1089_v54 = vmul.f32 %v1055_v30, %v2448_v33  ;;  %v665_v56 = vrot.slane %v2500_v5, 6 }
 0x228   : > { %v1948_v38 = vpop.eup %1947  ;;  %1959 = vpow2.f32 %v761_v20  ;;  %803 = vst.msk [vmem:[#allocation4 + $0x40] sm:$0xff] %vm453_vm3, %v1946_v34  ;;  %v679_v57 = vperm.slane %v663_v31, 0  ;;  %v719_v58 = vmul.f32 %v677_v32, %v2465_v63  ;;  %v1090_v2 = vmul.f32 %v1055_v30, %v2452_v40  ;;  %v2557_v30 = vpop.permute.xlu1 %921 }
 0x229   : > { %v1950_v44 = vpop.eup %1949  ;;  %804 = vst.msk [vmem:[#allocation4 + $0x48] sm:$0xff] %vm453_vm3, %v1948_v38  ;;  %v1095_v3 = vmul.f32 %v2519_v35, %v2461_v59  ;;  %v666_v4 = vrot.slane %v2500_v5, 7  ;;  %v720_v61 = vmul.f32 %v677_v32, %v2467_v0  ;;  %v680_v33 = vperm.slane %v664_v36, 0  ;;  %v2562_v34 = vpop.permute.xlu2 %980 }
 0x22a   : > { %v1952_v52 = vpop.eup %1951  ;;  %805 = vst.msk [vmem:[#allocation4 + $0x50] sm:$0xff] %vm453_vm3, %v1950_v44  ;;  %v721_v7 = vmul.f32 %v678_v39, %v2465_v63  ;;  %v763_v11 = vmul.f32 1.442695, %v715_v41  ;;  %v765_v12 = vmul.f32 1.442695, %v716_v43  ;;  %v1087_v40 = vmul.f32 %v1054_v45, %v2463_v62 }
 0x22b   : > { %v1954_v60 = vpop.eup %1953  ;;  %806 = vst.msk [vmem:[#allocation4 + $0x58] sm:$0xff] %vm453_vm3, %v1952_v52  ;;  %v722_v15 = vmul.f32 %v678_v39, %v2467_v0  ;;  %v767_v59 = vmul.f32 1.442695, %v717_v47  ;;  %v769_v16 = vmul.f32 1.442695, %v718_v50  ;;  %v681_v19 = vperm.slane %v665_v56, 0 }
 0x22c   : > { %v1956_v6 = vpop.eup %1955  ;;  %807 = vst.msk [vmem:[#allocation4 + $0x60] sm:$0xff] %vm453_vm3, %v1954_v60  ;;  %v723_v20 = vmul.f32 %v679_v57, %v2465_v63  ;;  %1961 = vpow2.f32 %v763_v11  ;;  %v771_v21 = vmul.f32 1.442695, %v719_v58  ;;  %v1088_v22 = vmul.f32 %v1054_v45, %v2476_v27  ;;  %v2573_v50 = vpop.permute.xlu0 %934 }
 0x22d   : > { %v1958_v13 = vpop.eup %1957  ;;  %808 = vst.msk [vmem:[#allocation4 + $0x68] sm:$0xff] %vm453_vm3, %v1956_v6  ;;  %v724_v62 = vmul.f32 %v679_v57, %v2467_v0  ;;  %1963 = vpow2.f32 %v765_v12  ;;  %v773_v23 = vmul.f32 1.442695, %v720_v61  ;;  %v682_v25 = vperm.slane %v666_v4, 0 }
 0x22e   : > { %v1960_v18 = vpop.eup %1959  ;;  %809 = vst.msk [vmem:[#allocation4 + $0x70] sm:$0xff] %vm453_vm3, %v1958_v13  ;;  %v725_v26 = vmul.f32 %v680_v33, %v2465_v63  ;;  %1965 = vpow2.f32 %v767_v59  ;;  %v775_v29 = vmul.f32 1.442695, %v721_v7  ;;  %v1085_v31 = vmul.f32 %v1053_v46, %v2486_v49 }
 0x22f   : > { %810 = vst.msk [vmem:[#allocation4 + $0x78] sm:$0xff] %vm453_vm3, %v1960_v18  ;;  %v726_v32 = vmul.f32 %v680_v33, %v2467_v0  ;;  %1967 = vpow2.f32 %v769_v16  ;;  %v777_v27 = vmul.f32 1.442695, %v722_v15  ;;  %v1086_v36 = vmul.f32 %v1053_v46, %v2513_v24 }
 0x230   : > { %1121 = vst.msk [vmem:[#allocation5 + $0x20] sm:$0xff] %vm453_vm3, %v1089_v54  ;;  %v727_v38 = vmul.f32 %v681_v19, %v2465_v63  ;;  %1969 = vpow2.f32 %v771_v21  ;;  %v779_v39 = vmul.f32 1.442695, %v723_v20  ;;  %v728_v41 = vmul.f32 %v681_v19, %v2467_v0 }
 0x231   : > { %1122 = vst.msk [vmem:[#allocation5 + $0x28] sm:$0xff] %vm453_vm3, %v1090_v2  ;;  %1971 = vpow2.f32 %v773_v23  ;;  %v781_v49 = vmul.f32 1.442695, %v724_v62  ;;  %v729_v44 = vmul.f32 %v682_v25, %v2465_v63  ;;  %v783_v45 = vmul.f32 1.442695, %v725_v26  ;;  %v2582_v4 = vpop.permute.xlu2 %993 }
 0x232   : > { %1127 = vst.msk [vmem:[#allocation5 + $0x50] sm:$0xff] %vm453_vm3, %v1095_v3  ;;  %v1962_v43 = vpop.eup %1961  ;;  %1973 = vpow2.f32 %v775_v29  ;;  %v730_v24 = vmul.f32 %v682_v25, %v2467_v0  ;;  %v785_v46 = vmul.f32 1.442695, %v726_v32  ;;  %v787_v54 = vmul.f32 1.442695, %v727_v38  ;;  %v2578_v0 = vpop.permute.xlu1 %941 }
 0x233   : > { %1119 = vst.msk [vmem:[#allocation5 + $0x10] sm:$0xff] %vm453_vm3, %v1087_v40  ;;  %v1964_v47 = vpop.eup %1963  ;;  %1975 = vpow2.f32 %v777_v27  ;;  %v789_v57 = vmul.f32 1.442695, %v728_v41  ;;  %v791_v58 = vmul.f32 1.442695, %v729_v44  ;;  %v836_v6 = vrot.slane %v2491_v55, 6 }
 0x234   : > { %1120 = vst.msk [vmem:[#allocation5 + $0x18] sm:$0xff] %vm453_vm3, %v1088_v22  ;;  %v1966_v52 = vpop.eup %1965  ;;  %1977 = vpow2.f32 %v779_v39  ;;  %v793_v2 = vmul.f32 1.442695, %v730_v24  ;;  %v833_v7 = vrot.slane %v2491_v55, 3  ;;  %v968_v12 = vpop.permute.xlu0 %967  ;;  %v834_v40 = vrot.slane %v2491_v55, 4 }
 0x235   : > { %1117 = vst.msk [vmem:[#allocation5] sm:$0xff] %vm453_vm3, %v1085_v31  ;;  %v1968_v56 = vpop.eup %1967  ;;  %1979 = vpow2.f32 %v781_v49  ;;  %v1059_v59 = vperm.slane %v836_v6, 0  ;;  %v837_v16 = vrot.slane %v2491_v55, 7  ;;  %v2598_v62 = vmul.f32 %v2500_v5, %v2391_v9 }
 0x236   : > { %1118 = vst.msk [vmem:[#allocation5 + $0x8] sm:$0xff] %vm453_vm3, %v1086_v36  ;;  %v1970_v63 = vpop.eup %1969  ;;  %1981 = vpow2.f32 %v783_v45  ;;  %v1056_v19 = vperm.slane %v833_v7, 0  ;;  %v1057_v22 = vperm.slane %v834_v40, 0 }
 0x237   : > { %811 = vst.msk [vmem:[#allocation4 + $0x80] sm:$0xff] %vm453_vm3, %v1962_v43  ;;  %v1972_v60 = vpop.eup %1971  ;;  %1983 = vpow2.f32 %v785_v46  ;;  %v1097_v55 = vmul.f32 %v1059_v59, %v2478_v28  ;;  %v1060_v29 = vperm.slane %v837_v16, 0  ;;  %v1061_v36 = vperm.slane %v2598_v62, 0 }
 0x238   : > { %812 = vst.msk [vmem:[#allocation4 + $0x88] sm:$0xff] %vm453_vm3, %v1964_v47  ;;  %v1974_v3 = vpop.eup %1973  ;;  %1985 = vpow2.f32 %v787_v54  ;;  %v1091_v31 = vmul.f32 %v1056_v19, %v2494_v42  ;;  %v1092_v32 = vmul.f32 %v1056_v19, %v2459_v53  ;;  %v1093_v5 = vmul.f32 %v1057_v22, %v2548_v17 }
 0x239   : > { %813 = vst.msk [vmem:[#allocation4 + $0x90] sm:$0xff] %vm453_vm3, %v1966_v52  ;;  %v1976_v61 = vpop.eup %1975  ;;  %1987 = vpow2.f32 %v789_v57  ;;  %v838_v38 = vrot.slane %v2598_v62, 1  ;;  %v1100_v28 = vmul.f32 %v1060_v29, %v2496_v1  ;;  %v839_v39 = vrot.slane %v2598_v62, 2 }
 0x23a   : > { %814 = vst.msk [vmem:[#allocation4 + $0x98] sm:$0xff] %vm453_vm3, %v1968_v56  ;;  %v1978_v33 = vpop.eup %1977  ;;  %1989 = vpow2.f32 %v791_v58  ;;  %v955_v23 = vpop.permute.xlu1 %954  ;;  %v1094_v42 = vmul.f32 %v1057_v22, %v2522_v37  ;;  %v1098_v53 = vmul.f32 %v1059_v59, %v2573_v50  ;;  %v840_v17 = vrot.slane %v2598_v62, 3  ;;  %v1159_v59 = vld [vmem:[#allocation2 + $0x8] sm:$0xff]  }
 0x23b   : > { %815 = vst.msk [vmem:[#allocation4 + $0xa0] sm:$0xff] %vm453_vm3, %v1970_v63  ;;  %v1980_v11 = vpop.eup %1979  ;;  %1991 = vpow2.f32 %v793_v2  ;;  %v1102_v41 = vmul.f32 %v1061_v36, %v2531_v51  ;;  %v1062_v49 = vperm.slane %v838_v38, 0  ;;  %v1096_v1 = vmul.f32 %v2519_v35, %v2557_v30 }
 0x23c   : > { %816 = vst.msk [vmem:[#allocation4 + $0xa8] sm:$0xff] %vm453_vm3, %v1972_v60  ;;  %v1982_v13 = vpop.eup %1981  ;;  %v1000_v27 = vpop.permute.xlu0 %999  ;;  %v1063_v44 = vperm.slane %v839_v39, 0  ;;  %v841_v45 = vrot.slane %v2598_v62, 4  ;;  %v1064_v46 = vperm.slane %v840_v17, 0  ;;  %v843_v50 = vrot.slane %v2598_v62, 6 }
 0x23d   : > { %817 = vst.msk [vmem:[#allocation4 + $0xb0] sm:$0xff] %vm453_vm3, %v1974_v3  ;;  %v1984_v15 = vpop.eup %1983  ;;  %v1103_v37 = vmul.f32 %v1062_v49, %v968_v12  ;;  %v1099_v52 = vmul.f32 %v1060_v29, %v2578_v0  ;;  %v842_v35 = vrot.slane %v2598_v62, 5  ;;  %v844_v0 = vrot.slane %v2598_v62, 7 }
 0x23e   : > { %818 = vst.msk [vmem:[#allocation4 + $0xb8] sm:$0xff] %vm453_vm3, %v1976_v61  ;;  %v1986_v18 = vpop.eup %1985  ;;  %v1013_v25 = vpop.permute.xlu2 %1012  ;;  %v1105_v24 = vmul.f32 %v1063_v44, %v2562_v34  ;;  %v1107_v30 = vmul.f32 %v1064_v46, %v2582_v4  ;;  %v1108_v54 = vmul.f32 %v1064_v46, %v1000_v27  ;;  %v1065_v56 = vperm.slane %v841_v45, 0 }
 0x23f   : > { %819 = vst.msk [vmem:[#allocation4 + $0xc0] sm:$0xff] %vm453_vm3, %v1978_v33  ;;  %v1988_v20 = vpop.eup %1987  ;;  %v1101_v34 = vmul.f32 %v1061_v36, %v955_v23  ;;  %v1067_v57 = vperm.slane %v843_v50, 0  ;;  %v1066_v58 = vperm.slane %v842_v35, 0  ;;  %v1068_v6 = vperm.slane %v844_v0, 0 }
 0x240   : > { %820 = vst.msk [vmem:[#allocation4 + $0xc8] sm:$0xff] %vm453_vm3, %v1980_v11  ;;  %v1990_v21 = vpop.eup %1989  ;;  %v1110_v63 = vmul.f32 %v1065_v56, %v1013_v25 }
 0x241   : > { %821 = vst.msk [vmem:[#allocation4 + $0xd0] sm:$0xff] %vm453_vm3, %v1982_v13  ;;  %v1992_v26 = vpop.eup %1991 }
 0x242   : > { %822 = vst.msk [vmem:[#allocation4 + $0xd8] sm:$0xff] %vm453_vm3, %v1984_v15  ;;  %v1158_v15 = vld [vmem:[#allocation2] sm:$0xff]  }
 0x243   : > { %823 = vst.msk [vmem:[#allocation4 + $0xe0] sm:$0xff] %vm453_vm3, %v1986_v18 }
 0x244   : > { %824 = vst.msk [vmem:[#allocation4 + $0xe8] sm:$0xff] %vm453_vm3, %v1988_v20 }
 0x245   : > { %825 = vst.msk [vmem:[#allocation4 + $0xf0] sm:$0xff] %vm453_vm3, %v1990_v21 }
 0x246   : > { %826 = vst.msk [vmem:[#allocation4 + $0xf8] sm:$0xff] %vm453_vm3, %v1992_v26  ;;  %v974_v43 = vpop.permute.xlu1 %973  ;;  %v1026_v47 = vpop.permute.xlu2 %1025 }
 0x247   : > { %1129 = vst.msk [vmem:[#allocation5 + $0x60] sm:$0xff] %vm453_vm3, %v1097_v55  ;;  %v1033_v51 = vpop.permute.xlu0 %1032  ;;  %v1112_v2 = vmul.f32 %v1066_v58, %v1026_v47  ;;  %v1104_v61 = vmul.f32 %v1062_v49, %v974_v43 }
 0x248   : > { %1123 = vst.msk [vmem:[#allocation5 + $0x30] sm:$0xff] %vm453_vm3, %v1091_v31  ;;  %v1113_v60 = vmul.f32 %v1067_v57, %v1033_v51 }
 0x249   : > { %1124 = vst.msk [vmem:[#allocation5 + $0x38] sm:$0xff] %vm453_vm3, %v1092_v32 }
 0x24a   : > { %1125 = vst.msk [vmem:[#allocation5 + $0x40] sm:$0xff] %vm453_vm3, %v1093_v5 }
 0x24b   : > { %1132 = vst.msk [vmem:[#allocation5 + $0x78] sm:$0xff] %vm453_vm3, %v1100_v28 }
 0x24c   : > { %1126 = vst.msk [vmem:[#allocation5 + $0x48] sm:$0xff] %vm453_vm3, %v1094_v42 }
 0x24d   : > { %1130 = vst.msk [vmem:[#allocation5 + $0x68] sm:$0xff] %vm453_vm3, %v1098_v53 }
 0x24e   : > { %1134 = vst.msk [vmem:[#allocation5 + $0x88] sm:$0xff] %vm453_vm3, %v1102_v41  ;;  %v987_v3 = vpop.permute.xlu1 %986 }
 0x24f   : > { %1128 = vst.msk [vmem:[#allocation5 + $0x58] sm:$0xff] %vm453_vm3, %v1096_v1  ;;  %v1152_v33 = vpop.permute.xlu0 %1151  ;;  %v1106_v7 = vmul.f32 %v1063_v44, %v987_v3 }
 0x250   : > { %1135 = vst.msk [vmem:[#allocation5 + $0x90] sm:$0xff] %vm453_vm3, %v1103_v37 }
 0x251   : > { %1137 = vst.msk [vmem:[#allocation5 + $0xa0] sm:$0xff] %vm453_vm3, %v1105_v24 }
 0x252   : > { %1131 = vst.msk [vmem:[#allocation5 + $0x70] sm:$0xff] %vm453_vm3, %v1099_v52 }
 0x253   : > { %1139 = vst.msk [vmem:[#allocation5 + $0xb0] sm:$0xff] %vm453_vm3, %v1107_v30 }
 0x254   : > { %1140 = vst.msk [vmem:[#allocation5 + $0xb8] sm:$0xff] %vm453_vm3, %v1108_v54 }
 0x255   : > { %1133 = vst.msk [vmem:[#allocation5 + $0x80] sm:$0xff] %vm453_vm3, %v1101_v34 }
 0x256   : > { %v1046_v4 = vpop.permute.xlu2 %1045  ;;  %1142 = vst.msk [vmem:[#allocation5 + $0xc8] sm:$0xff] %vm453_vm3, %v1110_v63 }
 0x257   : > { %1145 = vst.msk [vmem:[#allocation5 + $0xe0] sm:$0xff] %vm453_vm3, %v1113_v60  ;;  %v1115_v11 = vmul.f32 %v1068_v6, %v1046_v4 }
 0x258   : > { %1144 = vst.msk [vmem:[#allocation5 + $0xd8] sm:$0xff] %vm453_vm3, %v1112_v2 }
 0x259   : > { %1136 = vst.msk [vmem:[#allocation5 + $0x98] sm:$0xff] %vm453_vm3, %v1104_v61 }
 0x25a   : > { %1157 = vst.msk [vmem:[#allocation6 + $0x8] sm:$0xff] %vm1155_vm15, %v1152_v33 }
 0x25b   : > { %1138 = vst.msk [vmem:[#allocation5 + $0xa8] sm:$0xff] %vm453_vm3, %v1106_v7 }
 0x25c   : > { %1147 = vst.msk [vmem:[#allocation5 + $0xf0] sm:$0xff] %vm453_vm3, %v1115_v11 }
 0x25e   : > { %v1150_v12 = vpop.permute.xlu2 %1149  ;;  %v1007_v13 = vpop.permute.xlu1 %1006 }
 0x25f   : > { %1156 = vst.msk [vmem:[#allocation6] sm:$0xff] %vm1155_vm15, %v1150_v12  ;;  %v1109_v40 = vmul.f32 %v1065_v56, %v1007_v13 }
 0x261   : > { %1141 = vst.msk [vmem:[#allocation5 + $0xc0] sm:$0xff] %vm453_vm3, %v1109_v40 }
 0x266   : > { %v1020_v16 = vpop.permute.xlu1 %1019 }
 0x267   : > { %v1111_v18 = vmul.f32 %v1066_v58, %v1020_v16 }
 0x269   : > { %1143 = vst.msk [vmem:[#allocation5 + $0xd0] sm:$0xff] %vm453_vm3, %v1111_v18 }
 0x276   : > { %v1039_v19 = vpop.permute.xlu1 %1038 }
 0x277   : > { %v1114_v20 = vmul.f32 %v1067_v57, %v1039_v19 }
 0x279   : > { %1146 = vst.msk [vmem:[#allocation5 + $0xe8] sm:$0xff] %vm453_vm3, %v1114_v20 }
 0x27e   : > { %v1052_v21 = vpop.permute.xlu1 %1051 }
 0x27f   : > { %v1116_v22 = vmul.f32 %v1068_v6, %v1052_v21 }
 0x281   : > { %1148 = vst.msk [vmem:[#allocation5 + $0xf8] sm:$0xff] %vm453_vm3, %v1116_v22 }
 0x282 LB: >> { %1994 = vset.pattern.permute.xlu1 %v2381_v48  ;;  %1993 = vset.pattern.permute.xlu0 %v2381_v48  ;;  %s1731_s29 = sshll.u32 %s2165_s18, 3  ;;  %v1215_v55 = vadd.s32 8, %v2381_v48  ;;  %s1762_s12 = sshll.u32 %s2165_s18, 7  ;;  %vm1430_vm0 = vcmask 1040384   ;;  %vm1433_vm1 = vcmask 1042432   ;;  %vm1435_vm4 = vcmask 1043456   ;;  %s2165_s18 = sphi %s2654_s18, %s1165_s18   ;;  %v2161_v15 = vphi %v1158_v15, %v2842_v15   ;;  %v2157_v59 = vphi %v1159_v59, %v2841_v59  }
 0x283   : >> { %1995 = vset.pattern.permute.xlu2 %v2381_v48  ;;  %s1204_s23 = scalar_lea.vmem [#allocation6], %s1731_s29  ;;  %s2672_s30 = scalar_lea.vmem [#allocation4], %s1762_s12  ;;  %vm1437_vm5 = vcmask 1044480   ;;  %vm1439_vm6 = vcmask 1045504   ;;  %vm1441_vm7 = vcmask 1046528  }
 0x284   : >> { %v1205_v62 = vld [vmem:[%s1204_s23] sm:$0xff]  ;;  %v1172_v28 = vld [vmem:[%s2672_s30 + $0x8] sm:$0xff]  ;;  %s2676_s7 = scalar_lea.vmem [#allocation5], %s1762_s12  ;;  %v1173_v41 = vld [vmem:[%s2672_s30 + $0x10] sm:$0xff]  ;;  %s1443_s21 = scalar_lea.vmem [#allocation7], %s1731_s29 }
 0x285   : >> { %v1219_v23 = vperm.slane %v1205_v62, 1  ;;  %v1206_v25 = vperm.slane %v1205_v62, 0  ;;  %v1232_v26 = vperm.slane %v1205_v62, 2  ;;  %v1258_v29 = vperm.slane %v1205_v62, 4  ;;  %v1171_v36 = vld [vmem:[%s2672_s30] sm:$0xff]  ;;  %v1174_v1 = vld [vmem:[%s2672_s30 + $0x18] sm:$0xff] }
 0x286   : >> { %v1245_v31 = vperm.slane %v1205_v62, 3  ;;  %v1284_v32 = vperm.slane %v1205_v62, 6  ;;  %v1271_v27 = vperm.slane %v1205_v62, 5  ;;  %v1297_v5 = vperm.slane %v1205_v62, 7  ;;  %v1175_v24 = vld [vmem:[%s2672_s30 + $0x20] sm:$0xff]  ;;  %v1176_v52 = vld [vmem:[%s2672_s30 + $0x28] sm:$0xff] }
 0x287   : >> { %v1310_v38 = vmul.f32 %v2161_v15, %v1171_v36  ;;  %v1311_v42 = vmul.f32 %v2157_v59, %v1172_v28  ;;  %v1177_v30 = vld [vmem:[%s2672_s30 + $0x30] sm:$0xff]  ;;  %v1178_v58 = vld [vmem:[%s2672_s30 + $0x38] sm:$0xff]  ;;  %v1179_v33 = vld [vmem:[%s2672_s30 + $0x40] sm:$0xff]  ;;  %s1165_s18 = sadd.s32 1, %s2165_s18  }
 0x288   : >> { %v1188_v39 = vld [vmem:[%s2676_s7] sm:$0xff]  ;;  %v1189_v17 = vld [vmem:[%s2676_s7 + $0x8] sm:$0xff]  ;;  %v1190_v44 = vld [vmem:[%s2676_s7 + $0x10] sm:$0xff]  ;;  %p1162_p5 = scmp.ge.s32.totalorder %s1165_s18, 2  }
 0x289   : >> { %v1312_v53 = vadd.f32 %v1310_v38, %v1188_v39  ;;  %v1313_v49 = vadd.f32 %v1311_v42, %v1189_v17  ;;  %v1191_v47 = vld [vmem:[%s2676_s7 + $0x18] sm:$0xff]  ;;  %v1192_v35 = vld [vmem:[%s2676_s7 + $0x20] sm:$0xff]  ;;  %v1193_v34 = vld [vmem:[%s2676_s7 + $0x28] sm:$0xff]  ;;  %s2172_s26 = smov (%p1162_p5), 64   ;;  %s1752_s11 = sshll.u32 (%p1162_p5), %s2141_s17, 2 }
 0x28a   : >> { %1224 = vperm.xlu1 %1994, %v1219_v23   ;;  %1211 = vperm.xlu0 %1993, %v1206_v25   ;;  %v1194_v2 = vld [vmem:[%s2676_s7 + $0x30] sm:$0xff]  ;;  %v1195_v6 = vld [vmem:[%s2676_s7 + $0x38] sm:$0xff]  ;;  %v1180_v7 = vld [vmem:[%s2672_s30 + $0x48] sm:$0xff]  ;;  %s1571_s22 = sadd.s32 (%p1162_p5), %s1752_s11, %s2324_s25  ;;  %s1574_s23 = sshll.u32 (%p1162_p5), %s2335_s24, 4  ;;  %s1575_s23 = int_to_ptr.vmem [resolvable:$true] %s1574_s23 }
 0x28b   : >> { %1237 = vperm.xlu2 %1995, %v1232_v26   ;;  %v1325_v43 = vmul.f32 %v1312_v53, %v1173_v41  ;;  %v1326_v37 = vmul.f32 %v1313_v49, %v1174_v1  ;;  %v1196_v40 = vld [vmem:[%s2676_s7 + $0x40] sm:$0xff]  ;;  %v1197_v16 = vld [vmem:[%s2676_s7 + $0x48] sm:$0xff]  ;;  %v1181_v21 = vld [vmem:[%s2672_s30 + $0x50] sm:$0xff] }
 0x28c   : >> { %v1182_v22 = vld [vmem:[%s2672_s30 + $0x58] sm:$0xff]  ;;  %v1184_v28 = vld [vmem:[%s2672_s30 + $0x68] sm:$0xff]  ;;  %v1200_v17 = vld [vmem:[%s2676_s7 + $0x60] sm:$0xff] }
 0x28d   : >> { %v1327_v45 = vadd.f32 %v1325_v43, %v1190_v44  ;;  %v1328_v51 = vadd.f32 %v1326_v37, %v1191_v47 }
 0x28f   : >> { %v1340_v50 = vmul.f32 %v1327_v45, %v1175_v24  ;;  %v1341_v54 = vmul.f32 %v1328_v51, %v1176_v52  ;;  %v1201_v24 = vld [vmem:[%s2676_s7 + $0x68] sm:$0xff] }
 0x291   : >> { %v1342_v56 = vadd.f32 %v1340_v50, %v1192_v35  ;;  %v1343_v60 = vadd.f32 %v1341_v54, %v1193_v34 }
 0x292   : >> { %1996 = vset.pattern.permute.xlu1 %v1215_v55  ;;  %1263 = vperm.xlu0 %1993, %v1258_v29  }
 0x293   : >> { %1998 = vset.pattern.permute.xlu2 %v1215_v55  ;;  %v1355_v63 = vmul.f32 %v1342_v56, %v1177_v30  ;;  %v1356_v4 = vmul.f32 %v1343_v60, %v1178_v58 }
 0x295   : >> { %v1357_v61 = vadd.f32 %v1355_v63, %v1194_v2  ;;  %v1358_v11 = vadd.f32 %v1356_v4, %v1195_v6 }
 0x297   : >> { %v1370_v12 = vmul.f32 %v1357_v61, %v1179_v33  ;;  %v1371_v59 = vmul.f32 %v1358_v11, %v1180_v7 }
 0x299   : >> { %v1372_v19 = vadd.f32 %v1370_v12, %v1196_v40  ;;  %v1373_v20 = vadd.f32 %v1371_v59, %v1197_v16  ;;  %v1186_v59 = vld [vmem:[%s2672_s30 + $0x78] sm:$0xff] }
 0x29a   : >> { %1230 = vperm.xlu1 %1996, %v1219_v23   ;;  %1999 = vset.pattern.permute.xlu0 %v1215_v55 }
 0x29b   : >> { %1243 = vperm.xlu2 %1998, %v1232_v26   ;;  %v1385_v62 = vmul.f32 %v1372_v19, %v1181_v21  ;;  %v1386_v26 = vmul.f32 %v1373_v20, %v1182_v22 }
 0x2a2   : >> { %1997 = vset.pattern.permute.xlu1 %v2381_v48  ;;  %1217 = vperm.xlu0 %1999, %v1206_v25   ;;  %v1198_v25 = vld [vmem:[%s2676_s7 + $0x50] sm:$0xff] }
 0x2a3   : >> { %1256 = vperm.xlu2 %1998, %v1245_v31  }
 0x2aa   : >> { %1250 = vperm.xlu1 %1997, %v1245_v31   ;;  %1295 = vperm.xlu0 %1999, %v1284_v32  }
 0x2ab   : >> { %2001 = vset.pattern.permute.xlu2 %v2381_v48 }
 0x2b2   : >> { %2000 = vset.pattern.permute.xlu1 %v1215_v55 }
 0x2b3   : >> { %1276 = vperm.xlu2 %2001, %v1271_v27  }
 0x2ba   : >> { %1269 = vperm.xlu1 %2000, %v1258_v29  }
 0x2bb   : >> { %1289 = vperm.xlu2 %2001, %v1284_v32   ;;  %v1387_v32 = vadd.f32 %v1385_v62, %v1198_v25 }
 0x2c2   : >> { %1282 = vperm.xlu1 %2000, %v1271_v27   ;;  %v1183_v27 = vld [vmem:[%s2672_s30 + $0x60] sm:$0xff] }
 0x2c3   : >> { %2003 = vset.pattern.permute.xlu2 %v1215_v55  ;;  %v1199_v55 = vld [vmem:[%s2676_s7 + $0x58] sm:$0xff]  ;;  %v1400_v42 = vmul.f32 %v1387_v32, %v1183_v27 }
 0x2ca   : >> { %2002 = vset.pattern.permute.xlu1 %v2381_v48 }
 0x2cb   : >> { %1308 = vperm.xlu2 %2003, %v1297_v5  }
 0x2d2   : >> { %1302 = vperm.xlu1 %2002, %v1297_v5   ;;  %v1388_v5 = vadd.f32 %v1386_v26, %v1199_v55 }
 0x2d4   : >> { %v1401_v41 = vmul.f32 %v1388_v5, %v1184_v28 }
 0x2e5   : >> { %v1238_v46 = vpop.permute.xlu2 %1237 }
 0x2e6   : >> { %v1344_v50 = vmul.f32 %v1342_v56, %v1238_v46 }
 0x2f5   : >> { %v1244_v3 = vpop.permute.xlu2 %1243 }
 0x2f6   : >> { %v1345_v52 = vmul.f32 %v1343_v60, %v1244_v3 }
 0x2f8   : >> { %v1347_v46 = vsel %vm453_vm3, %v1345_v52, 0.0 }
 0x2fc   : >> { %v1212_v57 = vpop.permute.xlu0 %1211  ;;  %v1225_v0 = vpop.permute.xlu1 %1224 }
 0x2fd   : >> { %v1257_v18 = vpop.permute.xlu2 %1256  ;;  %v1314_v36 = vmul.f32 %v1312_v53, %v1212_v57  ;;  %v1329_v1 = vmul.f32 %v1327_v45, %v1225_v0  ;;  %v1403_v57 = vadd.f32 %v1401_v41, %v1201_v24  ;;  %v1346_v0 = vsel %vm453_vm3, %v1344_v50, 0.0 }
 0x2fe   : >> { %v1360_v53 = vmul.f32 %v1358_v11, %v1257_v18  ;;  %v1348_v12 = vadd.f32 %v1347_v46, %v1346_v0 }
 0x2ff   : >> { %v1316_v44 = vsel %vm453_vm3, %v1314_v36, 0.0  ;;  %v1331_v63 = vsel %vm453_vm3, %v1329_v1, 0.0  ;;  %v1416_v26 = vmul.f32 %v1403_v57, %v1186_v59  ;;  %v1202_v1 = vld [vmem:[%s2676_s7 + $0x70] sm:$0xff] }
 0x300   : >> { %v1362_v2 = vsel %vm453_vm3, %v1360_v53, 0.0 }
 0x304   : >> { %v1264_v15 = vpop.permute.xlu0 %1263 }
 0x305   : >> { %v1374_v54 = vmul.f32 %v1372_v19, %v1264_v15 }
 0x30c   : >> { %v1231_v13 = vpop.permute.xlu1 %1230 }
 0x30d   : >> { %v1277_v31 = vpop.permute.xlu2 %1276  ;;  %v1330_v39 = vmul.f32 %v1328_v51, %v1231_v13 }
 0x30e   : >> { %v1389_v3 = vmul.f32 %v1387_v32, %v1277_v31  ;;  %v1203_v31 = vld [vmem:[%s2676_s7 + $0x78] sm:$0xff]  ;;  %v1185_v32 = vld [vmem:[%s2672_s30 + $0x70] sm:$0xff]  ;;  %s2843_s30 = sand.u32 (%p1162_p5), 1, %s2129_s14  }
 0x30f   : >> { %v1332_v30 = vsel %vm453_vm3, %v1330_v39, 0.0  ;;  %v2721_v59 = vadd.f32 %v1416_v26, %v1203_v31   ;;  %s1560_s7 = scalar_lea.sflag (%p1162_p5), [#allocation10], %s2843_s30 }
 0x310   : >> { %v1333_v56 = vadd.f32 %v1332_v30, %v1331_v63  ;;  %v1391_v16 = vsel %vm453_vm3, %v1389_v3, 0.0 }
 0x311   : >> { %v2840_v39 = vmov %v2721_v59 }
 0x312   : >> { %v1334_v15 = vrot.slane %v1333_v56, 4  ;;  %1446 = vst.msk [vmem:[#allocation2 + $0x8] sm:$0xff] (%p1162_p5), %vm453_vm3, %v2840_v39 }
 0x314   : >> { %v1218_v29 = vpop.permute.xlu0 %1217  ;;  %v1335_v55 = vadd.f32 %v1334_v15, %v1333_v56 }
 0x315   : >> { %v1315_v38 = vmul.f32 %v1313_v49, %v1218_v29  ;;  %v1402_v49 = vadd.f32 %v1400_v42, %v1200_v17  ;;  %v1290_v34 = vpop.permute.xlu2 %1289 }
 0x316   : >> { %v1336_v17 = vrot.slane %v1335_v55, 2 }
 0x317   : >> { %v1317_v37 = vsel %vm453_vm3, %v1315_v38, 0.0  ;;  %v1404_v4 = vmul.f32 %v1402_v49, %v1290_v34  ;;  %v1415_v42 = vmul.f32 %v1402_v49, %v1185_v32 }
 0x318   : >> { %v1318_v51 = vadd.f32 %v1317_v37, %v1316_v44  ;;  %v1337_v30 = vadd.f32 %v1336_v17, %v1335_v55 }
 0x319   : >> { %v1406_v18 = vsel %vm453_vm3, %v1404_v4, 0.0 }
 0x31a   : >> { %v1319_v6 = vrot.slane %v1318_v51, 4  ;;  %v1338_v0 = vrot.slane %v1337_v30, 1 }
 0x31c   : >> { %v1251_v23 = vpop.permute.xlu1 %1250  ;;  %v1296_v58 = vpop.permute.xlu0 %1295 }
 0x31d   : >> { %v1359_v47 = vmul.f32 %v1357_v61, %v1251_v23  ;;  %v1376_v61 = vsel %vm453_vm3, %v1374_v54, 0.0  ;;  %v1405_v7 = vmul.f32 %v1403_v57, %v1296_v58  ;;  %v1349_v23 = vrot.slane %v1348_v12, 4 }
 0x31f   : >> { %v1361_v45 = vsel %vm453_vm3, %v1359_v47, 0.0  ;;  %v1407_v22 = vsel %vm453_vm3, %v1405_v7, 0.0  ;;  %v1350_v38 = vadd.f32 %v1349_v23, %v1348_v12 }
 0x320   : >> { %v1363_v33 = vadd.f32 %v1362_v2, %v1361_v45  ;;  %v1408_v27 = vadd.f32 %v1407_v22, %v1406_v18 }
 0x321   : >> { %v1351_v24 = vrot.slane %v1350_v38, 2 }
 0x322   : >> { %v1364_v21 = vrot.slane %v1363_v33, 4  ;;  %v1409_v44 = vrot.slane %v1408_v27, 4 }
 0x323   : >> { %v1352_v63 = vadd.f32 %v1351_v24, %v1350_v38 }
 0x324   : >> { %v1365_v36 = vadd.f32 %v1364_v21, %v1363_v33  ;;  %v1410_v54 = vadd.f32 %v1409_v44, %v1408_v27  ;;  %v1339_v33 = vadd.f32 %v1338_v0, %v1337_v30  ;;  %v1457_v27 = vsub.f32 (%p1162_p5), 0.0, %v2357_v10 }
 0x326   : >> { %v1366_v47 = vrot.slane %v1365_v36, 2  ;;  %v1411_v56 = vrot.slane %v1410_v54, 2 }
 0x328   : >> { %v1367_v34 = vadd.f32 %v1366_v47, %v1365_v36  ;;  %v1412_v12 = vadd.f32 %v1411_v56, %v1410_v54  ;;  %v1459_v36 = vmul.f32 (%p1162_p5), 1.442695, %v1457_v27  ;;  %v1765_v56 = vld [vmem:[%s2823_s9 + $0x10] sm:$0xff] (%p1162_p5) }
 0x32a   : >> { %v1368_v3 = vrot.slane %v1367_v34, 1  ;;  %v1413_v21 = vrot.slane %v1412_v12, 1  ;;  %2005 = vpow2.f32 (%p1162_p5), %v1459_v36 }
 0x32c   : >> { %v1270_v43 = vpop.permute.xlu1 %1269  ;;  %v1414_v55 = vadd.f32 %v1413_v21, %v1412_v12 }
 0x32d   : >> { %v1375_v35 = vmul.f32 %v1373_v20, %v1270_v43  ;;  %v1320_v20 = vadd.f32 %v1319_v6, %v1318_v51  ;;  %v1309_v43 = vpop.permute.xlu2 %1308 }
 0x32e   : >> { %v1420_v52 = vmul.f32 %v2840_v39, %v1309_v43 }
 0x32f   : >> { %v1377_v60 = vsel %vm453_vm3, %v1375_v35, 0.0  ;;  %v1417_v35 = vadd.f32 %v1415_v42, %v1202_v1  }
 0x330   : >> { %v1378_v13 = vadd.f32 %v1377_v60, %v1376_v61  ;;  %v1422_v45 = vsel %vm453_vm3, %v1420_v52, 0.0  ;;  %v1353_v61 = vrot.slane %v1352_v63, 1  ;;  %v2006_v42 = vpop.eup (%p1162_p5), %2005 }
 0x331   : > { %1445 = vst.msk [vmem:[#allocation2] sm:$0xff] (%p1162_p5), %vm453_vm3, %v1417_v35  ;;  %v1463_v48 = vadd.f32 (%p1162_p5), 1.0, %v2006_v42 }
 0x332   : >> { %v1379_v25 = vrot.slane %v1378_v13, 4  ;;  %v1354_v59 = vadd.f32 %v1353_v61, %v1352_v63 }
 0x333   : > { %vm1470_vm8 = vweird.f32 (%p1162_p5), %v1463_v48  ;;  %v1474_v24 = vand.u32 (%p1162_p5), 2147483647, %v1463_v48 }
 0x334   : >> { %v1283_v11 = vpop.permute.xlu1 %1282  ;;  %v1380_v28 = vadd.f32 %v1379_v25, %v1378_v13 }
 0x335   : >> { %v1390_v40 = vmul.f32 %v1388_v5, %v1283_v11  ;;  %v1321_v5 = vrot.slane %v1320_v20, 2 }
 0x336   : >> { %v1381_v50 = vrot.slane %v1380_v28, 2 }
 0x337   : >> { %v1392_v19 = vsel %vm453_vm3, %v1390_v40, 0.0  ;;  %v1322_v37 = vadd.f32 %v1321_v5, %v1320_v20  ;;  %v1369_v40 = vadd.f32 %v1368_v3, %v1367_v34  ;;  %v1458_v5 = vsub.f32 (%p1162_p5), 0.0, %v2370_v14 }
 0x338   : >> { %v1393_v62 = vadd.f32 %v1392_v19, %v1391_v16  ;;  %v1382_v49 = vadd.f32 %v1381_v50, %v1380_v28  ;;  %v1766_v28 = vld [vmem:[%s2823_s9 + $0x18] sm:$0xff] (%p1162_p5) }
 0x339   : >> { %v1323_v51 = vrot.slane %v1322_v37, 1  ;;  %v1461_v38 = vmul.f32 (%p1162_p5), 1.442695, %v1458_v5  ;;  %1547 = vmatpush.bf16.msra.mxu3 (%p1162_p5), %v1766_v28 }
 0x33a   : >> { %v1394_v29 = vrot.slane %v1393_v62, 4  ;;  %v1383_v6 = vrot.slane %v1382_v49, 1 }
 0x33b   : >> { %v1324_v2 = vadd.f32 %v1323_v51, %v1322_v37  ;;  %2007 = vpow2.f32 (%p1162_p5), %v1461_v38  ;;  %v1476_v37 = vand.u32 (%p1162_p5), 2147483648, %v1463_v48 }
 0x33c   : >> { %v1395_v41 = vadd.f32 %v1394_v29, %v1393_v62  ;;  %v1384_v16 = vadd.f32 %v1383_v6, %v1382_v49  ;;  %2009 = vrcp.f32 (%p1162_p5), %v1463_v48 }
 0x33d   : >> { %v1431_v13 = vsel %vm1430_vm0, %v1324_v2, %v1339_v33  ;;  %1548 = vmatpush.bf16.msra.mxu3 (%p1162_p5), %v1765_v56 }
 0x33e   : >> { %v1396_v53 = vrot.slane %v1395_v41, 2  ;;  %v1432_v20 = vsel %vm598_vm13, %v1431_v13, %v1354_v59  ;;  %v2841_v59 = vmov %v2840_v39  ;;  %vm1475_vm13 = vcmp.eq.f32.partialorder (%p1162_p5), %v1474_v24, 8.507059e+37 }
 0x33f   : >> { %v1434_v22 = vsel %vm1433_vm1, %v1432_v20, %v1369_v40 }
 0x340   : >> { %v1397_v46 = vadd.f32 %v1396_v53, %v1395_v41  ;;  %v1436_v23 = vsel %vm1435_vm4, %v1434_v22, %v1384_v16 }
 0x341   : > { %v2008_v17 = vpop.eup (%p1162_p5), %2007 }
 0x342   : >> { %v1398_v7 = vrot.slane %v1397_v46, 1  ;;  %v1464_v41 = vadd.f32 (%p1162_p5), 1.0, %v2008_v17  ;;  %v2010_v43 = vpop.eup (%p1162_p5), %2009 }
 0x343   : > { %v1466_v44 = vmul.f32 (%p1162_p5), %v2010_v43, %v1463_v48  ;;  %vm1471_vm9 = vweird.f32 (%p1162_p5), %v2010_v43 }
 0x344   : >> { %v1303_v57 = vpop.permute.xlu1 %1302  ;;  %v1399_v18 = vadd.f32 %v1398_v7, %v1397_v46  ;;  %2011 = vrcp.f32 (%p1162_p5), %v1464_v41  ;;  %vm1485_vm10 = vweird.f32 (%p1162_p5), %v1464_v41  ;;  %vm1472_vm12 = vmor (%p1162_p5), %vm1470_vm8, %vm1471_vm9  ;;  %v1491_v53 = vand.u32 (%p1162_p5), 2147483648, %v1464_v41 }
 0x345   : >> { %v1419_v58 = vmul.f32 %v1417_v35, %v1303_v57  ;;  %v1467_v47 = vsub.f32 (%p1162_p5), 1.0, %v1466_v44  ;;  %v1489_v51 = vand.u32 (%p1162_p5), 2147483647, %v1464_v41 }
 0x346   : >> { %v1438_v25 = vsel %vm1437_vm5, %v1436_v23, %v1399_v18  ;;  %v1492_v49 = vor.u32 (%p1162_p5), 1.1754944e-38, %v1491_v53 }
 0x347   : >> { %v1421_v60 = vsel %vm453_vm3, %v1419_v58, 0.0  ;;  %v1440_v31 = vsel %vm1439_vm6, %v1438_v25, %v1414_v55  ;;  %v1468_v52 = vmul.f32 (%p1162_p5), %v2010_v43, %v1467_v47  ;;  %vm1490_vm15 = vcmp.eq.f32.partialorder (%p1162_p5), %v1489_v51, 8.507059e+37 }
 0x348   : >> { %v1423_v4 = vadd.f32 %v1422_v45, %v1421_v60  ;;  %v1764_v60 = vld [vmem:[%s2823_s9 + $0x8] sm:$0xff] (%p1162_p5) }
 0x349   : > { %v1469_v54 = vadd.f32 (%p1162_p5), %v2010_v43, %v1468_v52  ;;  %1549 = vmatpush.bf16.msra.mxu3 (%p1162_p5), %v1764_v60 }
 0x34a   : >> { %v1424_v11 = vrot.slane %v1423_v4, 4  ;;  %v2012_v1 = vpop.eup (%p1162_p5), %2011 }
 0x34b   : > { %v1481_v39 = vmul.f32 (%p1162_p5), %v2012_v1, %v1464_v41  ;;  %vm1486_vm11 = vweird.f32 (%p1162_p5), %v2012_v1  ;;  %v1473_v57 = vsel (%p1162_p5), %vm1472_vm12, %v2010_v43, %v1469_v54 }
 0x34c   : >> { %v1425_v15 = vadd.f32 %v1424_v11, %v1423_v4  ;;  %vm1487_vm14 = vmor (%p1162_p5), %vm1485_vm10, %vm1486_vm11 }
 0x34d   : > { %v1482_v50 = vsub.f32 (%p1162_p5), 1.0, %v1481_v39 }
 0x34e   : >> { %v1426_v19 = vrot.slane %v1425_v15, 2 }
 0x34f   : > { %v1483_v30 = vmul.f32 (%p1162_p5), %v2012_v1, %v1482_v50 }
 0x350   : >> { %v1427_v62 = vadd.f32 %v1426_v19, %v1425_v15  ;;  %v2842_v15 = vmov %v1417_v35  ;;  %v1477_v35 = vor.u32 (%p1162_p5), 1.1754944e-38, %v1476_v37 }
 0x351   : > { %v1484_v34 = vadd.f32 (%p1162_p5), %v2012_v1, %v1483_v30 }
 0x352   : >> { %v1428_v26 = vrot.slane %v1427_v62, 1  ;;  %v1478_v63 = vsel (%p1162_p5), %vm1475_vm13, %v1477_v35, %v1473_v57 }
 0x353   : > { %1164 = sbr.rel (!%p1162_p5) target bundleno = 642 (0x282), region = 115  ;;  %v1495_v45 = vmul.f32 (%p1162_p5), %v1478_v63, %v2357_v10  ;;  %v1488_v58 = vsel (%p1162_p5), %vm1487_vm14, %v2012_v1, %v1484_v34  ;;  %v1763_v10 = vld [vmem:[%s2823_s9] sm:$0xff] (%p1162_p5) }
 0x354   : >> { %v1429_v29 = vadd.f32 %v1428_v26, %v1427_v62  ;;  %v1493_v0 = vsel (%p1162_p5), %vm1490_vm15, %v1492_v49, %v1488_v58  ;;  %1550 = vmatpush.bf16.msra.mxu3 (%p1162_p5), %v1763_v10 }
 0x355   : > { %1499 = vrot.lane.b32.xlu0 (%p1162_p5), %v1495_v45, %s2172_s26  ;;  %v1496_v46 = vmul.f32 (%p1162_p5), %v1493_v0, %v2370_v14  ;;  %v2004_v14 = vld [vmem:[%s2822_s8] ss:$0 sm:$0xff] (%p1162_p5) }
 0x356   : >> { %v1442_v32 = vsel %vm1441_vm7, %v1440_v31, %v1429_v29  ;;  %v1453_v3 = vmul.f32 (%p1162_p5), %v2004_v14, %v2389_v8  ;;  %v1454_v4 = vmul.f32 (%p1162_p5), %v2004_v14, %v2391_v9 }
 0x357   : >> { %1444 = vst.msk [vmem:[%s1443_s21] sm:$0xff] %vm453_vm3, %v1442_v32 }
 0x35d   : > { %1501 = vrot.lane.b32.xlu0 %v1496_v46, %s2172_s26  ;;  %s1753_s26 = sshll.u32 %s1571_s22, 3  ;;  %s2063_s22 = scalar_lea.hbm %s2824_s10, 64 }
 0x35e   : > { %v1447_v61 = vld [vmem:[#allocation7] sm:$0xff]  ;;  %v1448_v6 = vld [vmem:[#allocation7 + $0x8] sm:$0xff]  ;;  %s1573_s29 = scalar_lea.hbm %s2824_s10, %s1753_s26 }
 0x35f   : > { %v1455_v33 = vadd.f32 %v1453_v3, %v1447_v61  ;;  %v1456_v7 = vadd.f32 %v1454_v4, %v1448_v6  ;;  %s1576_s12 = sshll.u32 %s1573_s29, 4  ;;  %s1577_s12 = int_to_ptr.hbm [resolvable:$true] %s1576_s12 }
 0x360   : > { %s2057_s17 = sshra.s32 %s1577_s12, 4  ;;  %s2058_s17 = int_to_ptr.hbm [resolvable:$true] %s2057_s17 }
 0x361   : > { %s2059_s25 = scalar_lea.hbm %s2058_s17, 16  ;;  %p2064_p10 = scmp.lt.s32.totalorder %s2058_s17, %s2824_s10 }
 0x362   : > { %p2060_p6 = scmp.ne.s32.totalorder %s2058_s17, %s2059_s25  ;;  %p2065_p11 = scmp.lt.s32.totalorder %s2063_s22, %s2059_s25 }
 0x364   : > { %p2061_p7 = pnand %p2060_p6, %p2282_p3  ;;  %p2066_p12 = por %p2065_p11, %p2064_p10 }
 0x366   : > { %p2062_p9 = pneg %p2061_p7 }
 0x368   : > { %p2067_p13 = pnand %p2066_p12, %p2062_p9 }
 0x3c7   : > { %v1500_v2 = vpop.permute.xlu0 %1499 }
 0x3c8   : > { %v1505_v12 = vmul.f32 %v1500_v2, %v1455_v33 }
 0x3cf   : > { %v1502_v11 = vpop.permute.xlu0 %1501 }
 0x3d0   : > { %v1506_v13 = vmul.f32 %v1502_v11, %v1456_v7 }
 0x3d2   : > { %v1507_v40 = vpack.c.bf16 %v1506_v13, %v1505_v12 }
 0x3d4   : > { %1749 = vmatmul.msk.bf16.vlgmr.msra.gmra.mxu3 %vm453_vm3, %v1507_v40 }
 0x457   : > { %v1552_v8 = vpop.f32.mrf.mxu3 }
 0x458   : > { %1557 = vst.msk [vmem:[%s2335_s24] sm:$0xff] %vm435_vm2, %v1552_v8 }
 0x45f   : > { %v1554_v9 = vpop.f32.mrf.mxu3 }
 0x460   : > { %1558 = vst.msk [vmem:[%s2335_s24 + $0x8] sm:$0xff] %vm435_vm2, %v1554_v9 }
 0x461   : > { %2070 = shalt.err (!%p2067_p13)
}
 0x462   : > { %s2173_s24 = smov 128   ;;  %s2174_s18 = smov 8  }
 0x463   : > { %1771 = dma.vmem_to_hbm [thread:$0]  (%p2282_p3), %s1575_s23, 256, %s1577_s12, %s1560_s7, %s2173_s24, %s2173_s24, %s2174_s18  }
 0x464 PF: > { %p1783_p0 = scmp.ge.s32.totalorder %s2153_s20, 2  ;;  %s1591_s30 = sand.u32 1, %s2125_s13  }
 0x465   : > { %s1592_s21 = scalar_lea.sflag [#allocation10], %s1591_s30 }
 0x466   : > { %p1778_p1 = pnand %p1783_p0, %p2291_p8 }
 0x468   : > { %p1779_p2 = pneg %p1778_p1 }
 0x46a   : > { %2120 = dma.done.wait (%p1779_p2), %s1592_s21, 256  }
 0x46b   : > { %2122 = vsyncadd (%p1779_p2), %s1592_s21, 4294967040  ;;  %s24_s20 = sadd.s32 1, %s2153_s20   ;;  %s2845_s16 = sld [smem:[#allocation14_spill]] }
 0x46c   : > { %p21_p4 = scmp.ge.s32.totalorder %s24_s20, 6   ;;  %s2846_s18 = sld [smem:[#allocation15_spill]] }
 0x46d   : > { %s2847_s27 = sld [smem:[#allocation16_spill]]  ;;  %s2848_s13 = smov %s2129_s14 }
 0x46e   : > { %s2849_s14 = smov %s2133_s15  ;;  %s2850_s15 = smov %s2312_s28 }
 0x46f   : > { %s2851_s17 = smov %s2149_s19  ;;  %23 = sbr.rel (!%p21_p4) target bundleno = 8 (0x8), region = 126 }
 0x473   : > { %s2852_s19 = smov %s2847_s27 }
 0x474   :  { %1598 = vsyncpa [#allocation9], 1 }
 0x475   :  { %1600 = vsyncpa [#allocation9 + $0x1], 1 }
 0x476   :  { %1601 = vsyncpa [#allocation10], 1 }
 0x477   :  { %1603 = vsyncpa [#allocation10 + $0x1], 1 }

</bundles_post_ra>
